<compile_context>
chip_gen: v7x
topology: tpu7x:2x2x1
jax: 0.10.0
libtpu: 0.0.40
codegen_flags: <defaults>
</compile_context>

<pallas_src>
import jax
import jax.numpy as jnp
from jax.experimental import pallas as pl
from jax.experimental.pallas import tpu as pltpu

EMBED = 128    # embedding_size
FEAT = 1792    # feature width feeding the replaced `logits` layer
K_PAD = 128    # im2col depth (9 * in_ch) zero-padded to a lane-dense 128


def _pick_tile(p, candidates=(1024, 512, 256, 128, 64, 32, 16, 8)):
    """Largest sublane-friendly spatial tile that evenly divides p."""
    for t in candidates:
        if p % t == 0:
            return t
    return p


# ----------------------------------------------------------------------------
# Fused kernel: conv(im2col)+BN+ReLU -> global avg pool -> Linear -> L2-norm
# ----------------------------------------------------------------------------
def conv_bn_relu_pool_head(patches_b, w_fold, b_fold, w_head, b_head):
    """patches_b: [B, P, K_PAD] bf16, w_fold: [K_PAD, FEAT] bf16,
    b_fold: [1, FEAT] f32, w_head: [FEAT, EMBED] bf16, b_head: [1, EMBED] f32
    -> [B, EMBED] f32 (unit L2 norm along dim 1)."""
    B, P, KP = patches_b.shape
    N = w_fold.shape[1]
    tm = _pick_tile(P)
    sublane_acc = (tm % 8 == 0)
    acc_rows = 8 if sublane_acc else 1
    inv_p = 1.0 / float(P)

    def kernel(p_ref, w_ref, b_ref, hw_ref, hb_ref, o_ref, acc_ref):
        s = pl.program_id(1)

        @pl.when(s == 0)
        def _init():
            acc_ref[...] = jnp.zeros_like(acc_ref)

        # (tm, 128) bf16 @ (128, 1792) bf16 -> f32 on the MXU
        x = jnp.dot(p_ref[0], w_ref[...], preferred_element_type=jnp.float32)
        relu = jnp.maximum(x + b_ref[...], 0.0)               # f32 epilogue
        if sublane_acc:
            # per-step reduce stays on the VALU: sublane-group partial sums
            acc_ref[...] += jnp.sum(relu.reshape(tm // 8, 8, N), axis=0)
        else:
            acc_ref[...] += jnp.sum(relu, axis=0, keepdims=True)

        @pl.when(s == pl.num_programs(1) - 1)
        def _finalize():
            # single 8 -> 1 cross-sublane (XLU) reduce per batch element
            if sublane_acc:
                pooled = jnp.sum(acc_ref[...], axis=0, keepdims=True) * inv_p
            else:
                pooled = acc_ref[...] * inv_p                  # (1, N) f32
            # fused logits head: Linear(1792, 128), bf16 MXU / f32 accumulate
            emb = jnp.dot(pooled.astype(jnp.bfloat16), hw_ref[...],
                          preferred_element_type=jnp.float32) + hb_ref[...]
            # F.normalize(x, p=2, dim=1): x / max(||x||_2, 1e-12)
            sumsq = jnp.sum(emb * emb, axis=1, keepdims=True)
            o_ref[0] = emb * jax.lax.rsqrt(jnp.maximum(sumsq, 1e-24))

    # VMEM budget (double-buffered inputs + f32 epilogue headroom), clamped so
    # it is safe on v7x (64 MiB physical) as well as v5e/v6e (128 MiB).
    vmem_need = (2 * tm * KP * 2            # patch tiles (bf16, dbl buffer)
                 + 2 * KP * N * 2           # folded conv weights (bf16)
                 + 2 * N * 4                # BN shift (f32)
                 + 2 * N * EMBED * 2        # head weights (bf16)
                 + 2 * EMBED * 4            # head bias (f32)
                 + acc_rows * N * 4         # accumulator scratch
                 + 3 * tm * N * 4)          # f32 epilogue temporaries headroom
    vmem_limit = int(min(max(vmem_need + (8 << 20), 32 << 20), 48 << 20))

    flops = 2 * B * P * KP * N + 2 * B * N * EMBED
    bytes_accessed = (patches_b.size * 2 + w_fold.size * 2 + b_fold.size * 4
                      + w_head.size * 2 + b_head.size * 4 + B * EMBED * 4)

    out = pl.pallas_call(
        kernel,
        out_shape=jax.ShapeDtypeStruct((B, 1, EMBED), jnp.float32),
        grid_spec=pltpu.PrefetchScalarGridSpec(
            num_scalar_prefetch=0,
            grid=(B, P // tm),                                  # reduction axis last
            in_specs=[
                pl.BlockSpec((1, tm, KP), lambda b, s: (b, s, 0)),   # patches
                pl.BlockSpec((KP, N), lambda b, s: (0, 0)),          # conv weights
                pl.BlockSpec((1, N), lambda b, s: (0, 0)),           # BN shift
                pl.BlockSpec((N, EMBED), lambda b, s: (0, 0)),       # head weights
                pl.BlockSpec((1, EMBED), lambda b, s: (0, 0)),       # head bias
            ],
            out_specs=pl.BlockSpec((1, 1, EMBED), lambda b, s: (b, 0, 0)),
            scratch_shapes=[pltpu.VMEM((acc_rows, N), jnp.float32)],
        ),
        compiler_params=pltpu.CompilerParams(
            dimension_semantics=("parallel", "arbitrary"),
            vmem_limit_bytes=vmem_limit,
        ),
        cost_estimate=pl.CostEstimate(
            flops=flops, transcendentals=0, bytes_accessed=bytes_accessed),
    )(patches_b, w_fold, b_fold, w_head, b_head)
    return out.reshape(B, EMBED)


# ----------------------------------------------------------------------------
# Glue: im2col (lane-dense K), deterministic parameter setup, full forward
# ----------------------------------------------------------------------------
def im2col_3x3_same(x_nhwc, k_pad=K_PAD):
    """3x3 'same' patches -> [B, H*W, K_PAD] (dh, dw, c ordering, zero-padded K)."""
    B, H, W, C = x_nhwc.shape
    xp = jnp.pad(x_nhwc, ((0, 0), (1, 1), (1, 1), (0, 0)))
    cols = [xp[:, dh:dh + H, dw:dw + W, :] for dh in range(3) for dw in range(3)]
    patches = jnp.concatenate(cols, axis=-1).reshape(B, H * W, 9 * C)
    if 9 * C < k_pad:
        patches = jnp.pad(patches, ((0, 0), (0, 0), (0, k_pad - 9 * C)))
    return patches


def init_params(key, in_ch):
    ks = jax.random.split(key, 6)
    # stem conv (HWIO) + BatchNorm2d(FEAT), eval mode (BN folded into conv)
    w_conv = 0.05 * jax.random.normal(ks[0], (3, 3, in_ch, FEAT), jnp.float32)
    gamma = 1.0 + 0.05 * jax.random.normal(ks[1], (FEAT,), jnp.float32)
    beta = 0.05 * jax.random.normal(ks[2], (FEAT,), jnp.float32)
    run_mean = 0.05 * jax.random.normal(ks[3], (FEAT,), jnp.float32)
    run_var = 0.5 + jax.random.uniform(ks[4], (FEAT,), jnp.float32)
    eps = 1e-3
    scale = gamma / jnp.sqrt(run_var + eps)
    w_fold = w_conv.reshape(9 * in_ch, FEAT) * scale[None, :]
    w_fold = jnp.pad(w_fold, ((0, K_PAD - 9 * in_ch), (0, 0)))   # lane-dense K
    b_fold = (beta - run_mean * scale).reshape(1, FEAT)
    # replaced head: nn.Linear(1792, 128)
    kw, kb = jax.random.split(ks[5])
    bound = 1.0 / float(FEAT) ** 0.5
    w_logits = jax.random.uniform(kw, (FEAT, EMBED), jnp.float32, -bound, bound)
    b_logits = jax.random.uniform(kb, (1, EMBED), jnp.float32, -bound, bound)
    return dict(
        w_fold_bf16=w_fold.astype(jnp.bfloat16),      # MXU operand
        b_fold=b_fold,                                 # f32 epilogue
        w_logits_bf16=w_logits.astype(jnp.bfloat16),   # MXU operand
        b_logits=b_logits,                             # f32 epilogue
    )


def facenet_forward(x_nchw, params):
    x = jnp.transpose(x_nchw, (0, 2, 3, 1)).astype(jnp.float32)   # NCHW -> NHWC
    patches = im2col_3x3_same(x).astype(jnp.bfloat16)             # [B, P, 128] bf16
    return conv_bn_relu_pool_head(
        patches, params["w_fold_bf16"], params["b_fold"],
        params["w_logits_bf16"], params["b_logits"])               # [B, 128] f32


if __name__ == "__main__":
    key = jax.random.PRNGKey(0)
    kx, kp = jax.random.split(key)
    x = jax.random.normal(kx, (2, 3, 16, 16), dtype=jnp.float32)   # NCHW RGB
    params = init_params(kp, in_ch=3)

    out = jax.jit(facenet_forward)(x, params)
    out = jax.block_until_ready(out)

    assert out.shape == (2, EMBED), out.shape
    # embeddings are unit-norm (L2-normalized along dim=1)
    norms = jnp.linalg.norm(out, axis=1)
    assert bool(jnp.all(jnp.abs(norms - 1.0) < 1e-4)), norms
    print("KERNEL_OK")
</pallas_src>

<mosaic_0001>
module attributes {stable_mosaic.version = 11 : i64} {
  func.func @kernel(%arg0: i32, %arg1: i32, %arg2: memref<1x256x128xbf16, #tpu.memory_space<vmem>>, %arg3: memref<128x1792xbf16, #tpu.memory_space<vmem>>, %arg4: memref<1x1792xf32, #tpu.memory_space<vmem>>, %arg5: memref<1792x128xbf16, #tpu.memory_space<vmem>>, %arg6: memref<1x128xf32, #tpu.memory_space<vmem>>, %arg7: memref<1x1x128xf32, #tpu.memory_space<vmem>>, %arg8: memref<8x1792xf32, #tpu.memory_space<vmem>>) attributes {dimension_semantics = [#tpu.dimension_semantics<parallel>, #tpu.dimension_semantics<arbitrary>], iteration_bounds = array<i64: 2, 1>, scalar_prefetch = 0 : i64, scratch_operands = 1 : i64, tpu.core_type = #tpu.core_type<tc>, window_params = [{transform_indices = @transform_0, window_bounds = array<i64: 1, 256, 128>}, {pipeline_mode = #tpu.pipeline_mode<synchronous>, transform_indices = @transform_1, window_bounds = array<i64: 128, 1792>}, {pipeline_mode = #tpu.pipeline_mode<synchronous>, transform_indices = @transform_2, window_bounds = array<i64: 1, 1792>}, {pipeline_mode = #tpu.pipeline_mode<synchronous>, transform_indices = @transform_3, window_bounds = array<i64: 1792, 128>}, {pipeline_mode = #tpu.pipeline_mode<synchronous>, transform_indices = @transform_4, window_bounds = array<i64: 1, 128>}, {transform_indices = @transform_5, window_bounds = array<i64: 1, 1, 128>}]} {
    %c0_i32 = arith.constant 0 : i32
    %0 = arith.cmpi eq, %arg1, %c0_i32 : i32
    %1 = arith.extui %0 : i1 to i32
    %c0_i32_0 = arith.constant 0 : i32
    %2 = arith.cmpi ne, %1, %c0_i32_0 : i32
    scf.if %2 {
      %cst_15 = arith.constant 0.000000e+00 : f32
      %20 = vector.broadcast %cst_15 : f32 to vector<8x1792xf32>
      %c0_16 = arith.constant 0 : index
      %c0_17 = arith.constant 0 : index
      %21 = vector.load %arg8[%c0_16, %c0_17] : memref<8x1792xf32, #tpu.memory_space<vmem>>, vector<8x1792xf32>
      tpu.vector_store %arg8[%c0_16, %c0_17], %20 {strides = array<i32>} : memref<8x1792xf32, #tpu.memory_space<vmem>>, vector<8x1792xf32>,
    } else {
    }
    %c0 = arith.constant 0 : index
    %c0_1 = arith.constant 0 : index
    %c0_2 = arith.constant 0 : index
    %3 = vector.load %arg2[%c0, %c0_1, %c0_2] : memref<1x256x128xbf16, #tpu.memory_space<vmem>>, vector<1x256x128xbf16>
    %4 = vector.shape_cast %3 : vector<1x256x128xbf16> to vector<256x128xbf16>
    %c0_3 = arith.constant 0 : index
    %c0_4 = arith.constant 0 : index
    %5 = vector.load %arg3[%c0_3, %c0_4] : memref<128x1792xbf16, #tpu.memory_space<vmem>>, vector<128x1792xbf16>
    %cst = arith.constant dense<0.000000e+00> : vector<256x1792xf32>
    %6 = tpu.matmul %4, %5, %cst {dimension_numbers = #tpu.dot_dimension_numbers<[1], [0], [0], [1], [0, 0, 1, 1], [], []>} : vector<256x128xbf16>, vector<128x1792xbf16>, vector<256x1792xf32> -> vector<256x1792xf32>
    %c0_5 = arith.constant 0 : index
    %c0_6 = arith.constant 0 : index
    %7 = vector.load %arg4[%c0_5, %c0_6] : memref<1x1792xf32, #tpu.memory_space<vmem>>, vector<1x1792xf32>
    %8 = vector.broadcast %7 : vector<1x1792xf32> to vector<256x1792xf32>
    %9 = arith.addf %6, %8 : vector<256x1792xf32>
    %cst_7 = arith.constant 0.000000e+00 : f32
    %10 = vector.broadcast %cst_7 : f32 to vector<256x1792xf32>
    %11 = arith.maximumf %9, %10 : vector<256x1792xf32>
    %c0_8 = arith.constant 0 : index
    %c0_9 = arith.constant 0 : index
    %12 = vector.load %arg8[%c0_8, %c0_9] : memref<8x1792xf32, #tpu.memory_space<vmem>>, vector<8x1792xf32>
    %13 = vector.shape_cast %11 : vector<256x1792xf32> to vector<32x8x1792xf32>
    %cst_10 = arith.constant dense<0.000000e+00> : vector<8x1792xf32>
    %14 = vector.multi_reduction <add>, %13, %cst_10 [0] : vector<32x8x1792xf32> to vector<8x1792xf32>
    %15 = arith.addf %12, %14 : vector<8x1792xf32>
    %c0_11 = arith.constant 0 : index
    %c0_12 = arith.constant 0 : index
    %16 = vector.load %arg8[%c0_11, %c0_12] : memref<8x1792xf32, #tpu.memory_space<vmem>>, vector<8x1792xf32>
    tpu.vector_store %arg8[%c0_11, %c0_12], %15 {strides = array<i32>} : memref<8x1792xf32, #tpu.memory_space<vmem>>, vector<8x1792xf32>,
    %c0_i32_13 = arith.constant 0 : i32
    %17 = arith.cmpi eq, %arg1, %c0_i32_13 : i32
    %18 = arith.extui %17 : i1 to i32
    %c0_i32_14 = arith.constant 0 : i32
    %19 = arith.cmpi ne, %18, %c0_i32_14 : i32
    scf.if %19 {
      %c0_15 = arith.constant 0 : index
      %c0_16 = arith.constant 0 : index
      %20 = vector.load %arg8[%c0_15, %c0_16] : memref<8x1792xf32, #tpu.memory_space<vmem>>, vector<8x1792xf32>
      %cst_17 = arith.constant dense<0.000000e+00> : vector<1792xf32>
      %21 = vector.multi_reduction <add>, %20, %cst_17 [0] : vector<8x1792xf32> to vector<1792xf32>
      %22 = vector.shape_cast %21 : vector<1792xf32> to vector<1x1792xf32>
      %cst_18 = arith.constant 3.906250e-03 : f32
      %23 = vector.broadcast %cst_18 : f32 to vector<1x1792xf32>
      %24 = arith.mulf %22, %23 : vector<1x1792xf32>
      %25 = arith.truncf %24 : vector<1x1792xf32> to vector<1x1792xbf16>
      %c0_19 = arith.constant 0 : index
      %c0_20 = arith.constant 0 : index
      %26 = vector.load %arg5[%c0_19, %c0_20] : memref<1792x128xbf16, #tpu.memory_space<vmem>>, vector<1792x128xbf16>
      %cst_21 = arith.constant dense<0.000000e+00> : vector<1x128xf32>
      %27 = tpu.matmul %25, %26, %cst_21 {dimension_numbers = #tpu.dot_dimension_numbers<[1], [0], [0], [1], [0, 0, 1, 1], [], []>} : vector<1x1792xbf16>, vector<1792x128xbf16>, vector<1x128xf32> -> vector<1x128xf32>
      %c0_22 = arith.constant 0 : index
      %c0_23 = arith.constant 0 : index
      %28 = vector.load %arg6[%c0_22, %c0_23] : memref<1x128xf32, #tpu.memory_space<vmem>>, vector<1x128xf32>
      %29 = arith.addf %27, %28 : vector<1x128xf32>
      %30 = arith.mulf %29, %29 : vector<1x128xf32>
      %cst_24 = arith.constant dense<0.000000e+00> : vector<1xf32>
      %31 = vector.multi_reduction <add>, %30, %cst_24 [1] : vector<1x128xf32> to vector<1xf32>
      %32 = vector.shape_cast %31 : vector<1xf32> to vector<1x1xf32>
      %cst_25 = arith.constant 1.000000e-24 : f32
      %33 = vector.broadcast %cst_25 : f32 to vector<1x1xf32>
      %34 = arith.maximumf %32, %33 : vector<1x1xf32>
      %35 = math.rsqrt %34 : vector<1x1xf32>
      %36 = vector.broadcast %35 : vector<1x1xf32> to vector<1x128xf32>
      %37 = arith.mulf %29, %36 : vector<1x128xf32>
      %c0_26 = arith.constant 0 : index
      %c0_27 = arith.constant 0 : index
      %c0_28 = arith.constant 0 : index
      %38 = vector.load %arg7[%c0_26, %c0_27, %c0_28] : memref<1x1x128xf32, #tpu.memory_space<vmem>>, vector<1x1x128xf32>
      %39 = vector.shape_cast %38 : vector<1x1x128xf32> to vector<1x128xf32>
      %40 = vector.shape_cast %37 : vector<1x128xf32> to vector<1x1x128xf32>
      tpu.vector_store %arg7[%c0_26, %c0_27, %c0_28], %40 {strides = array<i32>} : memref<1x1x128xf32, #tpu.memory_space<vmem>>, vector<1x1x128xf32>,
    } else {
    }
    return
  }
  func.func @transform_0(%arg0: i32, %arg1: i32) -> (i32, i32, i32) {
    %c0_i32 = arith.constant 0 : i32
    %c0_i32_0 = arith.constant 0 : i32
    return %arg0, %arg1, %c0_i32 : i32, i32, i32
  }
  func.func @transform_1(%arg0: i32, %arg1: i32) -> (i32, i32) {
    %c0_i32 = arith.constant 0 : i32
    %c0_i32_0 = arith.constant 0 : i32
    %c0_i32_1 = arith.constant 0 : i32
    return %c0_i32, %c0_i32_0 : i32, i32
  }
  func.func @transform_2(%arg0: i32, %arg1: i32) -> (i32, i32) {
    %c0_i32 = arith.constant 0 : i32
    %c0_i32_0 = arith.constant 0 : i32
    %c0_i32_1 = arith.constant 0 : i32
    return %c0_i32, %c0_i32_0 : i32, i32
  }
  func.func @transform_3(%arg0: i32, %arg1: i32) -> (i32, i32) {
    %c0_i32 = arith.constant 0 : i32
    %c0_i32_0 = arith.constant 0 : i32
    %c0_i32_1 = arith.constant 0 : i32
    return %c0_i32, %c0_i32_0 : i32, i32
  }
  func.func @transform_4(%arg0: i32, %arg1: i32) -> (i32, i32) {
    %c0_i32 = arith.constant 0 : i32
    %c0_i32_0 = arith.constant 0 : i32
    %c0_i32_1 = arith.constant 0 : i32
    return %c0_i32, %c0_i32_0 : i32, i32
  }
  func.func @transform_5(%arg0: i32, %arg1: i32) -> (i32, i32, i32) {
    %c0_i32 = arith.constant 0 : i32
    %c0_i32_0 = arith.constant 0 : i32
    %c0_i32_1 = arith.constant 0 : i32
    return %arg0, %c0_i32, %c0_i32_0 : i32, i32, i32
  }
}

</mosaic_0001>

<bundles_post_ra>
// kernel: facenet_forward.1
= control target key start
LH: loop header
LB: loop body
LE: loop exit
PB: predicated region body
PF: predicated region fallthrough
CT: control target
= control target key end

     0   :  { %10 = vsyncpa [#allocation4], 0  ;;  %s7338_s0 = inlined_call_operand.vmem [shape: bf16[2,256,128], index: 0, kind: input, shape index: {}]   ;;  %s7339_s1 = inlined_call_operand.vmem [shape: bf16[128,1792], index: 1, kind: input, shape index: {}]   ;;  %s7340_s2 = inlined_call_operand.vmem [shape: f32[1,1792], index: 2, kind: input, shape index: {}]   ;;  %s7341_s3 = inlined_call_operand.vmem [shape: bf16[1792,128], index: 3, kind: input, shape index: {}]   ;;  %s7342_s4 = inlined_call_operand.vmem [shape: f32[1,128], index: 4, kind: input, shape index: {}]   ;;  %s7343_s5 = inlined_call_operand.hbm [shape: f32[2,1,128], index: 5, kind: output, shape index: {}]  }
   0x1   :  { %12 = vsyncpa [#allocation4 + $0x1], 0  ;;  %s5720_s18 = smov 0   ;;  %s5722_s19 = smov 0  }
   0x2   :  { %s5724_s20 = smov 0   ;;  %s5726_s21 = smov 0  }
   0x3   :  { %s5728_s22 = smov 0   ;;  %s5730_s23 = smov 0  }
   0x4 LB: > { %s4815_s24 = sadd.s32 4294967295, %s5686_s23   ;;  %s4816_s25 = sadd.s32 4294967294, %s5686_s23   ;;  %s5686_s23 = sphi %s5730_s23, %s18_s23   ;;  %s5682_s22 = sphi %s5728_s22, %s7350_s22   ;;  %s5678_s21 = sphi %s5726_s21, %s7349_s21   ;;  %s5674_s20 = sphi %s5724_s20, %s7348_s20   ;;  %s5670_s19 = sphi %s5722_s19, %s7347_s19   ;;  %s5666_s18 = sphi %s5720_s18, %s7346_s18  }
   0x5   : > { %s30_s26 = sadd.s32 1, %s5682_s22  ;;  %s149_s27 = sadd.s32 1, %s5674_s20 }
   0x6   : > { %p32_p0 = scmp.ge.s32.totalorder %s30_s26, 2  ;;  %p159_p1 = scmp.ne.s32.totalorder %s5674_s20, %s5670_s19 }
   0x7   : > { %p160_p2 = scmp.eq.s32.totalorder %s4815_s24, 1  ;;  %p165_p3 = scmp.ne.s32.totalorder %s5670_s19, %s5666_s18 }
   0x8   : > { %s7352_s26 = smov (%p32_p0, %s30_s26), 0  ;;  %p166_p5 = scmp.eq.s32.totalorder %s4816_s25, 1 }
   0x9   : > { %p5760_p4 = por %p160_p2, %p159_p1  ;;  %s146_s29 = ssub.s32 %s5682_s22, %s7352_s26 }
   0xa   : > { %p4819_p6 = scmp.ge.s32.totalorder %s5686_s23, 1  ;;  %p147_p7 = scmp.eq.s32.totalorder %s146_s29, 0 }
   0xb   : > { %p5767_p8 = por %p166_p5, %p165_p3  ;;  %p209_p9 = scmp.lt.s32.totalorder %s5686_s23, 3 }
   0xc   : > { %s5773_s6 = scalar_select %p147_p7, %s5674_s20, %s149_s27  }
   0xd   : > { %p210_p10 = pnand %p4819_p6, %p209_p9 }
   0xe   : > { %v5276_v0 = vld [vmem:[%s7339_s1 + $0x4] ss:$56 sps:$4 sm:$0xff] (!%p210_p10)   ;;  %v5688_v2 = vmov (!%p210_p10), 0   ;;  %v5280_v3 = vld [vmem:[%s7339_s1] ss:$56 sps:$4 sm:$0xff] (!%p210_p10)   ;;  %p241_p11 = scmp.lt.s32.totalorder (!%p210_p10), %s5678_s21, 1 }
   0xf   : > { %213 = sbr.rel (%p210_p10) target bundleno = 1181 (0x49d), region = 40  ;;  %v5278_v1 = vld [vmem:[%s7339_s1 + $0xc] ss:$56 sps:$4 sm:$0xff] (!%p210_p10)   ;;  %1175 = vmatprep.mubr.bf16.mxu0 (!%p210_p10), %v5688_v2  ;;  %1368 = vmatprep.mubr.bf16.mxu1 (!%p210_p10), %v5688_v2  ;;  %v5281_v4 = vld [vmem:[%s7339_s1 + $0x8] ss:$56 sps:$4 sm:$0xff] (!%p210_p10)   ;;  %vm4725_vm0 = vcmask (!%p210_p10), 1040384  }
  0x10   : > { %1143 = vmatprep.subr.bf16.mxu0 (!%p210_p10), %v5276_v0  ;;  %1336 = vmatprep.subr.bf16.mxu1 (!%p210_p10), %v5278_v1  ;;  %v5282_v5 = vld [vmem:[%s7339_s1 + $0x74] ss:$56 sps:$4 sm:$0xff] (!%p210_p10)   ;;  %v5286_v7 = vld [vmem:[%s7339_s1 + $0x70] ss:$56 sps:$4 sm:$0xff] (!%p210_p10)   ;;  %v5288_v9 = vld [vmem:[%s7339_s1 + $0xe4] ss:$56 sps:$4 sm:$0xff] (!%p210_p10)  }
  0x11   : > { %1144 = vmatpush1.bf16.msra.mxu0 (!%p210_p10), %v5280_v3  ;;  %1337 = vmatpush1.bf16.msra.mxu1 (!%p210_p10), %v5281_v4  ;;  %v5284_v6 = vld [vmem:[%s7339_s1 + $0x7c] ss:$56 sps:$4 sm:$0xff] (!%p210_p10)   ;;  %v5287_v8 = vld [vmem:[%s7339_s1 + $0x78] ss:$56 sps:$4 sm:$0xff] (!%p210_p10)   ;;  %v5290_v10 = vld [vmem:[%s7339_s1 + $0xec] ss:$56 sps:$4 sm:$0xff] (!%p210_p10)  }
  0x12   : > { %1145 = vmatprep.subr.bf16.mxu0 (!%p210_p10), %v5282_v5  ;;  %1338 = vmatprep.subr.bf16.mxu1 (!%p210_p10), %v5284_v6  ;;  %v5292_v11 = vld [vmem:[%s7339_s1 + $0xe0] ss:$56 sps:$4 sm:$0xff] (!%p210_p10)   ;;  %v5294_v13 = vld [vmem:[%s7339_s1 + $0x154] ss:$56 sps:$4 sm:$0xff] (!%p210_p10)   ;;  %v5298_v15 = vld [vmem:[%s7339_s1 + $0x150] ss:$56 sps:$4 sm:$0xff] (!%p210_p10)  }
  0x13   : > { %v5293_v12 = vld [vmem:[%s7339_s1 + $0xe8] ss:$56 sps:$4 sm:$0xff] (!%p210_p10)   ;;  %v5296_v14 = vld [vmem:[%s7339_s1 + $0x15c] ss:$56 sps:$4 sm:$0xff] (!%p210_p10)   ;;  %v5299_v16 = vld [vmem:[%s7339_s1 + $0x158] ss:$56 sps:$4 sm:$0xff] (!%p210_p10)  }
  0x14   : > { %v5300_v17 = vld [vmem:[%s7339_s1 + $0x1c4] ss:$56 sps:$4 sm:$0xff] (!%p210_p10)   ;;  %v5304_v19 = vld [vmem:[%s7339_s1 + $0x1c0] ss:$56 sps:$4 sm:$0xff] (!%p210_p10)   ;;  %v5306_v21 = vld [vmem:[%s7339_s1 + $0x234] ss:$56 sps:$4 sm:$0xff] (!%p210_p10)  }
  0x15   : > { %1146 = vmatpush1.bf16.msra.mxu0 (!%p210_p10), %v5286_v7  ;;  %1339 = vmatpush1.bf16.msra.mxu1 (!%p210_p10), %v5287_v8  ;;  %v5302_v18 = vld [vmem:[%s7339_s1 + $0x1cc] ss:$56 sps:$4 sm:$0xff] (!%p210_p10)   ;;  %v5305_v20 = vld [vmem:[%s7339_s1 + $0x1c8] ss:$56 sps:$4 sm:$0xff] (!%p210_p10)   ;;  %v5308_v22 = vld [vmem:[%s7339_s1 + $0x23c] ss:$56 sps:$4 sm:$0xff] (!%p210_p10)  }
  0x16   : > { %1147 = vmatprep.subr.bf16.mxu0 %v5288_v9  ;;  %1340 = vmatprep.subr.bf16.mxu1 %v5290_v10  ;;  %s242_s13 = scalar_select %p241_p11, %s5678_s21, 1  ;;  %v5310_v23 = vld [vmem:[%s7339_s1 + $0x230] ss:$56 sps:$4 sm:$0xff]   ;;  %v5312_v25 = vld [vmem:[%s7339_s1 + $0x2a4] ss:$56 sps:$4 sm:$0xff]  }
  0x17   : > { %v5311_v24 = vld [vmem:[%s7339_s1 + $0x238] ss:$56 sps:$4 sm:$0xff]   ;;  %v5314_v26 = vld [vmem:[%s7339_s1 + $0x2ac] ss:$56 sps:$4 sm:$0xff]   ;;  %v5317_v28 = vld [vmem:[%s7339_s1 + $0x2a8] ss:$56 sps:$4 sm:$0xff]  }
  0x18   : > { %s5065_s7 = sshll.u32 %s242_s13, 7  ;;  %v5316_v27 = vld [vmem:[%s7339_s1 + $0x2a0] ss:$56 sps:$4 sm:$0xff]   ;;  %v5318_v29 = vld [vmem:[%s7339_s1 + $0x314] ss:$56 sps:$4 sm:$0xff]   ;;  %s238_s14 = sand.u32 1, %s5670_s19  }
  0x19   : > { %1148 = vmatpush1.bf16.msra.mxu0 %v5292_v11  ;;  %1341 = vmatpush1.bf16.msra.mxu1 %v5293_v12  ;;  %s5857_s17 = scalar_lea.vmem %s7338_s0, %s5065_s7  ;;  %v5320_v30 = vld [vmem:[%s7339_s1 + $0x31c] ss:$56 sps:$4 sm:$0xff]   ;;  %v5322_v31 = vld [vmem:[%s7339_s1 + $0x310] ss:$56 sps:$4 sm:$0xff]   ;;  %v5330_v37 = vld [vmem:[%s7339_s1 + $0x80] ss:$56 sps:$4 sm:$0xff]  }
  0x1a   : > { %1149 = vmatprep.subr.bf16.mxu0 %v5294_v13  ;;  %1342 = vmatprep.subr.bf16.mxu1 %v5296_v14  ;;  %v5323_v32 = vld [vmem:[%s7339_s1 + $0x318] ss:$56 sps:$4 sm:$0xff]   ;;  %v5327_v33 = vld [vmem:[%s7339_s1 + $0x14] ss:$56 sps:$4 sm:$0xff]   ;;  %v5884_v34 = vld [vmem:[%s5857_s17] sm:$0xff]   ;;  %s5062_s15 = sshll.u32 %s5678_s21, 4 }
  0x1b   : > { %v5325_v35 = vld [vmem:[%s7339_s1 + $0x10] ss:$56 sps:$4 sm:$0xff]   ;;  %v5332_v36 = vld [vmem:[%s7339_s1 + $0x84] ss:$56 sps:$4 sm:$0xff]   ;;  %v5337_v38 = vld [vmem:[%s7339_s1 + $0xf4] ss:$56 sps:$4 sm:$0xff]   ;;  %s7291_s25 = scalar_lea.hbm %s7343_s5, %s5062_s15 }
  0x1c   : > { %v5903_v39 = vld [vmem:[%s5857_s17 + $0x8] sm:$0xff]   ;;  %v5342_v41 = vld [vmem:[%s7339_s1 + $0x164] ss:$56 sps:$4 sm:$0xff]   ;;  %v5340_v42 = vld [vmem:[%s7339_s1 + $0x160] ss:$56 sps:$4 sm:$0xff]   ;;  %s239_s16 = scalar_lea.vmem [#allocation3], %s238_s14 }
  0x1d   : > { %1150 = vmatpush1.bf16.msra.mxu0 %v5298_v15  ;;  %1343 = vmatpush1.bf16.msra.mxu1 %v5299_v16  ;;  %v5335_v40 = vld [vmem:[%s7339_s1 + $0xf0] ss:$56 sps:$4 sm:$0xff]   ;;  %v5360_v44 = vld [vmem:[%s7339_s1 + $0x1c] ss:$56 sps:$4 sm:$0xff]   ;;  %v5363_v46 = vld [vmem:[%s7339_s1 + $0x8c] ss:$56 sps:$4 sm:$0xff]  }
  0x1e   : > { %1151 = vmatprep.subr.bf16.mxu0 %v5300_v17  ;;  %1344 = vmatprep.subr.bf16.mxu1 %v5302_v18  ;;  %v5358_v43 = vld [vmem:[%s7339_s1 + $0x18] ss:$56 sps:$4 sm:$0xff]   ;;  %v5347_v45 = vld [vmem:[%s7339_s1 + $0x1d4] ss:$56 sps:$4 sm:$0xff]   ;;  %v5352_v49 = vld [vmem:[%s7339_s1 + $0x244] ss:$56 sps:$4 sm:$0xff]  }
  0x1f   : > { %v5931_v47 = vld [vmem:[%s5857_s17 + $0x10] sm:$0xff]   ;;  %v5361_v50 = vld [vmem:[%s7339_s1 + $0x88] ss:$56 sps:$4 sm:$0xff]   ;;  %v5370_v55 = vld [vmem:[%s7339_s1 + $0x16c] ss:$56 sps:$4 sm:$0xff]   ;;  %s4734_s27 = scalar_lea.sflag [#allocation4], %s238_s14 }
  0x20   : > { %v5345_v48 = vld [vmem:[%s7339_s1 + $0x1d0] ss:$56 sps:$4 sm:$0xff]   ;;  %v5367_v51 = vld [vmem:[%s7339_s1 + $0xfc] ss:$56 sps:$4 sm:$0xff]   ;;  %v5350_v52 = vld [vmem:[%s7339_s1 + $0x240] ss:$56 sps:$4 sm:$0xff]  }
  0x21   : > { %1152 = vmatpush1.bf16.msra.mxu0 %v5304_v19  ;;  %1345 = vmatpush1.bf16.msra.mxu1 %v5305_v20  ;;  %v5365_v53 = vld [vmem:[%s7339_s1 + $0xf8] ss:$56 sps:$4 sm:$0xff]   ;;  %v5357_v54 = vld [vmem:[%s7339_s1 + $0x2b4] ss:$56 sps:$4 sm:$0xff]   ;;  %v5368_v58 = vld [vmem:[%s7339_s1 + $0x168] ss:$56 sps:$4 sm:$0xff]  }
  0x22   : > { %1153 = vmatprep.subr.bf16.mxu0 %v5306_v21  ;;  %1346 = vmatprep.subr.bf16.mxu1 %v5308_v22  ;;  %v5962_v56 = vld [vmem:[%s5857_s17 + $0x18] sm:$0xff]   ;;  %v5355_v57 = vld [vmem:[%s7339_s1 + $0x2b0] ss:$56 sps:$4 sm:$0xff]   ;;  %v5380_v63 = vld [vmem:[%s7339_s1 + $0x24c] ss:$56 sps:$4 sm:$0xff]   ;;  %s5689_s21 = smov [#allocation3]  }
  0x23   : > { %v5374_v59 = vld [vmem:[%s7339_s1 + $0x324] ss:$56 sps:$4 sm:$0xff]   ;;  %v5372_v61 = vld [vmem:[%s7339_s1 + $0x320] ss:$56 sps:$4 sm:$0xff]   ;;  %v6012_v7 = vld [vmem:[%s5857_s17 + $0x28] sm:$0xff]   ;;  %s5612_s8 = sshll.u32 %s5689_s21, 4  ;;  %s5613_s8 = int_to_ptr.vmem [resolvable:$false] %s5612_s8 }
  0x24   : > { %v5377_v60 = vld [vmem:[%s7339_s1 + $0x1dc] ss:$56 sps:$4 sm:$0xff]   ;;  %v5375_v62 = vld [vmem:[%s7339_s1 + $0x1d8] ss:$56 sps:$4 sm:$0xff]   ;;  %v5990_v0 = vld [vmem:[%s5857_s17 + $0x20] sm:$0xff]   ;;  %s5614_s9 = scalar_lea.vmem %s5613_s8, 32 }
  0x25   : > { %1154 = vmatpush1.bf16.msra.mxu0 %v5310_v23  ;;  %1347 = vmatpush1.bf16.msra.mxu1 %v5311_v24  ;;  %v5390_v1 = vld [vmem:[%s7339_s1 + $0x24] ss:$56 sps:$4 sm:$0xff]   ;;  %v5378_v3 = vld [vmem:[%s7339_s1 + $0x248] ss:$56 sps:$4 sm:$0xff]   ;;  %v5382_v5 = vld [vmem:[%s7339_s1 + $0x2b8] ss:$56 sps:$4 sm:$0xff]  }
  0x26   : > { %1155 = vmatprep.subr.bf16.mxu0 %v5312_v25  ;;  %1348 = vmatprep.subr.bf16.mxu1 %v5314_v26  ;;  %v5384_v4 = vld [vmem:[%s7339_s1 + $0x2bc] ss:$56 sps:$4 sm:$0xff]   ;;  %v5387_v6 = vld [vmem:[%s7339_s1 + $0x32c] ss:$56 sps:$4 sm:$0xff]   ;;  %v5385_v8 = vld [vmem:[%s7339_s1 + $0x328] ss:$56 sps:$4 sm:$0xff]  }
  0x27   : > { %v6022_v9 = vld [vmem:[%s5857_s17 + $0x30] sm:$0xff]   ;;  %v6029_v10 = vld [vmem:[%s5857_s17 + $0x38] sm:$0xff]   ;;  %v6036_v11 = vld [vmem:[%s5857_s17 + $0x40] sm:$0xff]  }
  0x28   : > { %v6043_v12 = vld [vmem:[%s5857_s17 + $0x48] sm:$0xff]   ;;  %v6050_v13 = vld [vmem:[%s5857_s17 + $0x50] sm:$0xff]   ;;  %v6057_v14 = vld [vmem:[%s5857_s17 + $0x58] sm:$0xff]  }
  0x29   : > { %1156 = vmatpush1.bf16.msra.mxu0 %v5316_v27  ;;  %1349 = vmatpush1.bf16.msra.mxu1 %v5317_v28  ;;  %v6064_v15 = vld [vmem:[%s5857_s17 + $0x60] sm:$0xff]   ;;  %v6074_v17 = vld [vmem:[%s5857_s17 + $0x68] sm:$0xff]   ;;  %v6081_v18 = vld [vmem:[%s5857_s17 + $0x70] sm:$0xff]  }
  0x2a   : > { %1157 = vmatprep.subr.bf16.mxu0 %v5318_v29  ;;  %1350 = vmatprep.subr.bf16.mxu1 %v5320_v30  ;;  %v5411_v16 = vld [vmem:[%s7339_s1 + $0x2c] ss:$56 sps:$4 sm:$0xff]   ;;  %v6088_v19 = vld [vmem:[%s5857_s17 + $0x78] sm:$0xff]   ;;  %v5409_v22 = vld [vmem:[%s7339_s1 + $0x28] ss:$56 sps:$4 sm:$0xff]  }
  0x2b   : > { %v5388_v20 = vld [vmem:[%s7339_s1 + $0x20] ss:$56 sps:$4 sm:$0xff]   ;;  %v5393_v21 = vld [vmem:[%s7339_s1 + $0x94] ss:$56 sps:$4 sm:$0xff]   ;;  %v5391_v24 = vld [vmem:[%s7339_s1 + $0x90] ss:$56 sps:$4 sm:$0xff]  }
  0x2c   : > { %v5414_v23 = vld [vmem:[%s7339_s1 + $0x9c] ss:$56 sps:$4 sm:$0xff]   ;;  %v5412_v26 = vld [vmem:[%s7339_s1 + $0x98] ss:$56 sps:$4 sm:$0xff]   ;;  %v5417_v28 = vld [vmem:[%s7339_s1 + $0x10c] ss:$56 sps:$4 sm:$0xff]  }
  0x2d   : > { %1158 = vmatpush1.bf16.msra.mxu0 %v5322_v31  ;;  %1351 = vmatpush1.bf16.msra.mxu1 %v5323_v32  ;;  %v5396_v25 = vld [vmem:[%s7339_s1 + $0x104] ss:$56 sps:$4 sm:$0xff]   ;;  %v5394_v27 = vld [vmem:[%s7339_s1 + $0x100] ss:$56 sps:$4 sm:$0xff]   ;;  %v5399_v29 = vld [vmem:[%s7339_s1 + $0x174] ss:$56 sps:$4 sm:$0xff]  }
  0x2e   : > { %1529 = vmatprep.subr.bf16.mxu0 %v5327_v33  ;;  %1722 = vmatprep.subr.bf16.mxu1 %v5360_v44  ;;  %v5415_v30 = vld [vmem:[%s7339_s1 + $0x108] ss:$56 sps:$4 sm:$0xff]   ;;  %v5420_v31 = vld [vmem:[%s7339_s1 + $0x17c] ss:$56 sps:$4 sm:$0xff]   ;;  %v5432_v44 = vld [vmem:[%s7339_s1 + $0x2cc] ss:$56 sps:$4 sm:$0xff]  }
  0x2f   : > { %v5397_v32 = vld [vmem:[%s7339_s1 + $0x170] ss:$56 sps:$4 sm:$0xff]   ;;  %v5402_v33 = vld [vmem:[%s7339_s1 + $0x1e4] ss:$56 sps:$4 sm:$0xff]  }
  0x30   : > { %1176 = vmatmul.mubr.bf16.vlgmr.msra.gmra.mrb[0].mxu0 %v5884_v34  ;;  %1369 = vmatmul.mubr.bf16.vlgmr.msra.gmra.mrb[0].mxu1 %v5884_v34 }
  0x31   : > { %1530 = vmatpush1.bf16.msra.mxu0 %v5325_v35  ;;  %1185 = vmatprep.mubr.bf16.mxu0 %v5688_v2  ;;  %v5400_v35 = vld [vmem:[%s7339_s1 + $0x1e0] ss:$56 sps:$4 sm:$0xff]  }
  0x32   : > { %1378 = vmatprep.mubr.bf16.mxu1 %v5688_v2  ;;  %1531 = vmatprep.subr.bf16.mxu0 %v5332_v36  ;;  %v5426_v36 = vld [vmem:[%s7339_s1 + $0x1ec] ss:$56 sps:$4 sm:$0xff]  }
  0x33   : > { %1723 = vmatpush1.bf16.msra.mxu1 %v5358_v43  ;;  %v5406_v43 = vld [vmem:[%s7339_s1 + $0x2c0] ss:$56 sps:$4 sm:$0xff]  }
  0x34   : > { %1724 = vmatprep.subr.bf16.mxu1 %v5363_v46  ;;  %v5430_v46 = vld [vmem:[%s7339_s1 + $0x2c8] ss:$56 sps:$4 sm:$0xff]  }
  0x35   : > { %1532 = vmatpush1.bf16.msra.mxu0 %v5330_v37  ;;  %v5405_v37 = vld [vmem:[%s7339_s1 + $0x254] ss:$56 sps:$4 sm:$0xff]  }
  0x36   : > { %1533 = vmatprep.subr.bf16.mxu0 %v5337_v38  ;;  %v5424_v38 = vld [vmem:[%s7339_s1 + $0x1e8] ss:$56 sps:$4 sm:$0xff]  }
  0x37   : > { %1725 = vmatpush1.bf16.msra.mxu1 %v5361_v50  ;;  %v5438_v50 = vld [vmem:[%s7339_s1 + $0x34] ss:$56 sps:$4 sm:$0xff]  }
  0x38   : > { %1186 = vmatmul.mubr.bf16.gmra.mrb[4].mxu0 %v5903_v39  ;;  %1379 = vmatmul.mubr.bf16.gmra.mrb[4].mxu1 %v5903_v39 }
  0x39   : > { %1195 = vmatprep.mubr.bf16.mxu0 %v5688_v2  ;;  %1388 = vmatprep.mubr.bf16.mxu1 %v5688_v2 }
  0x3a   : > { %1534 = vmatpush1.bf16.msra.mxu0 %v5335_v40  ;;  %1726 = vmatprep.subr.bf16.mxu1 %v5367_v51  ;;  %v5403_v40 = vld [vmem:[%s7339_s1 + $0x250] ss:$56 sps:$4 sm:$0xff]   ;;  %v417_v51 = vlaneseq }
  0x3b   : > { %1535 = vmatprep.subr.bf16.mxu0 %v5342_v41  ;;  %1727 = vmatpush1.bf16.msra.mxu1 %v5365_v53  ;;  %v5408_v41 = vld [vmem:[%s7339_s1 + $0x2c4] ss:$56 sps:$4 sm:$0xff]  }
  0x3c   : > { %1728 = vmatprep.subr.bf16.mxu1 %v5370_v55  ;;  %v413_v55 = vld [vmem:[%s7340_s2] sm:$0xff] }
  0x3e   : > { %1536 = vmatpush1.bf16.msra.mxu0 %v5340_v42  ;;  %v5427_v42 = vld [vmem:[%s7339_s1 + $0x258] ss:$56 sps:$4 sm:$0xff]  }
  0x3f   : > { %1537 = vmatprep.subr.bf16.mxu0 %v5347_v45  ;;  %1729 = vmatpush1.bf16.msra.mxu1 %v5368_v58  ;;  %v5423_v45 = vld [vmem:[%s7339_s1 + $0x334] ss:$56 sps:$4 sm:$0xff]  }
  0x40   : > { %1196 = vmatmul.mubr.bf16.gmra.mrb[8].mxu0 %v5931_v47  ;;  %1389 = vmatmul.mubr.bf16.gmra.mrb[8].mxu1 %v5931_v47 }
  0x41   : > { %1205 = vmatprep.mubr.bf16.mxu0 %v5688_v2  ;;  %1398 = vmatprep.mubr.bf16.mxu1 %v5688_v2 }
  0x42   : > { %1538 = vmatpush1.bf16.msra.mxu0 %v5345_v48  ;;  %1730 = vmatprep.subr.bf16.mxu1 %v5377_v60  ;;  %v5421_v48 = vld [vmem:[%s7339_s1 + $0x330] ss:$56 sps:$4 sm:$0xff]  }
  0x43   : > { %1539 = vmatprep.subr.bf16.mxu0 %v5352_v49  ;;  %1731 = vmatpush1.bf16.msra.mxu1 %v5375_v62  ;;  %v5433_v49 = vld [vmem:[%s7339_s1 + $0x338] ss:$56 sps:$4 sm:$0xff]  }
  0x44   : > { %1732 = vmatprep.subr.bf16.mxu1 %v5380_v63 }
  0x46   : > { %1540 = vmatpush1.bf16.msra.mxu0 %v5350_v52  ;;  %v6225_v52 = vshrl.u32 %v417_v51, 7 }
  0x47   : > { %1541 = vmatprep.subr.bf16.mxu0 %v5357_v54  ;;  %1733 = vmatpush1.bf16.msra.mxu1 %v5378_v3 }
  0x48   : > { %1206 = vmatmul.mubr.bf16.gmra.mrb[12].mxu0 %v5962_v56  ;;  %1399 = vmatmul.mubr.bf16.gmra.mrb[12].mxu1 %v5962_v56  ;;  %v419_v53 = vsub.s32 0, %v6225_v52  ;;  %v427_v54 = vsub.s32 2, %v6225_v52 }
  0x49   : > { %1215 = vmatprep.mubr.bf16.mxu0 %v5688_v2  ;;  %1408 = vmatprep.mubr.bf16.mxu1 %v5688_v2 }
  0x4a   : > { %1542 = vmatpush1.bf16.msra.mxu0 %v5355_v57  ;;  %1734 = vmatprep.subr.bf16.mxu1 %v5384_v4  ;;  %v431_v57 = vsub.s32 3, %v6225_v52  ;;  %v6240_v58 = vrot.slane %v413_v55, %v419_v53 }
  0x4b   : > { %1543 = vmatprep.subr.bf16.mxu0 %v5374_v59  ;;  %1735 = vmatpush1.bf16.msra.mxu1 %v5382_v5  ;;  %v6244_v59 = vrot.slane %v413_v55, %v427_v54 }
  0x4c   : > { %1736 = vmatprep.subr.bf16.mxu1 %v5387_v6 }
  0x4e   : > { %1544 = vmatpush1.bf16.msra.mxu0 %v5372_v61  ;;  %v6254_v61 = vrot.slane %v413_v55, %v431_v57 }
  0x4f   : > { %1915 = vmatprep.subr.bf16.mxu0 %v5390_v1  ;;  %1737 = vmatpush1.bf16.msra.mxu1 %v5385_v8 }
  0x50   : > { %1216 = vmatmul.mubr.bf16.gmra.mrb[16].mxu0 %v5990_v0  ;;  %1409 = vmatmul.mubr.bf16.gmra.mrb[16].mxu1 %v5990_v0 }
  0x51   : > { %1225 = vmatprep.mubr.bf16.mxu0 %v5688_v2  ;;  %1418 = vmatprep.mubr.bf16.mxu1 %v5688_v2 }
  0x52   : > { %2108 = vmatprep.subr.bf16.mxu1 %v5411_v16 }
  0x58   : > { %1226 = vmatmul.mubr.bf16.gmra.mrb[20].mxu0 %v6012_v7  ;;  %1419 = vmatmul.mubr.bf16.gmra.mrb[20].mxu1 %v6012_v7 }
  0x59   : > { %1235 = vmatprep.mubr.bf16.mxu0 %v5688_v2  ;;  %1428 = vmatprep.mubr.bf16.mxu1 %v5688_v2 }
  0x60   : > { %1236 = vmatmul.mubr.bf16.gmra.mrb[24].mxu0 %v6022_v9  ;;  %1429 = vmatmul.mubr.bf16.gmra.mrb[24].mxu1 %v6022_v9 }
  0x61   : > { %1245 = vmatprep.mubr.bf16.mxu0 %v5688_v2  ;;  %1438 = vmatprep.mubr.bf16.mxu1 %v5688_v2 }
  0x68   : > { %1246 = vmatmul.mubr.bf16.gmra.mrb[28].mxu0 %v6029_v10  ;;  %1439 = vmatmul.mubr.bf16.gmra.mrb[28].mxu1 %v6029_v10 }
  0x69   : > { %1255 = vmatprep.mubr.bf16.mxu0 %v5688_v2  ;;  %1448 = vmatprep.mubr.bf16.mxu1 %v5688_v2 }
  0x70   : > { %1256 = vmatmul.mubr.bf16.gmra.mrb[32].mxu0 %v6036_v11  ;;  %1449 = vmatmul.mubr.bf16.gmra.mrb[32].mxu1 %v6036_v11 }
  0x71   : > { %1265 = vmatprep.mubr.bf16.mxu0 %v5688_v2  ;;  %1458 = vmatprep.mubr.bf16.mxu1 %v5688_v2 }
  0x78   : > { %1266 = vmatmul.mubr.bf16.gmra.mrb[36].mxu0 %v6043_v12  ;;  %1459 = vmatmul.mubr.bf16.gmra.mrb[36].mxu1 %v6043_v12 }
  0x79   : > { %1275 = vmatprep.mubr.bf16.mxu0 %v5688_v2  ;;  %1468 = vmatprep.mubr.bf16.mxu1 %v5688_v2 }
  0x80   : > { %1276 = vmatmul.mubr.bf16.gmra.mrb[40].mxu0 %v6050_v13  ;;  %1469 = vmatmul.mubr.bf16.gmra.mrb[40].mxu1 %v6050_v13 }
  0x81   : > { %1285 = vmatprep.mubr.bf16.mxu0 %v5688_v2  ;;  %1478 = vmatprep.mubr.bf16.mxu1 %v5688_v2 }
  0x88   : > { %1286 = vmatmul.mubr.bf16.gmra.mrb[44].mxu0 %v6057_v14  ;;  %1479 = vmatmul.mubr.bf16.gmra.mrb[44].mxu1 %v6057_v14 }
  0x89   : > { %1295 = vmatprep.mubr.bf16.mxu0 %v5688_v2  ;;  %1488 = vmatprep.mubr.bf16.mxu1 %v5688_v2 }
  0x90   : > { %1296 = vmatmul.mubr.bf16.gmra.mrb[48].mxu0 %v6064_v15  ;;  %1489 = vmatmul.mubr.bf16.gmra.mrb[48].mxu1 %v6064_v15 }
  0x91   : > { %1305 = vmatprep.mubr.bf16.mxu0 %v5688_v2  ;;  %1498 = vmatprep.mubr.bf16.mxu1 %v5688_v2 }
  0x98   : > { %1306 = vmatmul.mubr.bf16.gmra.mrb[52].mxu0 %v6074_v17  ;;  %1499 = vmatmul.mubr.bf16.gmra.mrb[52].mxu1 %v6074_v17 }
  0x99   : > { %1315 = vmatprep.mubr.bf16.mxu0 %v5688_v2  ;;  %1508 = vmatprep.mubr.bf16.mxu1 %v5688_v2 }
  0xa0   : > { %1316 = vmatmul.mubr.bf16.gmra.mrb[56].mxu0 %v6081_v18  ;;  %1509 = vmatmul.mubr.bf16.gmra.mrb[56].mxu1 %v6081_v18 }
  0xa1   : > { %1325 = vmatprep.mubr.bf16.mxu0 %v5688_v2  ;;  %1518 = vmatprep.mubr.bf16.mxu1 %v5688_v2 }
  0xa8   : > { %1326 = vmatmul.mubr.bf16.gmra.mrb[60].mxu0 %v6088_v19  ;;  %1519 = vmatmul.mubr.bf16.gmra.mrb[60].mxu1 %v6088_v19 }
  0xa9   : > { %1561 = vmatprep.mubr.bf16.mxu0 %v5688_v2  ;;  %1754 = vmatprep.mubr.bf16.mxu1 %v5688_v2 }
  0xb0   : > { %1562 = vmatmul.mubr.bf16.vlgmr.msra.gmra.mrb[64].mxu0 %v5884_v34  ;;  %1755 = vmatmul.mubr.bf16.vlgmr.msra.gmra.mrb[64].mxu1 %v5884_v34  ;;  %v5418_v34 = vld [vmem:[%s7339_s1 + $0x178] ss:$56 sps:$4 sm:$0xff]  }
  0xb1   : > { %1916 = vmatpush1.bf16.msra.mxu0 %v5388_v20  ;;  %1571 = vmatprep.mubr.bf16.mxu0 %v5688_v2 }
  0xb2   : > { %1764 = vmatprep.mubr.bf16.mxu1 %v5688_v2  ;;  %1917 = vmatprep.subr.bf16.mxu0 %v5393_v21 }
  0xb3   : > { %2109 = vmatpush1.bf16.msra.mxu1 %v5409_v22 }
  0xb4   : > { %2110 = vmatprep.subr.bf16.mxu1 %v5414_v23 }
  0xb5   : > { %1918 = vmatpush1.bf16.msra.mxu0 %v5391_v24 }
  0xb6   : > { %1919 = vmatprep.subr.bf16.mxu0 %v5396_v25 }
  0xb7   : > { %2111 = vmatpush1.bf16.msra.mxu1 %v5412_v26 }
  0xb8   : > { %1572 = vmatmul.mubr.bf16.gmra.mrb[68].mxu0 %v5903_v39  ;;  %1765 = vmatmul.mubr.bf16.gmra.mrb[68].mxu1 %v5903_v39  ;;  %v5429_v39 = vld [vmem:[%s7339_s1 + $0x25c] ss:$56 sps:$4 sm:$0xff]  }
  0xb9   : > { %1581 = vmatprep.mubr.bf16.mxu0 %v5688_v2  ;;  %1774 = vmatprep.mubr.bf16.mxu1 %v5688_v2 }
  0xba   : > { %1920 = vmatpush1.bf16.msra.mxu0 %v5394_v27  ;;  %2112 = vmatprep.subr.bf16.mxu1 %v5417_v28 }
  0xbb   : > { %1921 = vmatprep.subr.bf16.mxu0 %v5399_v29  ;;  %2113 = vmatpush1.bf16.msra.mxu1 %v5415_v30 }
  0xbc   : > { %2114 = vmatprep.subr.bf16.mxu1 %v5420_v31 }
  0xbe   : > { %1922 = vmatpush1.bf16.msra.mxu0 %v5397_v32 }
  0xbf   : > { %1923 = vmatprep.subr.bf16.mxu0 %v5402_v33  ;;  %2115 = vmatpush1.bf16.msra.mxu1 %v5418_v34 }
  0xc0   : > { %1582 = vmatmul.mubr.bf16.gmra.mrb[72].mxu0 %v5931_v47  ;;  %1775 = vmatmul.mubr.bf16.gmra.mrb[72].mxu1 %v5931_v47  ;;  %v5435_v47 = vld [vmem:[%s7339_s1 + $0x33c] ss:$56 sps:$4 sm:$0xff]  }
  0xc1   : > { %1591 = vmatprep.mubr.bf16.mxu0 %v5688_v2  ;;  %1784 = vmatprep.mubr.bf16.mxu1 %v5688_v2 }
  0xc2   : > { %1924 = vmatpush1.bf16.msra.mxu0 %v5400_v35  ;;  %2116 = vmatprep.subr.bf16.mxu1 %v5426_v36 }
  0xc3   : > { %1925 = vmatprep.subr.bf16.mxu0 %v5405_v37  ;;  %2117 = vmatpush1.bf16.msra.mxu1 %v5424_v38 }
  0xc4   : > { %2118 = vmatprep.subr.bf16.mxu1 %v5429_v39 }
  0xc6   : > { %1926 = vmatpush1.bf16.msra.mxu0 %v5403_v40 }
  0xc7   : > { %1927 = vmatprep.subr.bf16.mxu0 %v5408_v41  ;;  %2119 = vmatpush1.bf16.msra.mxu1 %v5427_v42  ;;  %v5454_v41 = vld [vmem:[%s7341_s3 + $0x40] sm:$0xff]  }
  0xc8   : > { %1592 = vmatmul.mubr.bf16.gmra.mrb[76].mxu0 %v5962_v56  ;;  %1785 = vmatmul.mubr.bf16.gmra.mrb[76].mxu1 %v5962_v56  ;;  %v423_v56 = vsub.s32 1, %v6225_v52 }
  0xc9   : > { %1601 = vmatprep.mubr.bf16.mxu0 %v5688_v2  ;;  %1794 = vmatprep.mubr.bf16.mxu1 %v5688_v2 }
  0xca   : > { %1928 = vmatpush1.bf16.msra.mxu0 %v5406_v43  ;;  %2120 = vmatprep.subr.bf16.mxu1 %v5432_v44  ;;  %v6248_v60 = vrot.slane %v413_v55, %v423_v56 }
  0xcb   : > { %1929 = vmatprep.subr.bf16.mxu0 %v5423_v45  ;;  %2121 = vmatpush1.bf16.msra.mxu1 %v5430_v46 }
  0xcc   : > { %2122 = vmatprep.subr.bf16.mxu1 %v5435_v47 }
  0xce   : > { %1930 = vmatpush1.bf16.msra.mxu0 %v5421_v48 }
  0xcf   : > { %2123 = vmatpush1.bf16.msra.mxu1 %v5433_v49  ;;  %2301 = vmatprep.subr.bf16.mxu0 %v5438_v50 }
  0xd0   : > { %1602 = vmatmul.mubr.bf16.gmra.mrb[80].mxu0 %v5990_v0  ;;  %1795 = vmatmul.mubr.bf16.gmra.mrb[80].mxu1 %v5990_v0 }
  0xd1   : > { %1611 = vmatprep.mubr.bf16.mxu0 %v5688_v2  ;;  %1804 = vmatprep.mubr.bf16.mxu1 %v5688_v2 }
  0xd2   : > { %5066 = vmatprep.subr.bf16.mxu1 %v5454_v41 }
  0xd8   : > { %1612 = vmatmul.mubr.bf16.gmra.mrb[84].mxu0 %v6012_v7  ;;  %1805 = vmatmul.mubr.bf16.gmra.mrb[84].mxu1 %v6012_v7 }
  0xd9   : > { %1621 = vmatprep.mubr.bf16.mxu0 %v5688_v2  ;;  %1814 = vmatprep.mubr.bf16.mxu1 %v5688_v2 }
  0xe0   : > { %1622 = vmatmul.mubr.bf16.gmra.mrb[88].mxu0 %v6022_v9  ;;  %1815 = vmatmul.mubr.bf16.gmra.mrb[88].mxu1 %v6022_v9 }
  0xe1   : > { %1631 = vmatprep.mubr.bf16.mxu0 %v5688_v2  ;;  %1824 = vmatprep.mubr.bf16.mxu1 %v5688_v2 }
  0xe8   : > { %1632 = vmatmul.mubr.bf16.gmra.mrb[92].mxu0 %v6029_v10  ;;  %1825 = vmatmul.mubr.bf16.gmra.mrb[92].mxu1 %v6029_v10 }
  0xe9   : > { %1641 = vmatprep.mubr.bf16.mxu0 %v5688_v2  ;;  %1834 = vmatprep.mubr.bf16.mxu1 %v5688_v2 }
  0xf0   : > { %1642 = vmatmul.mubr.bf16.gmra.mrb[96].mxu0 %v6036_v11  ;;  %1835 = vmatmul.mubr.bf16.gmra.mrb[96].mxu1 %v6036_v11 }
  0xf1   : > { %1651 = vmatprep.mubr.bf16.mxu0 %v5688_v2  ;;  %1844 = vmatprep.mubr.bf16.mxu1 %v5688_v2 }
  0xf8   : > { %1652 = vmatmul.mubr.bf16.gmra.mrb[100].mxu0 %v6043_v12  ;;  %1845 = vmatmul.mubr.bf16.gmra.mrb[100].mxu1 %v6043_v12 }
  0xf9   : > { %1661 = vmatprep.mubr.bf16.mxu0 %v5688_v2  ;;  %1854 = vmatprep.mubr.bf16.mxu1 %v5688_v2 }
 0x100   : > { %1662 = vmatmul.mubr.bf16.gmra.mrb[104].mxu0 %v6050_v13  ;;  %1855 = vmatmul.mubr.bf16.gmra.mrb[104].mxu1 %v6050_v13 }
 0x101   : > { %1671 = vmatprep.mubr.bf16.mxu0 %v5688_v2  ;;  %1864 = vmatprep.mubr.bf16.mxu1 %v5688_v2 }
 0x103   : > { %v1177_v62 = vpop.f32.mrb[0].mxu0  ;;  %v1370_v63 = vpop.f32.mrb[0].mxu1 }
 0x104   : > { %v1178_v0 = vadd.f32 %v1177_v62, %v6240_v58  ;;  %v1179_v1 = vpop.f32.mrb[1].mxu0  ;;  %v1371_v3 = vadd.f32 %v1370_v63, %v6244_v59  ;;  %v1372_v4 = vpop.f32.mrb[1].mxu1 }
 0x105   : > { %v1180_v5 = vadd.f32 %v1179_v1, %v6248_v60  ;;  %v1181_v6 = vpop.f32.mrb[2].mxu0  ;;  %v1373_v7 = vadd.f32 %v1372_v4, %v6254_v61  ;;  %v1374_v8 = vpop.f32.mrb[2].mxu1 }
 0x106   : > { %v1182_v9 = vadd.f32 %v1181_v6, %v6240_v58  ;;  %v1183_v10 = vpop.f32.mrb[3].mxu0  ;;  %v2496_v11 = vmax.f32 %v1371_v3, 0.0  ;;  %v1375_v12 = vadd.f32 %v1374_v8, %v6244_v59  ;;  %v1376_v13 = vpop.f32.mrb[3].mxu1  ;;  %v2494_v22 = vmax.f32 %v1178_v0, 0.0 }
 0x107   : > { %v1184_v16 = vadd.f32 %v1183_v10, %v6248_v60  ;;  %v2497_v20 = vmax.f32 %v1373_v7, 0.0  ;;  %v1377_v21 = vadd.f32 %v1376_v13, %v6254_v61  ;;  %v2495_v25 = vmax.f32 %v1180_v5, 0.0 }
 0x108   : > { %v2508_v23 = vmax.f32 %v1182_v9, 0.0  ;;  %1672 = vmatmul.mubr.bf16.gmra.mrb[108].mxu0 %v6057_v14  ;;  %1865 = vmatmul.mubr.bf16.gmra.mrb[108].mxu1 %v6057_v14  ;;  %v2510_v24 = vmax.f32 %v1375_v12, 0.0 }
 0x109   : > { %v2509_v26 = vmax.f32 %v1184_v16, 0.0  ;;  %1681 = vmatprep.mubr.bf16.mxu0 %v5688_v2  ;;  %1874 = vmatprep.mubr.bf16.mxu1 %v5688_v2  ;;  %v2511_v27 = vmax.f32 %v1377_v21, 0.0 }
 0x10a   : > { %v2956_v28 = vadd.f32 %v2508_v23, %v2494_v22  ;;  %v3018_v29 = vadd.f32 %v2510_v24, %v2496_v11 }
 0x10b   : > { %v2987_v30 = vadd.f32 %v2509_v26, %v2495_v25  ;;  %v1187_v31 = vpop.f32.mrb[4].mxu0  ;;  %v3049_v32 = vadd.f32 %v2511_v27, %v2497_v20  ;;  %v1380_v33 = vpop.f32.mrb[4].mxu1 }
 0x10c   : > { %v1188_v34 = vadd.f32 %v1187_v31, %v6240_v58  ;;  %v1189_v35 = vpop.f32.mrb[5].mxu0  ;;  %v1381_v36 = vadd.f32 %v1380_v33, %v6244_v59  ;;  %v1382_v14 = vpop.f32.mrb[5].mxu1 }
 0x10d   : > { %v1190_v37 = vadd.f32 %v1189_v35, %v6248_v60  ;;  %v1191_v38 = vpop.f32.mrb[6].mxu0  ;;  %v1383_v39 = vadd.f32 %v1382_v14, %v6254_v61  ;;  %v1384_v40 = vpop.f32.mrb[6].mxu1 }
 0x10e   : > { %v2522_v42 = vmax.f32 %v1188_v34, 0.0  ;;  %v1192_v43 = vadd.f32 %v1191_v38, %v6240_v58  ;;  %v1193_v44 = vpop.f32.mrb[7].mxu0  ;;  %v2524_v45 = vmax.f32 %v1381_v36, 0.0  ;;  %v1385_v46 = vadd.f32 %v1384_v40, %v6244_v59  ;;  %v1386_v47 = vpop.f32.mrb[7].mxu1 }
 0x10f   : > { %v2523_v48 = vmax.f32 %v1190_v37, 0.0  ;;  %v1194_v49 = vadd.f32 %v1193_v44, %v6248_v60  ;;  %v2525_v50 = vmax.f32 %v1383_v39, 0.0  ;;  %v1387_v51 = vadd.f32 %v1386_v47, %v6254_v61 }
 0x110   : > { %v2957_v55 = vadd.f32 %v2956_v28, %v2522_v42  ;;  %v2536_v62 = vmax.f32 %v1192_v43, 0.0  ;;  %1682 = vmatmul.mubr.bf16.gmra.mrb[112].mxu0 %v6064_v15  ;;  %1875 = vmatmul.mubr.bf16.gmra.mrb[112].mxu1 %v6064_v15  ;;  %v3019_v63 = vadd.f32 %v3018_v29, %v2524_v45  ;;  %v2538_v0 = vmax.f32 %v1385_v46, 0.0 }
 0x111   : > { %v2988_v1 = vadd.f32 %v2987_v30, %v2523_v48  ;;  %v2537_v3 = vmax.f32 %v1194_v49, 0.0  ;;  %1691 = vmatprep.mubr.bf16.mxu0 %v5688_v2  ;;  %1884 = vmatprep.mubr.bf16.mxu1 %v5688_v2  ;;  %v3050_v4 = vadd.f32 %v3049_v32, %v2525_v50  ;;  %v2539_v5 = vmax.f32 %v1387_v51, 0.0 }
 0x112   : > { %v2958_v6 = vadd.f32 %v2957_v55, %v2536_v62  ;;  %v3020_v7 = vadd.f32 %v3019_v63, %v2538_v0 }
 0x113   : > { %v1197_v8 = vpop.f32.mrb[8].mxu0  ;;  %v2989_v9 = vadd.f32 %v2988_v1, %v2537_v3  ;;  %v3051_v10 = vadd.f32 %v3050_v4, %v2539_v5  ;;  %v1390_v11 = vpop.f32.mrb[8].mxu1 }
 0x114   : > { %v1198_v12 = vadd.f32 %v1197_v8, %v6240_v58  ;;  %v1199_v13 = vpop.f32.mrb[9].mxu0  ;;  %v1391_v15 = vadd.f32 %v1390_v11, %v6244_v59  ;;  %v1392_v16 = vpop.f32.mrb[9].mxu1 }
 0x115   : > { %v1200_v20 = vadd.f32 %v1199_v13, %v6248_v60  ;;  %v1201_v21 = vpop.f32.mrb[10].mxu0  ;;  %v1393_v22 = vadd.f32 %v1392_v16, %v6254_v61  ;;  %v1394_v23 = vpop.f32.mrb[10].mxu1 }
 0x116   : > { %v2550_v24 = vmax.f32 %v1198_v12, 0.0  ;;  %v1202_v25 = vadd.f32 %v1201_v21, %v6240_v58  ;;  %v1203_v26 = vpop.f32.mrb[11].mxu0  ;;  %v2552_v27 = vmax.f32 %v1391_v15, 0.0  ;;  %v1395_v28 = vadd.f32 %v1394_v23, %v6244_v59  ;;  %v1396_v29 = vpop.f32.mrb[11].mxu1 }
 0x117   : > { %v2551_v30 = vmax.f32 %v1200_v20, 0.0  ;;  %v1204_v31 = vadd.f32 %v1203_v26, %v6248_v60  ;;  %v2553_v32 = vmax.f32 %v1393_v22, 0.0  ;;  %v1397_v33 = vadd.f32 %v1396_v29, %v6254_v61 }
 0x118   : > { %v2959_v34 = vadd.f32 %v2958_v6, %v2550_v24  ;;  %v2564_v35 = vmax.f32 %v1202_v25, 0.0  ;;  %1692 = vmatmul.mubr.bf16.gmra.mrb[116].mxu0 %v6074_v17  ;;  %1885 = vmatmul.mubr.bf16.gmra.mrb[116].mxu1 %v6074_v17  ;;  %v3021_v36 = vadd.f32 %v3020_v7, %v2552_v27  ;;  %v2566_v14 = vmax.f32 %v1395_v28, 0.0 }
 0x119   : > { %v2990_v37 = vadd.f32 %v2989_v9, %v2551_v30  ;;  %v2565_v38 = vmax.f32 %v1204_v31, 0.0  ;;  %1701 = vmatprep.mubr.bf16.mxu0 %v5688_v2  ;;  %1894 = vmatprep.mubr.bf16.mxu1 %v5688_v2  ;;  %v3052_v39 = vadd.f32 %v3051_v10, %v2553_v32  ;;  %v2567_v40 = vmax.f32 %v1397_v33, 0.0 }
 0x11a   : > { %v2960_v41 = vadd.f32 %v2959_v34, %v2564_v35  ;;  %v3022_v42 = vadd.f32 %v3021_v36, %v2566_v14 }
 0x11b   : > { %v2991_v43 = vadd.f32 %v2990_v37, %v2565_v38  ;;  %v1207_v44 = vpop.f32.mrb[12].mxu0  ;;  %v3053_v45 = vadd.f32 %v3052_v39, %v2567_v40  ;;  %v1400_v46 = vpop.f32.mrb[12].mxu1 }
 0x11c   : > { %v1208_v47 = vadd.f32 %v1207_v44, %v6240_v58  ;;  %v1209_v48 = vpop.f32.mrb[13].mxu0  ;;  %v1401_v17 = vadd.f32 %v1400_v46, %v6244_v59  ;;  %v1402_v49 = vpop.f32.mrb[13].mxu1 }
 0x11d   : > { %v1210_v50 = vadd.f32 %v1209_v48, %v6248_v60  ;;  %v1211_v51 = vpop.f32.mrb[14].mxu0  ;;  %v1403_v55 = vadd.f32 %v1402_v49, %v6254_v61  ;;  %v1404_v62 = vpop.f32.mrb[14].mxu1 }
 0x11e   : > { %v2578_v63 = vmax.f32 %v1208_v47, 0.0  ;;  %v1212_v0 = vadd.f32 %v1211_v51, %v6240_v58  ;;  %v1213_v1 = vpop.f32.mrb[15].mxu0  ;;  %v2580_v3 = vmax.f32 %v1401_v17, 0.0  ;;  %v1405_v4 = vadd.f32 %v1404_v62, %v6244_v59  ;;  %v1406_v5 = vpop.f32.mrb[15].mxu1 }
 0x11f   : > { %v2579_v6 = vmax.f32 %v1210_v50, 0.0  ;;  %v1214_v7 = vadd.f32 %v1213_v1, %v6248_v60  ;;  %v2581_v8 = vmax.f32 %v1403_v55, 0.0  ;;  %v1407_v9 = vadd.f32 %v1406_v5, %v6254_v61 }
 0x120   : > { %v2961_v10 = vadd.f32 %v2960_v41, %v2578_v63  ;;  %v2592_v11 = vmax.f32 %v1212_v0, 0.0  ;;  %1702 = vmatmul.mubr.bf16.gmra.mrb[120].mxu0 %v6081_v18  ;;  %1895 = vmatmul.mubr.bf16.gmra.mrb[120].mxu1 %v6081_v18  ;;  %v3023_v12 = vadd.f32 %v3022_v42, %v2580_v3  ;;  %v2594_v13 = vmax.f32 %v1405_v4, 0.0 }
 0x121   : > { %v2992_v15 = vadd.f32 %v2991_v43, %v2579_v6  ;;  %v2593_v16 = vmax.f32 %v1214_v7, 0.0  ;;  %1711 = vmatprep.mubr.bf16.mxu0 %v5688_v2  ;;  %1904 = vmatprep.mubr.bf16.mxu1 %v5688_v2  ;;  %v3054_v20 = vadd.f32 %v3053_v45, %v2581_v8  ;;  %v2595_v21 = vmax.f32 %v1407_v9, 0.0  ;;  %v5436_v8 = vld [vmem:[%s7339_s1 + $0x30] ss:$56 sps:$4 sm:$0xff]  }
 0x122   : > { %v2962_v22 = vadd.f32 %v2961_v10, %v2592_v11  ;;  %v3024_v23 = vadd.f32 %v3023_v12, %v2594_v13 }
 0x123   : > { %v2993_v24 = vadd.f32 %v2992_v15, %v2593_v16  ;;  %v1217_v25 = vpop.f32.mrb[16].mxu0  ;;  %v3055_v26 = vadd.f32 %v3054_v20, %v2595_v21  ;;  %v1410_v27 = vpop.f32.mrb[16].mxu1  ;;  %v5441_v15 = vld [vmem:[%s7339_s1 + $0xa4] ss:$56 sps:$4 sm:$0xff]  }
 0x124   : > { %v1218_v28 = vadd.f32 %v1217_v25, %v6240_v58  ;;  %v1219_v29 = vpop.f32.mrb[17].mxu0  ;;  %v1411_v18 = vadd.f32 %v1410_v27, %v6244_v59  ;;  %v1412_v30 = vpop.f32.mrb[17].mxu1 }
 0x125   : > { %v1220_v31 = vadd.f32 %v1219_v29, %v6248_v60  ;;  %v1221_v32 = vpop.f32.mrb[18].mxu0  ;;  %v1413_v33 = vadd.f32 %v1412_v30, %v6254_v61  ;;  %v1414_v34 = vpop.f32.mrb[18].mxu1  ;;  %v5574_v29 = vld [vmem:[%s5857_s17] sm:$0xff]  }
 0x126   : > { %v2606_v35 = vmax.f32 %v1218_v28, 0.0  ;;  %v1222_v36 = vadd.f32 %v1221_v32, %v6240_v58  ;;  %v1223_v14 = vpop.f32.mrb[19].mxu0  ;;  %v2608_v37 = vmax.f32 %v1411_v18, 0.0  ;;  %v1415_v38 = vadd.f32 %v1414_v34, %v6244_v59  ;;  %v1416_v39 = vpop.f32.mrb[19].mxu1  ;;  %v5439_v34 = vld [vmem:[%s7339_s1 + $0xa0] ss:$56 sps:$4 sm:$0xff]  }
 0x127   : > { %v2607_v40 = vmax.f32 %v1220_v31, 0.0  ;;  %v1224_v41 = vadd.f32 %v1223_v14, %v6248_v60  ;;  %v2609_v42 = vmax.f32 %v1413_v33, 0.0  ;;  %v1417_v43 = vadd.f32 %v1416_v39, %v6254_v61  ;;  %v5459_v31 = vld [vmem:[%s7341_s3 + $0x48] sm:$0xff]  }
 0x128   : > { %v2963_v44 = vadd.f32 %v2962_v22, %v2606_v35  ;;  %v2620_v45 = vmax.f32 %v1222_v36, 0.0  ;;  %1712 = vmatmul.mubr.bf16.gmra.mrb[124].mxu0 %v6088_v19  ;;  %1905 = vmatmul.mubr.bf16.gmra.mrb[124].mxu1 %v6088_v19  ;;  %v3025_v46 = vadd.f32 %v3024_v23, %v2608_v37  ;;  %v2622_v47 = vmax.f32 %v1415_v38, 0.0  ;;  %v5444_v37 = vld [vmem:[%s7339_s1 + $0x114] ss:$56 sps:$4 sm:$0xff]  }
 0x129   : > { %v2994_v48 = vadd.f32 %v2993_v24, %v2607_v40  ;;  %v2621_v17 = vmax.f32 %v1224_v41, 0.0  ;;  %1947 = vmatprep.mubr.bf16.mxu0 %v5688_v2  ;;  %2140 = vmatprep.mubr.bf16.mxu1 %v5688_v2  ;;  %v3056_v49 = vadd.f32 %v3055_v26, %v2609_v42  ;;  %v2623_v50 = vmax.f32 %v1417_v43, 0.0  ;;  %v5458_v26 = vld [vmem:[%s7341_s3] sm:$0xff]   ;;  %v5460_v43 = vld [vmem:[%s7341_s3 + $0x8] sm:$0xff]  }
 0x12a   : > { %v2964_v51 = vadd.f32 %v2963_v44, %v2620_v45  ;;  %v3026_v55 = vadd.f32 %v3025_v46, %v2622_v47 }
 0x12b   : > { %v2995_v62 = vadd.f32 %v2994_v48, %v2621_v17  ;;  %v1227_v63 = vpop.f32.mrb[20].mxu0  ;;  %v3057_v0 = vadd.f32 %v3056_v49, %v2623_v50  ;;  %v1420_v1 = vpop.f32.mrb[20].mxu1  ;;  %v5442_v49 = vld [vmem:[%s7339_s1 + $0x110] ss:$56 sps:$4 sm:$0xff]  }
 0x12c   : > { %v1228_v3 = vadd.f32 %v1227_v63, %v6240_v58  ;;  %v1229_v4 = vpop.f32.mrb[21].mxu0  ;;  %v1421_v19 = vadd.f32 %v1420_v1, %v6244_v59  ;;  %v1422_v5 = vpop.f32.mrb[21].mxu1 }
 0x12d   : > { %v1230_v6 = vadd.f32 %v1229_v4, %v6248_v60  ;;  %v1231_v7 = vpop.f32.mrb[22].mxu0  ;;  %v1423_v9 = vadd.f32 %v1422_v5, %v6254_v61  ;;  %v1424_v10 = vpop.f32.mrb[22].mxu1  ;;  %v5461_v4 = vld [vmem:[%s7341_s3 + $0x50] sm:$0xff]  }
 0x12e   : > { %v2634_v11 = vmax.f32 %v1228_v3, 0.0  ;;  %v1232_v12 = vadd.f32 %v1231_v7, %v6240_v58  ;;  %v1233_v13 = vpop.f32.mrb[23].mxu0  ;;  %v2636_v16 = vmax.f32 %v1421_v19, 0.0  ;;  %v1425_v20 = vadd.f32 %v1424_v10, %v6244_v59  ;;  %v1426_v21 = vpop.f32.mrb[23].mxu1 }
 0x12f   : > { %v2635_v22 = vmax.f32 %v1230_v6, 0.0  ;;  %v1234_v23 = vadd.f32 %v1233_v13, %v6248_v60  ;;  %v2637_v24 = vmax.f32 %v1423_v9, 0.0  ;;  %v1427_v25 = vadd.f32 %v1426_v21, %v6254_v61  ;;  %v5447_v6 = vld [vmem:[%s7339_s1 + $0x184] ss:$56 sps:$4 sm:$0xff]   ;;  %v5462_v9 = vld [vmem:[%s7341_s3 + $0x10] sm:$0xff]  }
 0x130   : > { %v2965_v27 = vadd.f32 %v2964_v51, %v2634_v11  ;;  %v2648_v28 = vmax.f32 %v1232_v12, 0.0  ;;  %1948 = vmatmul.mubr.bf16.vlgmr.msra.gmra.mrb[128].mxu0 %v5574_v29  ;;  %2141 = vmatmul.mubr.bf16.vlgmr.msra.gmra.mrb[128].mxu1 %v5574_v29  ;;  %v3027_v18 = vadd.f32 %v3026_v55, %v2636_v16  ;;  %v2650_v30 = vmax.f32 %v1425_v20, 0.0  ;;  %v5575_v12 = vld [vmem:[%s5857_s17 + $0x8] sm:$0xff]   ;;  %v5463_v16 = vld [vmem:[%s7341_s3 + $0x58] sm:$0xff]  }
 0x131   : > { %v2996_v32 = vadd.f32 %v2995_v62, %v2635_v22  ;;  %v2649_v33 = vmax.f32 %v1234_v23, 0.0  ;;  %2302 = vmatpush1.bf16.msra.mxu0 %v5436_v8  ;;  %1957 = vmatprep.mubr.bf16.mxu0 %v5688_v2  ;;  %v3058_v35 = vadd.f32 %v3057_v0, %v2637_v24  ;;  %v2651_v36 = vmax.f32 %v1427_v25, 0.0  ;;  %v5445_v25 = vld [vmem:[%s7339_s1 + $0x180] ss:$56 sps:$4 sm:$0xff]   ;;  %v5450_v29 = vld [vmem:[%s7339_s1 + $0x1f4] ss:$56 sps:$4 sm:$0xff]  }
 0x132   : > { %v2966_v14 = vadd.f32 %v2965_v27, %v2648_v28  ;;  %2150 = vmatprep.mubr.bf16.mxu1 %v5688_v2  ;;  %2303 = vmatprep.subr.bf16.mxu0 %v5441_v15  ;;  %v3028_v38 = vadd.f32 %v3027_v18, %v2650_v30 }
 0x133   : > { %v2997_v39 = vadd.f32 %v2996_v32, %v2649_v33  ;;  %v1237_v40 = vpop.f32.mrb[24].mxu0  ;;  %v3059_v41 = vadd.f32 %v3058_v35, %v2651_v36  ;;  %v1430_v42 = vpop.f32.mrb[24].mxu1  ;;  %5067 = vmatpush3.bf16.msra.mxu1 %v5458_v26 }
 0x134   : > { %v1238_v44 = vadd.f32 %v1237_v40, %v6240_v58  ;;  %v1239_v45 = vpop.f32.mrb[25].mxu0  ;;  %v1431_v46 = vadd.f32 %v1430_v42, %v6244_v59  ;;  %v1432_v47 = vpop.f32.mrb[25].mxu1  ;;  %5068 = vmatprep.subr.bf16.mxu1 %v5459_v31  ;;  %v5464_v31 = vld [vmem:[%s7341_s3 + $0x18] sm:$0xff]  }
 0x135   : > { %v1240_v48 = vadd.f32 %v1239_v45, %v6248_v60  ;;  %v1241_v17 = vpop.f32.mrb[26].mxu0  ;;  %2304 = vmatpush1.bf16.msra.mxu0 %v5439_v34  ;;  %v1433_v50 = vadd.f32 %v1432_v47, %v6254_v61  ;;  %v1434_v51 = vpop.f32.mrb[26].mxu1 }
 0x136   : > { %v2662_v55 = vmax.f32 %v1238_v44, 0.0  ;;  %v1242_v62 = vadd.f32 %v1241_v17, %v6240_v58  ;;  %v1243_v63 = vpop.f32.mrb[27].mxu0  ;;  %2305 = vmatprep.subr.bf16.mxu0 %v5444_v37  ;;  %v2664_v0 = vmax.f32 %v1431_v46, 0.0  ;;  %v1435_v1 = vadd.f32 %v1434_v51, %v6244_v59  ;;  %v1436_v3 = vpop.f32.mrb[27].mxu1  ;;  %v5448_v37 = vld [vmem:[%s7339_s1 + $0x1f0] ss:$56 sps:$4 sm:$0xff]  }
 0x137   : > { %v2663_v19 = vmax.f32 %v1240_v48, 0.0  ;;  %v1244_v5 = vadd.f32 %v1243_v63, %v6248_v60  ;;  %v2665_v7 = vmax.f32 %v1433_v50, 0.0  ;;  %v1437_v8 = vadd.f32 %v1436_v3, %v6254_v61  ;;  %5069 = vmatpush3.bf16.msra.mxu1 %v5460_v43  ;;  %v5465_v46 = vld [vmem:[%s7341_s3 + $0x60] sm:$0xff]   ;;  %v5576_v63 = vld [vmem:[%s5857_s17 + $0x10] sm:$0xff]   ;;  %v5470_v3 = vld [vmem:[%s7341_s3 + $0x68] sm:$0xff]  }
 0x138   : > { %v2967_v10 = vadd.f32 %v2966_v14, %v2662_v55  ;;  %v2676_v11 = vmax.f32 %v1242_v62, 0.0  ;;  %1958 = vmatmul.mubr.bf16.gmra.mrb[132].mxu0 %v5575_v12  ;;  %2151 = vmatmul.mubr.bf16.gmra.mrb[132].mxu1 %v5575_v12  ;;  %v3029_v13 = vadd.f32 %v3028_v38, %v2664_v0  ;;  %v2678_v15 = vmax.f32 %v1435_v1, 0.0  ;;  %v5453_v17 = vld [vmem:[%s7339_s1 + $0x264] ss:$56 sps:$4 sm:$0xff]   ;;  %v5457_v12 = vld [vmem:[%s7339_s1 + $0x2d4] ss:$56 sps:$4 sm:$0xff]  }
 0x139   : > { %v2998_v20 = vadd.f32 %v2997_v39, %v2663_v19  ;;  %v2677_v21 = vmax.f32 %v1244_v5, 0.0  ;;  %1967 = vmatprep.mubr.bf16.mxu0 %v5688_v2  ;;  %2160 = vmatprep.mubr.bf16.mxu1 %v5688_v2  ;;  %v3060_v22 = vadd.f32 %v3059_v41, %v2665_v7  ;;  %v2679_v23 = vmax.f32 %v1437_v8, 0.0  ;;  %v5469_v51 = vld [vmem:[%s7341_s3 + $0x20] sm:$0xff]  }
 0x13a   : > { %v2968_v24 = vadd.f32 %v2967_v10, %v2676_v11  ;;  %2306 = vmatpush1.bf16.msra.mxu0 %v5442_v49  ;;  %v3030_v26 = vadd.f32 %v3029_v13, %v2678_v15  ;;  %5070 = vmatprep.subr.bf16.mxu1 %v5461_v4  ;;  %v5451_v8 = vld [vmem:[%s7339_s1 + $0x260] ss:$56 sps:$4 sm:$0xff]  }
 0x13b   : > { %v2999_v27 = vadd.f32 %v2998_v20, %v2677_v21  ;;  %v1247_v28 = vpop.f32.mrb[28].mxu0  ;;  %2307 = vmatprep.subr.bf16.mxu0 %v5447_v6  ;;  %v3061_v18 = vadd.f32 %v3060_v22, %v2679_v23  ;;  %v1440_v30 = vpop.f32.mrb[28].mxu1  ;;  %5071 = vmatpush3.bf16.msra.mxu1 %v5462_v9 }
 0x13c   : > { %v1248_v32 = vadd.f32 %v1247_v28, %v6240_v58  ;;  %v1249_v33 = vpop.f32.mrb[29].mxu0  ;;  %v1441_v34 = vadd.f32 %v1440_v30, %v6244_v59  ;;  %v1442_v35 = vpop.f32.mrb[29].mxu1  ;;  %5072 = vmatprep.subr.bf16.mxu1 %v5463_v16  ;;  %v5471_v16 = vld [vmem:[%s7341_s3 + $0x28] sm:$0xff]  }
 0x13d   : > { %v1250_v36 = vadd.f32 %v1249_v33, %v6248_v60  ;;  %v1251_v14 = vpop.f32.mrb[30].mxu0  ;;  %v1443_v38 = vadd.f32 %v1442_v35, %v6254_v61  ;;  %v1444_v39 = vpop.f32.mrb[30].mxu1 }
 0x13e   : > { %v2690_v40 = vmax.f32 %v1248_v32, 0.0  ;;  %v1252_v41 = vadd.f32 %v1251_v14, %v6240_v58  ;;  %v1253_v42 = vpop.f32.mrb[31].mxu0  ;;  %2308 = vmatpush1.bf16.msra.mxu0 %v5445_v25  ;;  %v2692_v43 = vmax.f32 %v1441_v34, 0.0  ;;  %v1445_v44 = vadd.f32 %v1444_v39, %v6244_v59  ;;  %v1446_v45 = vpop.f32.mrb[31].mxu1  ;;  %v5472_v34 = vld [vmem:[%s7341_s3 + $0x70] sm:$0xff]  }
 0x13f   : > { %v2691_v47 = vmax.f32 %v1250_v36, 0.0  ;;  %v1254_v48 = vadd.f32 %v1253_v42, %v6248_v60  ;;  %2309 = vmatprep.subr.bf16.mxu0 %v5450_v29  ;;  %v2693_v49 = vmax.f32 %v1443_v38, 0.0  ;;  %v1447_v50 = vadd.f32 %v1446_v45, %v6254_v61  ;;  %5073 = vmatpush3.bf16.msra.mxu1 %v5464_v31  ;;  %v5468_v38 = vld [vmem:[%s7339_s1 + $0x344] ss:$56 sps:$4 sm:$0xff]   ;;  %v5473_v39 = vld [vmem:[%s7341_s3 + $0x30] sm:$0xff]  }
 0x140   : > { %v2969_v55 = vadd.f32 %v2968_v24, %v2690_v40  ;;  %v2704_v62 = vmax.f32 %v1252_v41, 0.0  ;;  %1968 = vmatmul.mubr.bf16.gmra.mrb[136].mxu0 %v5576_v63  ;;  %2161 = vmatmul.mubr.bf16.gmra.mrb[136].mxu1 %v5576_v63  ;;  %v3031_v0 = vadd.f32 %v3030_v26, %v2692_v43  ;;  %v2706_v1 = vmax.f32 %v1445_v44, 0.0  ;;  %v5455_v26 = vld [vmem:[%s7339_s1 + $0x2d0] ss:$56 sps:$4 sm:$0xff]   ;;  %v5577_v42 = vld [vmem:[%s5857_s17 + $0x18] sm:$0xff]  }
 0x141   : > { %v3000_v4 = vadd.f32 %v2999_v27, %v2691_v47  ;;  %v2705_v19 = vmax.f32 %v1254_v48, 0.0  ;;  %1977 = vmatprep.mubr.bf16.mxu0 %v5688_v2  ;;  %2170 = vmatprep.mubr.bf16.mxu1 %v5688_v2  ;;  %v3062_v5 = vadd.f32 %v3061_v18, %v2693_v49  ;;  %v2707_v6 = vmax.f32 %v1447_v50, 0.0  ;;  %v5474_v45 = vld [vmem:[%s7341_s3 + $0x78] sm:$0xff]  }
 0x142   : > { %v2970_v7 = vadd.f32 %v2969_v55, %v2704_v62  ;;  %2310 = vmatpush1.bf16.msra.mxu0 %v5448_v37  ;;  %v3032_v9 = vadd.f32 %v3031_v0, %v2706_v1  ;;  %5074 = vmatprep.subr.bf16.mxu1 %v5465_v46  ;;  %v5475_v1 = vld [vmem:[%s7341_s3 + $0x38] sm:$0xff]  }
 0x143   : > { %v3001_v10 = vadd.f32 %v3000_v4, %v2705_v19  ;;  %v1257_v11 = vpop.f32.mrb[32].mxu0  ;;  %2311 = vmatprep.subr.bf16.mxu0 %v5453_v17  ;;  %v3063_v13 = vadd.f32 %v3062_v5, %v2707_v6  ;;  %v1450_v15 = vpop.f32.mrb[32].mxu1  ;;  %5075 = vmatpush3.bf16.msra.mxu1 %v5469_v51  ;;  %v5466_v51 = vld [vmem:[%s7339_s1 + $0x340] ss:$56 sps:$4 sm:$0xff]  }
 0x144   : > { %v1258_v20 = vadd.f32 %v1257_v11, %v6240_v58  ;;  %v1259_v21 = vpop.f32.mrb[33].mxu0  ;;  %v1451_v22 = vadd.f32 %v1450_v15, %v6244_v59  ;;  %v1452_v23 = vpop.f32.mrb[33].mxu1  ;;  %5076 = vmatprep.subr.bf16.mxu1 %v5470_v3 }
 0x145   : > { %v1260_v24 = vadd.f32 %v1259_v21, %v6248_v60  ;;  %v1261_v25 = vpop.f32.mrb[34].mxu0  ;;  %v1453_v27 = vadd.f32 %v1452_v23, %v6254_v61  ;;  %v1454_v28 = vpop.f32.mrb[34].mxu1 }
 0x146   : > { %v2718_v29 = vmax.f32 %v1258_v20, 0.0  ;;  %v1262_v18 = vadd.f32 %v1261_v25, %v6240_v58  ;;  %v1263_v30 = vpop.f32.mrb[35].mxu0  ;;  %2312 = vmatpush1.bf16.msra.mxu0 %v5451_v8  ;;  %v2720_v31 = vmax.f32 %v1451_v22, 0.0  ;;  %v1455_v32 = vadd.f32 %v1454_v28, %v6244_v59  ;;  %v1456_v33 = vpop.f32.mrb[35].mxu1  ;;  %v5476_v20 = vld [vmem:[%s7341_s3 + $0xc0] sm:$0xff]  }
 0x147   : > { %v2719_v35 = vmax.f32 %v1260_v24, 0.0  ;;  %v1264_v36 = vadd.f32 %v1263_v30, %v6248_v60  ;;  %2313 = vmatprep.subr.bf16.mxu0 %v5457_v12  ;;  %v2721_v14 = vmax.f32 %v1453_v27, 0.0  ;;  %v1457_v37 = vadd.f32 %v1456_v33, %v6254_v61  ;;  %5077 = vmatpush3.bf16.msra.mxu1 %v5471_v16  ;;  %v5578_v27 = vld [vmem:[%s5857_s17 + $0x20] sm:$0xff]  }
 0x148   : > { %v2971_v40 = vadd.f32 %v2970_v7, %v2718_v29  ;;  %v2732_v41 = vmax.f32 %v1262_v18, 0.0  ;;  %1978 = vmatmul.mubr.bf16.gmra.mrb[140].mxu0 %v5577_v42  ;;  %2171 = vmatmul.mubr.bf16.gmra.mrb[140].mxu1 %v5577_v42  ;;  %v3033_v43 = vadd.f32 %v3032_v9, %v2720_v31  ;;  %v2734_v44 = vmax.f32 %v1455_v32, 0.0 }
 0x149   : > { %v3002_v46 = vadd.f32 %v3001_v10, %v2719_v35  ;;  %v2733_v47 = vmax.f32 %v1264_v36, 0.0  ;;  %1987 = vmatprep.mubr.bf16.mxu0 %v5688_v2  ;;  %2180 = vmatprep.mubr.bf16.mxu1 %v5688_v2  ;;  %v3064_v48 = vadd.f32 %v3063_v13, %v2721_v14  ;;  %v2735_v17 = vmax.f32 %v1457_v37, 0.0 }
 0x14a   : > { %v2972_v49 = vadd.f32 %v2971_v40, %v2732_v41  ;;  %2314 = vmatpush1.bf16.msra.mxu0 %v5455_v26  ;;  %v3034_v50 = vadd.f32 %v3033_v43, %v2734_v44  ;;  %5078 = vmatprep.subr.bf16.mxu1 %v5472_v34 }
 0x14b   : > { %v3003_v55 = vadd.f32 %v3002_v46, %v2733_v47  ;;  %v1267_v62 = vpop.f32.mrb[36].mxu0  ;;  %v3065_v63 = vadd.f32 %v3064_v48, %v2735_v17  ;;  %v1460_v0 = vpop.f32.mrb[36].mxu1  ;;  %2315 = vmatprep.subr.bf16.mxu0 %v5468_v38  ;;  %5079 = vmatpush3.bf16.msra.mxu1 %v5473_v39 }
 0x14c   : > { %v1268_v3 = vadd.f32 %v1267_v62, %v6240_v58  ;;  %v1269_v4 = vpop.f32.mrb[37].mxu0  ;;  %v1461_v19 = vadd.f32 %v1460_v0, %v6244_v59  ;;  %v1462_v5 = vpop.f32.mrb[37].mxu1  ;;  %5080 = vmatprep.subr.bf16.mxu1 %v5474_v45 }
 0x14d   : > { %v1270_v6 = vadd.f32 %v1269_v4, %v6248_v60  ;;  %v1271_v7 = vpop.f32.mrb[38].mxu0  ;;  %v1463_v8 = vadd.f32 %v1462_v5, %v6254_v61  ;;  %v1464_v9 = vpop.f32.mrb[38].mxu1 }
 0x14e   : > { %v2746_v10 = vmax.f32 %v1268_v3, 0.0  ;;  %v1272_v11 = vadd.f32 %v1271_v7, %v6240_v58  ;;  %v1273_v12 = vpop.f32.mrb[39].mxu0  ;;  %v2748_v13 = vmax.f32 %v1461_v19, 0.0  ;;  %v1465_v15 = vadd.f32 %v1464_v9, %v6244_v59  ;;  %v1466_v16 = vpop.f32.mrb[39].mxu1  ;;  %2316 = vmatpush1.bf16.msra.mxu0 %v5466_v51  ;;  %v5579_v3 = vld [vmem:[%s5857_s17 + $0x28] sm:$0xff]  }
 0x14f   : > { %v2747_v21 = vmax.f32 %v1270_v6, 0.0  ;;  %v1274_v22 = vadd.f32 %v1273_v12, %v6248_v60  ;;  %v2749_v23 = vmax.f32 %v1463_v8, 0.0  ;;  %v1467_v24 = vadd.f32 %v1466_v16, %v6254_v61  ;;  %5081 = vmatpush3.bf16.msra.mxu1 %v5475_v1 }
 0x150   : > { %v2973_v25 = vadd.f32 %v2972_v49, %v2746_v10  ;;  %v2760_v26 = vmax.f32 %v1272_v11, 0.0  ;;  %1988 = vmatmul.mubr.bf16.gmra.mrb[144].mxu0 %v5578_v27  ;;  %2181 = vmatmul.mubr.bf16.gmra.mrb[144].mxu1 %v5578_v27  ;;  %v3035_v28 = vadd.f32 %v3034_v50, %v2748_v13  ;;  %v2762_v29 = vmax.f32 %v1465_v15, 0.0 }
 0x151   : > { %v3004_v18 = vadd.f32 %v3003_v55, %v2747_v21  ;;  %v2761_v30 = vmax.f32 %v1274_v22, 0.0  ;;  %1997 = vmatprep.mubr.bf16.mxu0 %v5688_v2  ;;  %2190 = vmatprep.mubr.bf16.mxu1 %v5688_v2  ;;  %v3066_v31 = vadd.f32 %v3065_v63, %v2749_v23  ;;  %v2763_v32 = vmax.f32 %v1467_v24, 0.0 }
 0x152   : > { %v2974_v33 = vadd.f32 %v2973_v25, %v2760_v26  ;;  %v3036_v34 = vadd.f32 %v3035_v28, %v2762_v29  ;;  %5088 = vmatprep.subr.bf16.mxu1 %v5476_v20 }
 0x153   : > { %v3005_v35 = vadd.f32 %v3004_v18, %v2761_v30  ;;  %v1277_v36 = vpop.f32.mrb[40].mxu0  ;;  %v3067_v14 = vadd.f32 %v3066_v31, %v2763_v32  ;;  %v1470_v37 = vpop.f32.mrb[40].mxu1 }
 0x154   : > { %v1278_v38 = vadd.f32 %v1277_v36, %v6240_v58  ;;  %v1279_v39 = vpop.f32.mrb[41].mxu0  ;;  %v1471_v40 = vadd.f32 %v1470_v37, %v6244_v59  ;;  %v1472_v41 = vpop.f32.mrb[41].mxu1  ;;  %v5580_v37 = vld [vmem:[%s5857_s17 + $0x30] sm:$0xff]  }
 0x155   : > { %v1280_v42 = vadd.f32 %v1279_v39, %v6248_v60  ;;  %v1281_v43 = vpop.f32.mrb[42].mxu0  ;;  %v1473_v44 = vadd.f32 %v1472_v41, %v6254_v61  ;;  %v1474_v45 = vpop.f32.mrb[42].mxu1 }
 0x156   : > { %v2774_v46 = vmax.f32 %v1278_v38, 0.0  ;;  %v1282_v47 = vadd.f32 %v1281_v43, %v6240_v58  ;;  %v1283_v48 = vpop.f32.mrb[43].mxu0  ;;  %v2776_v17 = vmax.f32 %v1471_v40, 0.0  ;;  %v1475_v49 = vadd.f32 %v1474_v45, %v6244_v59  ;;  %v1476_v50 = vpop.f32.mrb[43].mxu1 }
 0x157   : > { %v2775_v51 = vmax.f32 %v1280_v42, 0.0  ;;  %v1284_v55 = vadd.f32 %v1283_v48, %v6248_v60  ;;  %v2777_v62 = vmax.f32 %v1473_v44, 0.0  ;;  %v1477_v63 = vadd.f32 %v1476_v50, %v6254_v61 }
 0x158   : > { %v2975_v0 = vadd.f32 %v2974_v33, %v2774_v46  ;;  %v2788_v1 = vmax.f32 %v1282_v47, 0.0  ;;  %1998 = vmatmul.mubr.bf16.gmra.mrb[148].mxu0 %v5579_v3  ;;  %2191 = vmatmul.mubr.bf16.gmra.mrb[148].mxu1 %v5579_v3  ;;  %v3037_v4 = vadd.f32 %v3036_v34, %v2776_v17  ;;  %v2790_v19 = vmax.f32 %v1475_v49, 0.0 }
 0x159   : > { %v3006_v5 = vadd.f32 %v3005_v35, %v2775_v51  ;;  %v2789_v6 = vmax.f32 %v1284_v55, 0.0  ;;  %2007 = vmatprep.mubr.bf16.mxu0 %v5688_v2  ;;  %2200 = vmatprep.mubr.bf16.mxu1 %v5688_v2  ;;  %v3068_v7 = vadd.f32 %v3067_v14, %v2777_v62  ;;  %v2791_v8 = vmax.f32 %v1477_v63, 0.0 }
 0x15a   : > { %v2976_v9 = vadd.f32 %v2975_v0, %v2788_v1  ;;  %v3038_v10 = vadd.f32 %v3037_v4, %v2790_v19 }
 0x15b   : > { %v3007_v11 = vadd.f32 %v3006_v5, %v2789_v6  ;;  %v1287_v12 = vpop.f32.mrb[44].mxu0  ;;  %v3069_v13 = vadd.f32 %v3068_v7, %v2791_v8  ;;  %v1480_v15 = vpop.f32.mrb[44].mxu1 }
 0x15c   : > { %v1288_v16 = vadd.f32 %v1287_v12, %v6240_v58  ;;  %v1289_v20 = vpop.f32.mrb[45].mxu0  ;;  %v1481_v21 = vadd.f32 %v1480_v15, %v6244_v59  ;;  %v1482_v22 = vpop.f32.mrb[45].mxu1  ;;  %v5581_v15 = vld [vmem:[%s5857_s17 + $0x38] sm:$0xff]  }
 0x15d   : > { %v1290_v23 = vadd.f32 %v1289_v20, %v6248_v60  ;;  %v1291_v24 = vpop.f32.mrb[46].mxu0  ;;  %v1483_v25 = vadd.f32 %v1482_v22, %v6254_v61  ;;  %v1484_v26 = vpop.f32.mrb[46].mxu1 }
 0x15e   : > { %v2802_v27 = vmax.f32 %v1288_v16, 0.0  ;;  %v1292_v28 = vadd.f32 %v1291_v24, %v6240_v58  ;;  %v1293_v29 = vpop.f32.mrb[47].mxu0  ;;  %v2804_v18 = vmax.f32 %v1481_v21, 0.0  ;;  %v1485_v30 = vadd.f32 %v1484_v26, %v6244_v59  ;;  %v1486_v31 = vpop.f32.mrb[47].mxu1 }
 0x15f   : > { %v2803_v32 = vmax.f32 %v1290_v23, 0.0  ;;  %v1294_v33 = vadd.f32 %v1293_v29, %v6248_v60  ;;  %v2805_v34 = vmax.f32 %v1483_v25, 0.0  ;;  %v1487_v35 = vadd.f32 %v1486_v31, %v6254_v61 }
 0x160   : > { %v2977_v36 = vadd.f32 %v2976_v9, %v2802_v27  ;;  %v2816_v14 = vmax.f32 %v1292_v28, 0.0  ;;  %2008 = vmatmul.mubr.bf16.gmra.mrb[152].mxu0 %v5580_v37  ;;  %2201 = vmatmul.mubr.bf16.gmra.mrb[152].mxu1 %v5580_v37  ;;  %v3039_v38 = vadd.f32 %v3038_v10, %v2804_v18  ;;  %v2818_v39 = vmax.f32 %v1485_v30, 0.0 }
 0x161   : > { %v3008_v40 = vadd.f32 %v3007_v11, %v2803_v32  ;;  %v2817_v41 = vmax.f32 %v1294_v33, 0.0  ;;  %2017 = vmatprep.mubr.bf16.mxu0 %v5688_v2  ;;  %2210 = vmatprep.mubr.bf16.mxu1 %v5688_v2  ;;  %v3070_v42 = vadd.f32 %v3069_v13, %v2805_v34  ;;  %v2819_v43 = vmax.f32 %v1487_v35, 0.0 }
 0x162   : > { %v2978_v44 = vadd.f32 %v2977_v36, %v2816_v14  ;;  %v3040_v45 = vadd.f32 %v3039_v38, %v2818_v39 }
 0x163   : > { %v3009_v46 = vadd.f32 %v3008_v40, %v2817_v41  ;;  %v1297_v47 = vpop.f32.mrb[48].mxu0  ;;  %v3071_v48 = vadd.f32 %v3070_v42, %v2819_v43  ;;  %v1490_v17 = vpop.f32.mrb[48].mxu1 }
 0x164   : > { %v1298_v49 = vadd.f32 %v1297_v47, %v6240_v58  ;;  %v1299_v50 = vpop.f32.mrb[49].mxu0  ;;  %v1491_v51 = vadd.f32 %v1490_v17, %v6244_v59  ;;  %v1492_v55 = vpop.f32.mrb[49].mxu1  ;;  %v5582_v17 = vld [vmem:[%s5857_s17 + $0x40] sm:$0xff]  }
 0x165   : > { %v1300_v62 = vadd.f32 %v1299_v50, %v6248_v60  ;;  %v1301_v63 = vpop.f32.mrb[50].mxu0  ;;  %v1493_v0 = vadd.f32 %v1492_v55, %v6254_v61  ;;  %v1494_v1 = vpop.f32.mrb[50].mxu1 }
 0x166   : > { %v2830_v3 = vmax.f32 %v1298_v49, 0.0  ;;  %v1302_v4 = vadd.f32 %v1301_v63, %v6240_v58  ;;  %v1303_v19 = vpop.f32.mrb[51].mxu0  ;;  %v2832_v5 = vmax.f32 %v1491_v51, 0.0  ;;  %v1495_v6 = vadd.f32 %v1494_v1, %v6244_v59  ;;  %v1496_v7 = vpop.f32.mrb[51].mxu1 }
 0x167   : > { %v2831_v8 = vmax.f32 %v1300_v62, 0.0  ;;  %v1304_v9 = vadd.f32 %v1303_v19, %v6248_v60  ;;  %v2833_v10 = vmax.f32 %v1493_v0, 0.0  ;;  %v1497_v11 = vadd.f32 %v1496_v7, %v6254_v61 }
 0x168   : > { %v2979_v12 = vadd.f32 %v2978_v44, %v2830_v3  ;;  %v2844_v13 = vmax.f32 %v1302_v4, 0.0  ;;  %2018 = vmatmul.mubr.bf16.gmra.mrb[156].mxu0 %v5581_v15  ;;  %2211 = vmatmul.mubr.bf16.gmra.mrb[156].mxu1 %v5581_v15  ;;  %v3041_v16 = vadd.f32 %v3040_v45, %v2832_v5  ;;  %v2846_v20 = vmax.f32 %v1495_v6, 0.0 }
 0x169   : > { %v3010_v21 = vadd.f32 %v3009_v46, %v2831_v8  ;;  %v2845_v22 = vmax.f32 %v1304_v9, 0.0  ;;  %2027 = vmatprep.mubr.bf16.mxu0 %v5688_v2  ;;  %2220 = vmatprep.mubr.bf16.mxu1 %v5688_v2  ;;  %v3072_v23 = vadd.f32 %v3071_v48, %v2833_v10  ;;  %v2847_v24 = vmax.f32 %v1497_v11, 0.0 }
 0x16a   : > { %v2980_v25 = vadd.f32 %v2979_v12, %v2844_v13  ;;  %v3042_v26 = vadd.f32 %v3041_v16, %v2846_v20  ;;  %v435_v12 = vsub.s32 4, %v6225_v52  ;;  %v439_v13 = vsub.s32 5, %v6225_v52 }
 0x16b   : > { %v3011_v27 = vadd.f32 %v3010_v21, %v2845_v22  ;;  %v1307_v28 = vpop.f32.mrb[52].mxu0  ;;  %v3073_v29 = vadd.f32 %v3072_v23, %v2847_v24  ;;  %v1500_v18 = vpop.f32.mrb[52].mxu1 }
 0x16c   : > { %v1308_v30 = vadd.f32 %v1307_v28, %v6240_v58  ;;  %v1309_v31 = vpop.f32.mrb[53].mxu0  ;;  %v1501_v32 = vadd.f32 %v1500_v18, %v6244_v59  ;;  %v1502_v33 = vpop.f32.mrb[53].mxu1 }
 0x16d   : > { %v1310_v34 = vadd.f32 %v1309_v31, %v6248_v60  ;;  %v1311_v35 = vpop.f32.mrb[54].mxu0  ;;  %v1503_v36 = vadd.f32 %v1502_v33, %v6254_v61  ;;  %v1504_v14 = vpop.f32.mrb[54].mxu1  ;;  %v5583_v31 = vld [vmem:[%s5857_s17 + $0x48] sm:$0xff]  }
 0x16e   : > { %v2858_v37 = vmax.f32 %v1308_v30, 0.0  ;;  %v1312_v38 = vadd.f32 %v1311_v35, %v6240_v58  ;;  %v1313_v39 = vpop.f32.mrb[55].mxu0  ;;  %v2860_v40 = vmax.f32 %v1501_v32, 0.0  ;;  %v1505_v41 = vadd.f32 %v1504_v14, %v6244_v59  ;;  %v1506_v42 = vpop.f32.mrb[55].mxu1 }
 0x16f   : > { %v2859_v43 = vmax.f32 %v1310_v34, 0.0  ;;  %v1314_v44 = vadd.f32 %v1313_v39, %v6248_v60  ;;  %v2861_v45 = vmax.f32 %v1503_v36, 0.0  ;;  %v1507_v46 = vadd.f32 %v1506_v42, %v6254_v61 }
 0x170   : > { %v2981_v47 = vadd.f32 %v2980_v25, %v2858_v37  ;;  %v2872_v48 = vmax.f32 %v1312_v38, 0.0  ;;  %2028 = vmatmul.mubr.bf16.gmra.mrb[160].mxu0 %v5582_v17  ;;  %2221 = vmatmul.mubr.bf16.gmra.mrb[160].mxu1 %v5582_v17  ;;  %v3043_v49 = vadd.f32 %v3042_v26, %v2860_v40  ;;  %v2874_v50 = vmax.f32 %v1505_v41, 0.0 }
 0x171   : > { %v3012_v51 = vadd.f32 %v3011_v27, %v2859_v43  ;;  %v2873_v55 = vmax.f32 %v1314_v44, 0.0  ;;  %2037 = vmatprep.mubr.bf16.mxu0 %v5688_v2  ;;  %2230 = vmatprep.mubr.bf16.mxu1 %v5688_v2  ;;  %v3074_v62 = vadd.f32 %v3073_v29, %v2861_v45  ;;  %v2875_v63 = vmax.f32 %v1507_v46, 0.0  ;;  %v5584_v45 = vld [vmem:[%s7340_s2] sm:$0xff] }
 0x172   : > { %v2982_v0 = vadd.f32 %v2981_v47, %v2872_v48  ;;  %v3044_v1 = vadd.f32 %v3043_v49, %v2874_v50  ;;  %v6530_v46 = vrot.slane %v5584_v45, %v435_v12  ;;  %v6534_v47 = vrot.slane %v5584_v45, %v439_v13 }
 0x173   : > { %v3013_v3 = vadd.f32 %v3012_v51, %v2873_v55  ;;  %v1317_v4 = vpop.f32.mrb[56].mxu0  ;;  %v3075_v19 = vadd.f32 %v3074_v62, %v2875_v63  ;;  %v1510_v5 = vpop.f32.mrb[56].mxu1  ;;  %v443_v62 = vsub.s32 6, %v6225_v52  ;;  %v447_v63 = vsub.s32 7, %v6225_v52 }
 0x174   : > { %v1318_v6 = vadd.f32 %v1317_v4, %v6240_v58  ;;  %v1319_v7 = vpop.f32.mrb[57].mxu0  ;;  %v1511_v8 = vadd.f32 %v1510_v5, %v6244_v59  ;;  %v1512_v9 = vpop.f32.mrb[57].mxu1 }
 0x175   : > { %v1320_v10 = vadd.f32 %v1319_v7, %v6248_v60  ;;  %v1321_v11 = vpop.f32.mrb[58].mxu0  ;;  %v1513_v15 = vadd.f32 %v1512_v9, %v6254_v61  ;;  %v1514_v16 = vpop.f32.mrb[58].mxu1 }
 0x176   : > { %v2886_v20 = vmax.f32 %v1318_v6, 0.0  ;;  %v1322_v21 = vadd.f32 %v1321_v11, %v6240_v58  ;;  %v1323_v22 = vpop.f32.mrb[59].mxu0  ;;  %v2888_v23 = vmax.f32 %v1511_v8, 0.0  ;;  %v1515_v24 = vadd.f32 %v1514_v16, %v6244_v59  ;;  %v1516_v25 = vpop.f32.mrb[59].mxu1 }
 0x177   : > { %v2887_v26 = vmax.f32 %v1320_v10, 0.0  ;;  %v1324_v27 = vadd.f32 %v1323_v22, %v6248_v60  ;;  %v2889_v28 = vmax.f32 %v1513_v15, 0.0  ;;  %v1517_v29 = vadd.f32 %v1516_v25, %v6254_v61  ;;  %v5585_v15 = vld [vmem:[%s5857_s17 + $0x50] sm:$0xff]  }
 0x178   : > { %v2983_v18 = vadd.f32 %v2982_v0, %v2886_v20  ;;  %v2900_v30 = vmax.f32 %v1322_v21, 0.0  ;;  %2038 = vmatmul.mubr.bf16.gmra.mrb[164].mxu0 %v5583_v31  ;;  %2231 = vmatmul.mubr.bf16.gmra.mrb[164].mxu1 %v5583_v31  ;;  %v3045_v32 = vadd.f32 %v3044_v1, %v2888_v23  ;;  %v2902_v33 = vmax.f32 %v1515_v24, 0.0 }
 0x179   : > { %v3014_v34 = vadd.f32 %v3013_v3, %v2887_v26  ;;  %v2901_v35 = vmax.f32 %v1324_v27, 0.0  ;;  %2047 = vmatprep.mubr.bf16.mxu0 %v5688_v2  ;;  %2240 = vmatprep.mubr.bf16.mxu1 %v5688_v2  ;;  %v3076_v36 = vadd.f32 %v3075_v19, %v2889_v28  ;;  %v2903_v14 = vmax.f32 %v1517_v29, 0.0 }
 0x17a   : > { %v2984_v37 = vadd.f32 %v2983_v18, %v2900_v30  ;;  %v3046_v38 = vadd.f32 %v3045_v32, %v2902_v33  ;;  %v6550_v26 = vrot.slane %v5584_v45, %v443_v62  ;;  %v6553_v30 = vrot.slane %v5584_v45, %v447_v63 }
 0x17b   : > { %v3015_v39 = vadd.f32 %v3014_v34, %v2901_v35  ;;  %v1327_v40 = vpop.f32.mrb[60].mxu0  ;;  %v3077_v41 = vadd.f32 %v3076_v36, %v2903_v14  ;;  %v1520_v42 = vpop.f32.mrb[60].mxu1 }
 0x17c   : > { %v1328_v43 = vadd.f32 %v1327_v40, %v6240_v58  ;;  %v1329_v44 = vpop.f32.mrb[61].mxu0  ;;  %v1521_v48 = vadd.f32 %v1520_v42, %v6244_v59  ;;  %v1522_v17 = vpop.f32.mrb[61].mxu1 }
 0x17d   : > { %v1330_v49 = vadd.f32 %v1329_v44, %v6248_v60  ;;  %v1331_v50 = vpop.f32.mrb[62].mxu0  ;;  %v1523_v51 = vadd.f32 %v1522_v17, %v6254_v61  ;;  %v1524_v55 = vpop.f32.mrb[62].mxu1  ;;  %v5586_v17 = vld [vmem:[%s5857_s17 + $0x58] sm:$0xff]  }
 0x17e   : > { %v2914_v0 = vmax.f32 %v1328_v43, 0.0  ;;  %v1332_v1 = vadd.f32 %v1331_v50, %v6240_v58  ;;  %v1333_v3 = vpop.f32.mrb[63].mxu0  ;;  %v2916_v4 = vmax.f32 %v1521_v48, 0.0  ;;  %v1525_v19 = vadd.f32 %v1524_v55, %v6244_v59  ;;  %v1526_v5 = vpop.f32.mrb[63].mxu1 }
 0x17f   : > { %v2915_v6 = vmax.f32 %v1330_v49, 0.0  ;;  %v1334_v7 = vadd.f32 %v1333_v3, %v6248_v60  ;;  %v2917_v8 = vmax.f32 %v1523_v51, 0.0  ;;  %v1527_v9 = vadd.f32 %v1526_v5, %v6254_v61 }
 0x180   : > { %v2985_v10 = vadd.f32 %v2984_v37, %v2914_v0  ;;  %v2928_v11 = vmax.f32 %v1332_v1, 0.0  ;;  %2048 = vmatmul.mubr.bf16.gmra.mrb[168].mxu0 %v5585_v15  ;;  %2241 = vmatmul.mubr.bf16.gmra.mrb[168].mxu1 %v5585_v15  ;;  %v3047_v16 = vadd.f32 %v3046_v38, %v2916_v4  ;;  %v2930_v20 = vmax.f32 %v1525_v19, 0.0 }
 0x181   : > { %v3016_v21 = vadd.f32 %v3015_v39, %v2915_v6  ;;  %v2929_v58 = vmax.f32 %v1334_v7, 0.0  ;;  %2057 = vmatprep.mubr.bf16.mxu0 %v5688_v2  ;;  %2250 = vmatprep.mubr.bf16.mxu1 %v5688_v2  ;;  %v3078_v59 = vadd.f32 %v3077_v41, %v2917_v8  ;;  %v2931_v22 = vmax.f32 %v1527_v9, 0.0 }
 0x182   : > { %v2986_v23 = vadd.f32 %v2985_v10, %v2928_v11  ;;  %v6548_v60 = vadd.f32 %v3047_v16, %v2930_v20 }
 0x183   : > { %v3017_v24 = vadd.f32 %v3016_v21, %v2929_v58  ;;  %v1563_v61 = vpop.f32.mrb[64].mxu0  ;;  %v3079_v25 = vadd.f32 %v3078_v59, %v2931_v22  ;;  %v1756_v27 = vpop.f32.mrb[64].mxu1 }
 0x184   : > { %v3435_v28 = vrot.slane %v2986_v23, 4  ;;  %v1564_v29 = vadd.f32 %v1563_v61, %v6530_v46  ;;  %v1565_v18 = vpop.f32.mrb[65].mxu0  ;;  %v1758_v31 = vpop.f32.mrb[65].mxu1  ;;  %v1757_v43 = vadd.f32 %v1756_v27, %v6550_v26  ;;  %v3447_v9 = vrot.slane %v6548_v60, 4 }
 0x185   : > { %v3441_v32 = vrot.slane %v3017_v24, 4  ;;  %v1566_v33 = vadd.f32 %v1565_v18, %v6534_v47  ;;  %v1567_v34 = vpop.f32.mrb[66].mxu0  ;;  %v3453_v35 = vrot.slane %v3079_v25, 4  ;;  %v1760_v36 = vpop.f32.mrb[66].mxu1  ;;  %v1759_v49 = vadd.f32 %v1758_v31, %v6553_v30 }
 0x186   : > { %v3436_v14 = vadd.f32 %v3435_v28, %v2986_v23  ;;  %v1568_v37 = vadd.f32 %v1567_v34, %v6530_v46  ;;  %v1569_v38 = vpop.f32.mrb[67].mxu0  ;;  %v1762_v39 = vpop.f32.mrb[67].mxu1  ;;  %v2498_v45 = vmax.f32 %v1564_v29, 0.0  ;;  %v1761_v1 = vadd.f32 %v1760_v36, %v6550_v26 }
 0x187   : > { %v3442_v40 = vadd.f32 %v3441_v32, %v3017_v24  ;;  %v1570_v41 = vadd.f32 %v1569_v38, %v6534_v47  ;;  %v3454_v42 = vadd.f32 %v3453_v35, %v3079_v25  ;;  %v2499_v51 = vmax.f32 %v1566_v33, 0.0  ;;  %v5587_v33 = vld [vmem:[%s5857_s17 + $0x60] sm:$0xff]  }
 0x188   : > { %v3437_v44 = vrot.slane %v3436_v14, 2  ;;  %v2512_v48 = vmax.f32 %v1568_v37, 0.0  ;;  %2058 = vmatmul.mubr.bf16.gmra.mrb[172].mxu0 %v5586_v17  ;;  %2251 = vmatmul.mubr.bf16.gmra.mrb[172].mxu1 %v5586_v17  ;;  %v1763_v5 = vadd.f32 %v1762_v39, %v6553_v30  ;;  %v2500_v20 = vmax.f32 %v1757_v43, 0.0 }
 0x189   : > { %v3443_v50 = vrot.slane %v3442_v40, 2  ;;  %v2513_v55 = vmax.f32 %v1570_v41, 0.0  ;;  %2067 = vmatprep.mubr.bf16.mxu0 %v5688_v2  ;;  %2260 = vmatprep.mubr.bf16.mxu1 %v5688_v2  ;;  %v3455_v62 = vrot.slane %v3454_v42, 2  ;;  %v2501_v21 = vmax.f32 %v1759_v49, 0.0 }
 0x18a   : > { %v3438_v63 = vadd.f32 %v3437_v44, %v3436_v14  ;;  %v3080_v0 = vadd.f32 %v2512_v48, %v2498_v45  ;;  %v2514_v61 = vmax.f32 %v1761_v1, 0.0  ;;  %v2515_v18 = vmax.f32 %v1763_v5, 0.0 }
 0x18b   : > { %v3111_v3 = vadd.f32 %v2513_v55, %v2499_v51  ;;  %v1573_v4 = vpop.f32.mrb[68].mxu0  ;;  %v3444_v19 = vadd.f32 %v3443_v50, %v3442_v40  ;;  %v1766_v6 = vpop.f32.mrb[68].mxu1  ;;  %v6568_v16 = vadd.f32 %v3455_v62, %v3454_v42  ;;  %v6576_v14 = vadd.f32 %v3447_v9, %v6548_v60 }
 0x18c   : > { %v1574_v7 = vadd.f32 %v1573_v4, %v6530_v46  ;;  %v1575_v8 = vpop.f32.mrb[69].mxu0  ;;  %v1768_v10 = vpop.f32.mrb[69].mxu1  ;;  %v3439_v59 = vrot.slane %v3438_v63, 1  ;;  %v3142_v38 = vadd.f32 %v2514_v61, %v2500_v20  ;;  %v3173_v43 = vadd.f32 %v2515_v18, %v2501_v21  ;;  %v5588_v21 = vld [vmem:[%s5857_s17 + $0x68] sm:$0xff]  }
 0x18d   : > { %v1576_v11 = vadd.f32 %v1575_v8, %v6534_v47  ;;  %v1577_v15 = vpop.f32.mrb[70].mxu0  ;;  %v1770_v58 = vpop.f32.mrb[70].mxu1  ;;  %v3445_v29 = vrot.slane %v3444_v19, 1  ;;  %v3457_v37 = vrot.slane %v6568_v16, 1  ;;  %v1767_v17 = vadd.f32 %v1766_v6, %v6550_v26 }
 0x18e   : > { %v2526_v22 = vmax.f32 %v1574_v7, 0.0  ;;  %v1578_v23 = vadd.f32 %v1577_v15, %v6530_v46  ;;  %v1579_v24 = vpop.f32.mrb[71].mxu0  ;;  %v1772_v25 = vpop.f32.mrb[71].mxu1  ;;  %v6579_v39 = vadd.f32 %v3439_v59, %v3438_v63  ;;  %v1769_v49 = vadd.f32 %v1768_v10, %v6553_v30 }
 0x18f   : > { %v2527_v27 = vmax.f32 %v1576_v11, 0.0  ;;  %v1580_v28 = vadd.f32 %v1579_v24, %v6534_v47  ;;  %v3446_v42 = vadd.f32 %v3445_v29, %v3444_v19  ;;  %v1771_v60 = vadd.f32 %v1770_v58, %v6550_v26 }
 0x190   : > { %v3081_v31 = vadd.f32 %v3080_v0, %v2526_v22  ;;  %v2540_v32 = vmax.f32 %v1578_v23, 0.0  ;;  %2068 = vmatmul.mubr.bf16.gmra.mrb[176].mxu0 %v5587_v33  ;;  %2261 = vmatmul.mubr.bf16.gmra.mrb[176].mxu1 %v5587_v33  ;;  %v1773_v62 = vadd.f32 %v1772_v25, %v6553_v30  ;;  %v2528_v5 = vmax.f32 %v1767_v17, 0.0 }
 0x191   : > { %v3112_v34 = vadd.f32 %v3111_v3, %v2527_v27  ;;  %v2541_v35 = vmax.f32 %v1580_v28, 0.0  ;;  %2077 = vmatprep.mubr.bf16.mxu0 %v5688_v2  ;;  %2270 = vmatprep.mubr.bf16.mxu1 %v5688_v2  ;;  %v2529_v6 = vmax.f32 %v1769_v49, 0.0  ;;  %v2542_v10 = vmax.f32 %v1771_v60, 0.0 }
 0x192   : > { %v3082_v36 = vadd.f32 %v3081_v31, %v2540_v32  ;;  %v2543_v11 = vmax.f32 %v1773_v62, 0.0  ;;  %v3143_v58 = vadd.f32 %v3142_v38, %v2528_v5  ;;  %v6595_v32 = vmul.f32 0.00390625, %v3446_v42  ;;  %v5589_v5 = vld [vmem:[%s5857_s17 + $0x70] sm:$0xff]  }
 0x193   : > { %v3113_v40 = vadd.f32 %v3112_v34, %v2541_v35  ;;  %v1583_v41 = vpop.f32.mrb[72].mxu0  ;;  %v1776_v44 = vpop.f32.mrb[72].mxu1  ;;  %v3174_v59 = vadd.f32 %v3173_v43, %v2529_v6  ;;  %v3458_v33 = vadd.f32 %v3457_v37, %v6568_v16 }
 0x194   : > { %v1584_v45 = vadd.f32 %v1583_v41, %v6530_v46  ;;  %v1585_v48 = vpop.f32.mrb[73].mxu0  ;;  %v1778_v50 = vpop.f32.mrb[73].mxu1  ;;  %v1777_v63 = vadd.f32 %v1776_v44, %v6550_v26  ;;  %v3144_v27 = vadd.f32 %v3143_v58, %v2542_v10 }
 0x195   : > { %v1586_v51 = vadd.f32 %v1585_v48, %v6534_v47  ;;  %v1587_v55 = vpop.f32.mrb[74].mxu0  ;;  %v1779_v0 = vadd.f32 %v1778_v50, %v6553_v30  ;;  %v1780_v1 = vpop.f32.mrb[74].mxu1  ;;  %v3175_v28 = vadd.f32 %v3174_v59, %v2543_v11  ;;  %v3449_v59 = vrot.slane %v6576_v14, 2 }
 0x196   : > { %v2554_v3 = vmax.f32 %v1584_v45, 0.0  ;;  %v1588_v4 = vadd.f32 %v1587_v55, %v6530_v46  ;;  %v1589_v19 = vpop.f32.mrb[75].mxu0  ;;  %v1782_v7 = vpop.f32.mrb[75].mxu1  ;;  %v2556_v24 = vmax.f32 %v1777_v63, 0.0  ;;  %v1781_v29 = vadd.f32 %v1780_v1, %v6550_v26 }
 0x197   : > { %v2555_v8 = vmax.f32 %v1586_v51, 0.0  ;;  %v1590_v9 = vadd.f32 %v1589_v19, %v6534_v47  ;;  %v2557_v61 = vmax.f32 %v1779_v0, 0.0  ;;  %v1783_v34 = vadd.f32 %v1782_v7, %v6553_v30 }
 0x198   : > { %v3083_v15 = vadd.f32 %v3082_v36, %v2554_v3  ;;  %v2568_v20 = vmax.f32 %v1588_v4, 0.0  ;;  %2078 = vmatmul.mubr.bf16.gmra.mrb[180].mxu0 %v5588_v21  ;;  %2271 = vmatmul.mubr.bf16.gmra.mrb[180].mxu1 %v5588_v21  ;;  %v2570_v43 = vmax.f32 %v1781_v29, 0.0 }
 0x199   : > { %v3114_v22 = vadd.f32 %v3113_v40, %v2555_v8  ;;  %v2569_v23 = vmax.f32 %v1590_v9, 0.0  ;;  %2087 = vmatprep.mubr.bf16.mxu0 %v5688_v2  ;;  %2280 = vmatprep.mubr.bf16.mxu1 %v5688_v2  ;;  %v3145_v40 = vadd.f32 %v3144_v27, %v2556_v24  ;;  %v3176_v41 = vadd.f32 %v3175_v28, %v2557_v61 }
 0x19a   : > { %v3084_v25 = vadd.f32 %v3083_v15, %v2568_v20  ;;  %v2571_v17 = vmax.f32 %v1783_v34, 0.0  ;;  %v6612_v61 = vmul.f32 0.00390625, %v6579_v39  ;;  %v6615_v28 = vmul.f32 0.00390625, %v3458_v33 }
 0x19b   : > { %v3115_v18 = vadd.f32 %v3114_v22, %v2569_v23  ;;  %v1593_v31 = vpop.f32.mrb[76].mxu0  ;;  %v1786_v35 = vpop.f32.mrb[76].mxu1  ;;  %v3146_v51 = vadd.f32 %v3145_v40, %v2570_v43 }
 0x19c   : > { %v1594_v36 = vadd.f32 %v1593_v31, %v6530_v46  ;;  %v1595_v38 = vpop.f32.mrb[77].mxu0  ;;  %v1788_v44 = vpop.f32.mrb[77].mxu1  ;;  %v1787_v42 = vadd.f32 %v1786_v35, %v6550_v26  ;;  %v3177_v1 = vadd.f32 %v3176_v41, %v2571_v17  ;;  %v3534_v35 = vpack.c.bf16 %v6595_v32, %v6595_v32 }
 0x19d   : > { %v1596_v45 = vadd.f32 %v1595_v38, %v6534_v47  ;;  %v1597_v48 = vpop.f32.mrb[78].mxu0  ;;  %v1789_v49 = vadd.f32 %v1788_v44, %v6553_v30  ;;  %v1790_v16 = vpop.f32.mrb[78].mxu1 }
 0x19e   : > { %v2582_v37 = vmax.f32 %v1594_v36, 0.0  ;;  %v1598_v60 = vadd.f32 %v1597_v48, %v6530_v46  ;;  %v1599_v50 = vpop.f32.mrb[79].mxu0  ;;  %v1791_v55 = vadd.f32 %v1790_v16, %v6550_v26  ;;  %v1792_v62 = vpop.f32.mrb[79].mxu1  ;;  %v2584_v3 = vmax.f32 %v1787_v42, 0.0 }
 0x19f   : > { %v2583_v63 = vmax.f32 %v1596_v45, 0.0  ;;  %v1600_v0 = vadd.f32 %v1599_v50, %v6534_v47  ;;  %v2585_v6 = vmax.f32 %v1789_v49, 0.0  ;;  %v1793_v11 = vadd.f32 %v1792_v62, %v6553_v30 }
 0x1a0   : > { %v3085_v4 = vadd.f32 %v3084_v25, %v2582_v37  ;;  %v2596_v19 = vmax.f32 %v1598_v60, 0.0  ;;  %2088 = vmatmul.mubr.bf16.gmra.mrb[184].mxu0 %v5589_v5  ;;  %2281 = vmatmul.mubr.bf16.gmra.mrb[184].mxu1 %v5589_v5  ;;  %v2598_v7 = vmax.f32 %v1791_v55, 0.0  ;;  %v3147_v10 = vadd.f32 %v3146_v51, %v2584_v3  ;;  %v5590_v37 = vld [vmem:[%s5857_s17 + $0x78] sm:$0xff]  }
 0x1a1   : > { %v3116_v8 = vadd.f32 %v3115_v18, %v2583_v63  ;;  %v2597_v9 = vmax.f32 %v1600_v0, 0.0  ;;  %2097 = vmatprep.mubr.bf16.mxu0 %v5688_v2  ;;  %2290 = vmatprep.mubr.bf16.mxu1 %v5688_v2  ;;  %v3178_v20 = vadd.f32 %v3177_v1, %v2585_v6  ;;  %v2599_v23 = vmax.f32 %v1793_v11, 0.0 }
 0x1a2   : > { %v3086_v15 = vadd.f32 %v3085_v4, %v2596_v19  ;;  %v3148_v22 = vadd.f32 %v3147_v10, %v2598_v7  ;;  %v3533_v11 = vpack.c.bf16 %v6612_v61, %v6612_v61  ;;  %v5478_v61 = vld [vmem:[%s7341_s3 + $0xc8] sm:$0xff]  }
 0x1a3   : > { %v3117_v21 = vadd.f32 %v3116_v8, %v2597_v9  ;;  %v1603_v58 = vpop.f32.mrb[80].mxu0  ;;  %v1796_v24 = vpop.f32.mrb[80].mxu1  ;;  %v3179_v36 = vadd.f32 %v3178_v20, %v2599_v23  ;;  %v6630_v8 = vadd.f32 %v3449_v59, %v6576_v14 }
 0x1a4   : > { %v1604_v25 = vadd.f32 %v1603_v58, %v6530_v46  ;;  %v1605_v27 = vpop.f32.mrb[81].mxu0  ;;  %v1797_v29 = vadd.f32 %v1796_v24, %v6550_v26  ;;  %v1798_v18 = vpop.f32.mrb[81].mxu1  ;;  %v3536_v58 = vpack.c.bf16 %v6615_v28, %v6615_v28 }
 0x1a5   : > { %v1606_v31 = vadd.f32 %v1605_v27, %v6534_v47  ;;  %v1607_v34 = vpop.f32.mrb[82].mxu0  ;;  %v1799_v38 = vadd.f32 %v1798_v18, %v6553_v30  ;;  %v1800_v39 = vpop.f32.mrb[82].mxu1 }
 0x1a6   : > { %v2610_v40 = vmax.f32 %v1604_v25, 0.0  ;;  %v1608_v41 = vadd.f32 %v1607_v34, %v6530_v46  ;;  %v1609_v43 = vpop.f32.mrb[83].mxu0  ;;  %v2612_v33 = vmax.f32 %v1797_v29, 0.0  ;;  %v1801_v44 = vadd.f32 %v1800_v39, %v6550_v26  ;;  %v1802_v45 = vpop.f32.mrb[83].mxu1 }
 0x1a7   : > { %v2611_v48 = vmax.f32 %v1606_v31, 0.0  ;;  %v1610_v17 = vadd.f32 %v1609_v43, %v6534_v47  ;;  %v2613_v42 = vmax.f32 %v1799_v38, 0.0  ;;  %v1803_v49 = vadd.f32 %v1802_v45, %v6553_v30  ;;  %v5591_v38 = vld [vmem:[%s5857_s17] sm:$0xff]  }
 0x1a8   : > { %v3087_v32 = vadd.f32 %v3086_v15, %v2610_v40  ;;  %v2624_v16 = vmax.f32 %v1608_v41, 0.0  ;;  %2098 = vmatmul.mubr.bf16.gmra.mrb[188].mxu0 %v5590_v37  ;;  %2291 = vmatmul.mubr.bf16.gmra.mrb[188].mxu1 %v5590_v37  ;;  %v3149_v60 = vadd.f32 %v3148_v22, %v2612_v33  ;;  %v2626_v50 = vmax.f32 %v1801_v44, 0.0  ;;  %v5479_v33 = vld [vmem:[%s7341_s3 + $0x88] sm:$0xff]  }
 0x1a9   : > { %v3118_v51 = vadd.f32 %v3117_v21, %v2611_v48  ;;  %v2625_v55 = vmax.f32 %v1610_v17, 0.0  ;;  %4476 = vmatprep.mubr.bf16.mxu1 %v3534_v35  ;;  %2333 = vmatprep.mubr.bf16.mxu0 %v5688_v2  ;;  %v3180_v62 = vadd.f32 %v3179_v36, %v2613_v42  ;;  %v2627_v63 = vmax.f32 %v1803_v49, 0.0  ;;  %v5477_v21 = vld [vmem:[%s7341_s3 + $0x80] sm:$0xff]   ;;  %v5480_v17 = vld [vmem:[%s7341_s3 + $0xd0] sm:$0xff]  }
 0x1aa   : > { %v3088_v0 = vadd.f32 %v3087_v32, %v2624_v16  ;;  %v3150_v1 = vadd.f32 %v3149_v60, %v2626_v50 }
 0x1ab   : > { %v3119_v3 = vadd.f32 %v3118_v51, %v2625_v55  ;;  %v1613_v4 = vpop.f32.mrb[84].mxu0  ;;  %v3181_v19 = vadd.f32 %v3180_v62, %v2627_v63  ;;  %v1806_v5 = vpop.f32.mrb[84].mxu1 }
 0x1ac   : > { %v1614_v6 = vadd.f32 %v1613_v4, %v6530_v46  ;;  %v1615_v7 = vpop.f32.mrb[85].mxu0  ;;  %v1807_v9 = vadd.f32 %v1806_v5, %v6550_v26  ;;  %v1808_v10 = vpop.f32.mrb[85].mxu1 }
 0x1ad   : > { %v1616_v15 = vadd.f32 %v1615_v7, %v6534_v47  ;;  %v1617_v20 = vpop.f32.mrb[86].mxu0  ;;  %v1809_v14 = vadd.f32 %v1808_v10, %v6553_v30  ;;  %v1810_v59 = vpop.f32.mrb[86].mxu1  ;;  %v5482_v7 = vld [vmem:[%s7341_s3 + $0xd8] sm:$0xff]  }
 0x1ae   : > { %v2638_v22 = vmax.f32 %v1614_v6, 0.0  ;;  %v1618_v23 = vadd.f32 %v1617_v20, %v6530_v46  ;;  %v1619_v24 = vpop.f32.mrb[87].mxu0  ;;  %v2640_v25 = vmax.f32 %v1807_v9, 0.0  ;;  %v1811_v27 = vadd.f32 %v1810_v59, %v6550_v26  ;;  %v1812_v29 = vpop.f32.mrb[87].mxu1 }
 0x1af   : > { %v2639_v18 = vmax.f32 %v1616_v15, 0.0  ;;  %v1620_v31 = vadd.f32 %v1619_v24, %v6534_v47  ;;  %v2641_v28 = vmax.f32 %v1809_v14, 0.0  ;;  %v1813_v34 = vadd.f32 %v1812_v29, %v6553_v30 }
 0x1b0   : > { %v3089_v35 = vadd.f32 %v3088_v0, %v2638_v22  ;;  %v2652_v36 = vmax.f32 %v1618_v23, 0.0  ;;  %2334 = vmatmul.mubr.bf16.vlgmr.msra.gmra.mrb[192].mxu0 %v5591_v38  ;;  %4477 = vmatmul.mubr.bf16.vlgmr.msra.gmra.mrb[192].mxu1 %v3533_v11  ;;  %v3151_v39 = vadd.f32 %v3150_v1, %v2640_v25  ;;  %v2654_v40 = vmax.f32 %v1811_v27, 0.0  ;;  %v5481_v1 = vld [vmem:[%s7341_s3 + $0x90] sm:$0xff]   ;;  %v5592_v22 = vld [vmem:[%s5857_s17 + $0x8] sm:$0xff]   ;;  %v5483_v27 = vld [vmem:[%s7341_s3 + $0x98] sm:$0xff]  }
 0x1b1   : > { %v3120_v41 = vadd.f32 %v3119_v3, %v2639_v18  ;;  %v2653_v43 = vmax.f32 %v1620_v31, 0.0  ;;  %5089 = vmatpush3.bf16.msra.mxu1 %v5477_v21  ;;  %2343 = vmatprep.mubr.bf16.mxu0 %v5688_v2  ;;  %v3182_v44 = vadd.f32 %v3181_v19, %v2641_v28  ;;  %v2655_v45 = vmax.f32 %v1813_v34, 0.0  ;;  %v5484_v28 = vld [vmem:[%s7341_s3 + $0xe0] sm:$0xff]  }
 0x1b2   : > { %v3090_v48 = vadd.f32 %v3089_v35, %v2652_v36  ;;  %5090 = vmatprep.subr.bf16.mxu1 %v5478_v61  ;;  %4516 = vmatprep.mubr.bf16.mxu1 %v3536_v58  ;;  %v3152_v42 = vadd.f32 %v3151_v39, %v2654_v40  ;;  %v3451_v0 = vrot.slane %v6630_v8, 1 }
 0x1b3   : > { %v3121_v49 = vadd.f32 %v3120_v41, %v2653_v43  ;;  %v1623_v32 = vpop.f32.mrb[88].mxu0  ;;  %v3183_v16 = vadd.f32 %v3182_v44, %v2655_v45  ;;  %v1816_v37 = vpop.f32.mrb[88].mxu1 }
 0x1b4   : > { %v1624_v60 = vadd.f32 %v1623_v32, %v6530_v46  ;;  %v1625_v50 = vpop.f32.mrb[89].mxu0  ;;  %v1817_v51 = vadd.f32 %v1816_v37, %v6550_v26  ;;  %v1818_v55 = vpop.f32.mrb[89].mxu1 }
 0x1b5   : > { %v1626_v62 = vadd.f32 %v1625_v50, %v6534_v47  ;;  %5091 = vmatpush3.bf16.msra.mxu1 %v5479_v33  ;;  %v1627_v63 = vpop.f32.mrb[90].mxu0  ;;  %v1819_v3 = vadd.f32 %v1818_v55, %v6553_v30  ;;  %v1820_v4 = vpop.f32.mrb[90].mxu1 }
 0x1b6   : > { %v2666_v19 = vmax.f32 %v1624_v60, 0.0  ;;  %v1628_v5 = vadd.f32 %v1627_v63, %v6530_v46  ;;  %v1629_v6 = vpop.f32.mrb[91].mxu0  ;;  %5092 = vmatprep.subr.bf16.mxu1 %v5480_v17  ;;  %v2668_v9 = vmax.f32 %v1817_v51, 0.0  ;;  %v1821_v10 = vadd.f32 %v1820_v4, %v6550_v26  ;;  %v1822_v11 = vpop.f32.mrb[91].mxu1  ;;  %v5486_v60 = vld [vmem:[%s7341_s3 + $0xe8] sm:$0xff]   ;;  %v5593_v4 = vld [vmem:[%s5857_s17 + $0x10] sm:$0xff]  }
 0x1b7   : > { %v2667_v15 = vmax.f32 %v1626_v62, 0.0  ;;  %v1630_v20 = vadd.f32 %v1629_v6, %v6534_v47  ;;  %v2669_v21 = vmax.f32 %v1819_v3, 0.0  ;;  %v1823_v58 = vadd.f32 %v1822_v11, %v6553_v30 }
 0x1b8   : > { %v3091_v14 = vadd.f32 %v3090_v48, %v2666_v19  ;;  %v2680_v59 = vmax.f32 %v1628_v5, 0.0  ;;  %2344 = vmatmul.mubr.bf16.gmra.mrb[196].mxu0 %v5592_v22  ;;  %v3153_v23 = vadd.f32 %v3152_v42, %v2668_v9  ;;  %v2682_v24 = vmax.f32 %v1821_v10, 0.0  ;;  %v5485_v48 = vld [vmem:[%s7341_s3 + $0xa0] sm:$0xff]   ;;  %v5487_v9 = vld [vmem:[%s7341_s3 + $0xa8] sm:$0xff]  }
 0x1b9   : > { %v3122_v61 = vadd.f32 %v3121_v49, %v2667_v15  ;;  %v2681_v25 = vmax.f32 %v1630_v20, 0.0  ;;  %5093 = vmatpush3.bf16.msra.mxu1 %v5481_v1  ;;  %2353 = vmatprep.mubr.bf16.mxu0 %v5688_v2  ;;  %v3184_v29 = vadd.f32 %v3183_v16, %v2669_v21  ;;  %v2683_v18 = vmax.f32 %v1823_v58, 0.0  ;;  %v5488_v20 = vld [vmem:[%s7341_s3 + $0xf0] sm:$0xff]  }
 0x1ba   : > { %v3092_v31 = vadd.f32 %v3091_v14, %v2680_v59  ;;  %5094 = vmatprep.subr.bf16.mxu1 %v5482_v7  ;;  %v3154_v34 = vadd.f32 %v3153_v23, %v2682_v24  ;;  %v3452_v17 = vadd.f32 %v3451_v0, %v6630_v8 }
 0x1bb   : > { %v3123_v35 = vadd.f32 %v3122_v61, %v2681_v25  ;;  %v1633_v36 = vpop.f32.mrb[92].mxu0  ;;  %v3185_v38 = vadd.f32 %v3184_v29, %v2683_v18  ;;  %v1826_v39 = vpop.f32.mrb[92].mxu1  ;;  %v5489_v18 = vld [vmem:[%s7341_s3 + $0xb0] sm:$0xff]  }
 0x1bc   : > { %v1634_v40 = vadd.f32 %v1633_v36, %v6530_v46  ;;  %v1635_v41 = vpop.f32.mrb[93].mxu0  ;;  %v1827_v43 = vadd.f32 %v1826_v39, %v6550_v26  ;;  %v1828_v33 = vpop.f32.mrb[93].mxu1  ;;  %v5490_v39 = vld [vmem:[%s7341_s3 + $0xf8] sm:$0xff]  }
 0x1bd   : > { %v1636_v44 = vadd.f32 %v1635_v41, %v6534_v47  ;;  %5095 = vmatpush3.bf16.msra.mxu1 %v5483_v27  ;;  %v1637_v45 = vpop.f32.mrb[94].mxu0  ;;  %v1829_v42 = vadd.f32 %v1828_v33, %v6553_v30  ;;  %v1830_v49 = vpop.f32.mrb[94].mxu1 }
 0x1be   : > { %v2694_v32 = vmax.f32 %v1634_v40, 0.0  ;;  %v1638_v16 = vadd.f32 %v1637_v45, %v6530_v46  ;;  %v1639_v37 = vpop.f32.mrb[95].mxu0  ;;  %5096 = vmatprep.subr.bf16.mxu1 %v5484_v28  ;;  %v2696_v50 = vmax.f32 %v1827_v43, 0.0  ;;  %v1831_v51 = vadd.f32 %v1830_v49, %v6550_v26  ;;  %v1832_v55 = vpop.f32.mrb[95].mxu1  ;;  %v5594_v49 = vld [vmem:[%s5857_s17 + $0x18] sm:$0xff]  }
 0x1bf   : > { %v2695_v62 = vmax.f32 %v1636_v44, 0.0  ;;  %v1640_v8 = vadd.f32 %v1639_v37, %v6534_v47  ;;  %v2697_v63 = vmax.f32 %v1829_v42, 0.0  ;;  %v1833_v0 = vadd.f32 %v1832_v55, %v6553_v30 }
 0x1c0   : > { %v3093_v1 = vadd.f32 %v3092_v31, %v2694_v32  ;;  %v2708_v3 = vmax.f32 %v1638_v16, 0.0  ;;  %2354 = vmatmul.mubr.bf16.gmra.mrb[200].mxu0 %v5593_v4  ;;  %v3155_v19 = vadd.f32 %v3154_v34, %v2696_v50  ;;  %v2710_v5 = vmax.f32 %v1831_v51, 0.0  ;;  %v5491_v50 = vld [vmem:[%s7341_s3 + $0xb8] sm:$0xff]  }
 0x1c1   : > { %v3124_v6 = vadd.f32 %v3123_v35, %v2695_v62  ;;  %v2709_v7 = vmax.f32 %v1640_v8, 0.0  ;;  %5097 = vmatpush3.bf16.msra.mxu1 %v5485_v48  ;;  %2363 = vmatprep.mubr.bf16.mxu0 %v5688_v2  ;;  %v3186_v10 = vadd.f32 %v3185_v38, %v2697_v63  ;;  %v2711_v11 = vmax.f32 %v1833_v0, 0.0  ;;  %v5492_v8 = vld [vmem:[%s7341_s3 + $0x140] sm:$0xff]  }
 0x1c2   : > { %v3094_v15 = vadd.f32 %v3093_v1, %v2708_v3  ;;  %5098 = vmatprep.subr.bf16.mxu1 %v5486_v60  ;;  %v3156_v21 = vadd.f32 %v3155_v19, %v2710_v5  ;;  %v3521_v31 = vmul.f32 0.00390625, %v3452_v17 }
 0x1c3   : > { %v3125_v58 = vadd.f32 %v3124_v6, %v2709_v7  ;;  %v1643_v14 = vpop.f32.mrb[96].mxu0  ;;  %v3187_v59 = vadd.f32 %v3186_v10, %v2711_v11  ;;  %v1836_v22 = vpop.f32.mrb[96].mxu1 }
 0x1c4   : > { %v1644_v23 = vadd.f32 %v1643_v14, %v6530_v46  ;;  %v1645_v24 = vpop.f32.mrb[97].mxu0  ;;  %v1837_v61 = vadd.f32 %v1836_v22, %v6550_v26  ;;  %v1838_v25 = vpop.f32.mrb[97].mxu1  ;;  %v3535_v6 = vpack.c.bf16 %v3521_v31, %v3521_v31  ;;  %v5494_v22 = vld [vmem:[%s7341_s3 + $0x148] sm:$0xff]  }
 0x1c5   : > { %v1646_v27 = vadd.f32 %v1645_v24, %v6534_v47  ;;  %5099 = vmatpush3.bf16.msra.mxu1 %v5487_v9  ;;  %v1647_v29 = vpop.f32.mrb[98].mxu0  ;;  %v1839_v28 = vadd.f32 %v1838_v25, %v6553_v30  ;;  %v1840_v34 = vpop.f32.mrb[98].mxu1 }
 0x1c6   : > { %v2722_v35 = vmax.f32 %v1644_v23, 0.0  ;;  %v1648_v36 = vadd.f32 %v1647_v29, %v6530_v46  ;;  %v1649_v38 = vpop.f32.mrb[99].mxu0  ;;  %5100 = vmatprep.subr.bf16.mxu1 %v5488_v20  ;;  %v2724_v40 = vmax.f32 %v1837_v61, 0.0  ;;  %v1841_v41 = vadd.f32 %v1840_v34, %v6550_v26  ;;  %v1842_v43 = vpop.f32.mrb[99].mxu1  ;;  %v5595_v34 = vld [vmem:[%s5857_s17 + $0x20] sm:$0xff]  }
 0x1c7   : > { %v2723_v33 = vmax.f32 %v1646_v27, 0.0  ;;  %v1650_v44 = vadd.f32 %v1649_v38, %v6534_v47  ;;  %v2725_v45 = vmax.f32 %v1839_v28, 0.0  ;;  %v1843_v48 = vadd.f32 %v1842_v43, %v6553_v30 }
 0x1c8   : > { %v3095_v17 = vadd.f32 %v3094_v15, %v2722_v35  ;;  %v2736_v42 = vmax.f32 %v1648_v36, 0.0  ;;  %2364 = vmatmul.mubr.bf16.gmra.mrb[204].mxu0 %v5594_v49  ;;  %v3157_v32 = vadd.f32 %v3156_v21, %v2724_v40  ;;  %v2738_v16 = vmax.f32 %v1841_v41, 0.0  ;;  %v5493_v15 = vld [vmem:[%s7341_s3 + $0x100] sm:$0xff]   ;;  %v5495_v40 = vld [vmem:[%s7341_s3 + $0x108] sm:$0xff]  }
 0x1c9   : > { %v3126_v37 = vadd.f32 %v3125_v58, %v2723_v33  ;;  %v2737_v60 = vmax.f32 %v1650_v44, 0.0  ;;  %5101 = vmatpush3.bf16.msra.mxu1 %v5489_v18  ;;  %2373 = vmatprep.mubr.bf16.mxu0 %v5688_v2  ;;  %v3188_v51 = vadd.f32 %v3187_v59, %v2725_v45  ;;  %v2739_v55 = vmax.f32 %v1843_v48, 0.0  ;;  %v5496_v44 = vld [vmem:[%s7341_s3 + $0x150] sm:$0xff]  }
 0x1ca   : > { %v3096_v62 = vadd.f32 %v3095_v17, %v2736_v42  ;;  %5102 = vmatprep.subr.bf16.mxu1 %v5490_v39  ;;  %v3158_v63 = vadd.f32 %v3157_v32, %v2738_v16 }
 0x1cb   : > { %v3127_v0 = vadd.f32 %v3126_v37, %v2737_v60  ;;  %v1653_v1 = vpop.f32.mrb[100].mxu0  ;;  %v3189_v3 = vadd.f32 %v3188_v51, %v2739_v55  ;;  %v1846_v4 = vpop.f32.mrb[100].mxu1  ;;  %v5497_v55 = vld [vmem:[%s7341_s3 + $0x110] sm:$0xff]  }
 0x1cc   : > { %v1654_v19 = vadd.f32 %v1653_v1, %v6530_v46  ;;  %v1655_v5 = vpop.f32.mrb[101].mxu0  ;;  %v1847_v7 = vadd.f32 %v1846_v4, %v6550_v26  ;;  %v1848_v9 = vpop.f32.mrb[101].mxu1 }
 0x1cd   : > { %v1656_v10 = vadd.f32 %v1655_v5, %v6534_v47  ;;  %5103 = vmatpush3.bf16.msra.mxu1 %v5491_v50  ;;  %v1657_v11 = vpop.f32.mrb[102].mxu0  ;;  %v1849_v20 = vadd.f32 %v1848_v9, %v6553_v30  ;;  %v1850_v21 = vpop.f32.mrb[102].mxu1 }
 0x1ce   : > { %v2750_v58 = vmax.f32 %v1654_v19, 0.0  ;;  %v1658_v14 = vadd.f32 %v1657_v11, %v6530_v46  ;;  %v1659_v59 = vpop.f32.mrb[103].mxu0  ;;  %5110 = vmatprep.subr.bf16.mxu1 %v5492_v8  ;;  %v2752_v23 = vmax.f32 %v1847_v7, 0.0  ;;  %v1851_v24 = vadd.f32 %v1850_v21, %v6550_v26  ;;  %v1852_v61 = vpop.f32.mrb[103].mxu1 }
 0x1cf   : > { %v2751_v25 = vmax.f32 %v1656_v10, 0.0  ;;  %v1660_v27 = vadd.f32 %v1659_v59, %v6534_v47  ;;  %v2753_v29 = vmax.f32 %v1849_v20, 0.0  ;;  %v1853_v18 = vadd.f32 %v1852_v61, %v6553_v30  ;;  %v5596_v20 = vld [vmem:[%s5857_s17 + $0x28] sm:$0xff]  }
 0x1d0   : > { %v3097_v31 = vadd.f32 %v3096_v62, %v2750_v58  ;;  %v2764_v28 = vmax.f32 %v1658_v14, 0.0  ;;  %4517 = vmatmul.mubr.bf16.vlgmr.msra.gmra.mrb[196].mxu1 %v3535_v6  ;;  %2374 = vmatmul.mubr.bf16.gmra.mrb[208].mxu0 %v5595_v34  ;;  %v3159_v35 = vadd.f32 %v3158_v63, %v2752_v23  ;;  %v2766_v36 = vmax.f32 %v1851_v24, 0.0 }
 0x1d1   : > { %v3128_v38 = vadd.f32 %v3127_v0, %v2751_v25  ;;  %v2765_v39 = vmax.f32 %v1660_v27, 0.0  ;;  %2383 = vmatprep.mubr.bf16.mxu0 %v5688_v2  ;;  %5111 = vmatpush3.bf16.msra.mxu1 %v5493_v15  ;;  %v3190_v41 = vadd.f32 %v3189_v3, %v2753_v29  ;;  %v2767_v43 = vmax.f32 %v1853_v18, 0.0  ;;  %v5498_v3 = vld [vmem:[%s7341_s3 + $0x158] sm:$0xff]   ;;  %v5500_v25 = vld [vmem:[%s7341_s3 + $0x160] sm:$0xff]  }
 0x1d2   : > { %v3098_v33 = vadd.f32 %v3097_v31, %v2764_v28  ;;  %5112 = vmatprep.subr.bf16.mxu1 %v5494_v22  ;;  %v3160_v45 = vadd.f32 %v3159_v35, %v2766_v36  ;;  %v5499_v22 = vld [vmem:[%s7341_s3 + $0x118] sm:$0xff]  }
 0x1d3   : > { %v3129_v48 = vadd.f32 %v3128_v38, %v2765_v39  ;;  %v1663_v17 = vpop.f32.mrb[104].mxu0  ;;  %v3191_v42 = vadd.f32 %v3190_v41, %v2767_v43  ;;  %v1856_v49 = vpop.f32.mrb[104].mxu1  ;;  %v5501_v41 = vld [vmem:[%s7341_s3 + $0x120] sm:$0xff]  }
 0x1d4   : > { %v1664_v32 = vadd.f32 %v1663_v17, %v6530_v46  ;;  %v1665_v16 = vpop.f32.mrb[105].mxu0  ;;  %v1857_v37 = vadd.f32 %v1856_v49, %v6550_v26  ;;  %v1858_v60 = vpop.f32.mrb[105].mxu1  ;;  %v5502_v17 = vld [vmem:[%s7341_s3 + $0x168] sm:$0xff]  }
 0x1d5   : > { %v1666_v50 = vadd.f32 %v1665_v16, %v6534_v47  ;;  %v1667_v51 = vpop.f32.mrb[106].mxu0  ;;  %5113 = vmatpush3.bf16.msra.mxu1 %v5495_v40  ;;  %v1859_v62 = vadd.f32 %v1858_v60, %v6553_v30  ;;  %v1860_v8 = vpop.f32.mrb[106].mxu1 }
 0x1d6   : > { %v2778_v63 = vmax.f32 %v1664_v32, 0.0  ;;  %v1668_v0 = vadd.f32 %v1667_v51, %v6530_v46  ;;  %v1669_v1 = vpop.f32.mrb[107].mxu0  ;;  %5114 = vmatprep.subr.bf16.mxu1 %v5496_v44  ;;  %v2780_v4 = vmax.f32 %v1857_v37, 0.0  ;;  %v1861_v19 = vadd.f32 %v1860_v8, %v6550_v26  ;;  %v1862_v5 = vpop.f32.mrb[107].mxu1 }
 0x1d7   : > { %v2779_v6 = vmax.f32 %v1666_v50, 0.0  ;;  %v1670_v7 = vadd.f32 %v1669_v1, %v6534_v47  ;;  %v2781_v9 = vmax.f32 %v1859_v62, 0.0  ;;  %v1863_v10 = vadd.f32 %v1862_v5, %v6553_v30  ;;  %v5597_v62 = vld [vmem:[%s5857_s17 + $0x30] sm:$0xff]  }
 0x1d8   : > { %v3099_v11 = vadd.f32 %v3098_v33, %v2778_v63  ;;  %v2792_v15 = vmax.f32 %v1668_v0, 0.0  ;;  %2384 = vmatmul.mubr.bf16.gmra.mrb[212].mxu0 %v5596_v20  ;;  %v3161_v21 = vadd.f32 %v3160_v45, %v2780_v4  ;;  %v2794_v58 = vmax.f32 %v1861_v19, 0.0 }
 0x1d9   : > { %v3130_v14 = vadd.f32 %v3129_v48, %v2779_v6  ;;  %v2793_v59 = vmax.f32 %v1670_v7, 0.0  ;;  %2393 = vmatprep.mubr.bf16.mxu0 %v5688_v2  ;;  %5115 = vmatpush3.bf16.msra.mxu1 %v5497_v55  ;;  %v3192_v23 = vadd.f32 %v3191_v42, %v2781_v9  ;;  %v2795_v24 = vmax.f32 %v1863_v10, 0.0  ;;  %v5504_v7 = vld [vmem:[%s7341_s3 + $0x170] sm:$0xff]  }
 0x1da   : > { %v3100_v61 = vadd.f32 %v3099_v11, %v2792_v15  ;;  %5116 = vmatprep.subr.bf16.mxu1 %v5498_v3  ;;  %v3162_v27 = vadd.f32 %v3161_v21, %v2794_v58  ;;  %v5503_v3 = vld [vmem:[%s7341_s3 + $0x128] sm:$0xff]  }
 0x1db   : > { %v3131_v29 = vadd.f32 %v3130_v14, %v2793_v59  ;;  %v1673_v18 = vpop.f32.mrb[108].mxu0  ;;  %v3193_v31 = vadd.f32 %v3192_v23, %v2795_v24  ;;  %v1866_v28 = vpop.f32.mrb[108].mxu1  ;;  %v5505_v23 = vld [vmem:[%s7341_s3 + $0x130] sm:$0xff]  }
 0x1dc   : > { %v1674_v34 = vadd.f32 %v1673_v18, %v6530_v46  ;;  %v1675_v35 = vpop.f32.mrb[109].mxu0  ;;  %v1867_v36 = vadd.f32 %v1866_v28, %v6550_v26  ;;  %v1868_v38 = vpop.f32.mrb[109].mxu1 }
 0x1dd   : > { %v1676_v39 = vadd.f32 %v1675_v35, %v6534_v47  ;;  %v1677_v40 = vpop.f32.mrb[110].mxu0  ;;  %5117 = vmatpush3.bf16.msra.mxu1 %v5499_v22  ;;  %v1869_v43 = vadd.f32 %v1868_v38, %v6553_v30  ;;  %v1870_v33 = vpop.f32.mrb[110].mxu1 }
 0x1de   : > { %v2806_v44 = vmax.f32 %v1674_v34, 0.0  ;;  %v1678_v45 = vadd.f32 %v1677_v40, %v6530_v46  ;;  %v1679_v48 = vpop.f32.mrb[111].mxu0  ;;  %5118 = vmatprep.subr.bf16.mxu1 %v5500_v25  ;;  %v2808_v42 = vmax.f32 %v1867_v36, 0.0  ;;  %v1871_v49 = vadd.f32 %v1870_v33, %v6550_v26  ;;  %v1872_v32 = vpop.f32.mrb[111].mxu1  ;;  %v5506_v34 = vld [vmem:[%s7341_s3 + $0x178] sm:$0xff]  }
 0x1df   : > { %v2807_v16 = vmax.f32 %v1676_v39, 0.0  ;;  %v1680_v37 = vadd.f32 %v1679_v48, %v6534_v47  ;;  %v2809_v60 = vmax.f32 %v1869_v43, 0.0  ;;  %v1873_v50 = vadd.f32 %v1872_v32, %v6553_v30  ;;  %v5598_v43 = vld [vmem:[%s5857_s17 + $0x38] sm:$0xff]  }
 0x1e0   : > { %v3101_v51 = vadd.f32 %v3100_v61, %v2806_v44  ;;  %v2820_v55 = vmax.f32 %v1678_v45, 0.0  ;;  %2394 = vmatmul.mubr.bf16.gmra.mrb[216].mxu0 %v5597_v62  ;;  %v3163_v8 = vadd.f32 %v3162_v27, %v2808_v42  ;;  %v2822_v63 = vmax.f32 %v1871_v49, 0.0  ;;  %v5507_v49 = vld [vmem:[%s7341_s3 + $0x138] sm:$0xff]  }
 0x1e1   : > { %v3132_v0 = vadd.f32 %v3131_v29, %v2807_v16  ;;  %v2821_v1 = vmax.f32 %v1680_v37, 0.0  ;;  %2403 = vmatprep.mubr.bf16.mxu0 %v5688_v2  ;;  %5119 = vmatpush3.bf16.msra.mxu1 %v5501_v41  ;;  %v3194_v4 = vadd.f32 %v3193_v31, %v2809_v60  ;;  %v2823_v19 = vmax.f32 %v1873_v50, 0.0  ;;  %v5508_v37 = vld [vmem:[%s7341_s3 + $0x1c0] sm:$0xff]  }
 0x1e2   : > { %v3102_v5 = vadd.f32 %v3101_v51, %v2820_v55  ;;  %5120 = vmatprep.subr.bf16.mxu1 %v5502_v17  ;;  %v3164_v6 = vadd.f32 %v3163_v8, %v2822_v63 }
 0x1e3   : > { %v3133_v9 = vadd.f32 %v3132_v0, %v2821_v1  ;;  %v1683_v10 = vpop.f32.mrb[112].mxu0  ;;  %v3195_v11 = vadd.f32 %v3194_v4, %v2823_v19  ;;  %v1876_v15 = vpop.f32.mrb[112].mxu1 }
 0x1e4   : > { %v1684_v20 = vadd.f32 %v1683_v10, %v6530_v46  ;;  %v1685_v21 = vpop.f32.mrb[113].mxu0  ;;  %v1877_v58 = vadd.f32 %v1876_v15, %v6550_v26  ;;  %v1878_v14 = vpop.f32.mrb[113].mxu1 }
 0x1e5   : > { %v1686_v59 = vadd.f32 %v1685_v21, %v6534_v47  ;;  %v1687_v22 = vpop.f32.mrb[114].mxu0  ;;  %5121 = vmatpush3.bf16.msra.mxu1 %v5503_v3  ;;  %v1879_v24 = vadd.f32 %v1878_v14, %v6553_v30  ;;  %v1880_v61 = vpop.f32.mrb[114].mxu1 }
 0x1e6   : > { %v2834_v25 = vmax.f32 %v1684_v20, 0.0  ;;  %v1688_v27 = vadd.f32 %v1687_v22, %v6530_v46  ;;  %v1689_v29 = vpop.f32.mrb[115].mxu0  ;;  %5122 = vmatprep.subr.bf16.mxu1 %v5504_v7  ;;  %v2836_v18 = vmax.f32 %v1877_v58, 0.0  ;;  %v1881_v31 = vadd.f32 %v1880_v61, %v6550_v26  ;;  %v1882_v28 = vpop.f32.mrb[115].mxu1  ;;  %v5599_v22 = vld [vmem:[%s5857_s17 + $0x40] sm:$0xff]  }
 0x1e7   : > { %v2835_v35 = vmax.f32 %v1686_v59, 0.0  ;;  %v1690_v36 = vadd.f32 %v1689_v29, %v6534_v47  ;;  %v2837_v38 = vmax.f32 %v1879_v24, 0.0  ;;  %v1883_v39 = vadd.f32 %v1882_v28, %v6553_v30 }
 0x1e8   : > { %v3103_v40 = vadd.f32 %v3102_v5, %v2834_v25  ;;  %v2848_v41 = vmax.f32 %v1688_v27, 0.0  ;;  %2404 = vmatmul.mubr.bf16.gmra.mrb[220].mxu0 %v5598_v43  ;;  %v3165_v33 = vadd.f32 %v3164_v6, %v2836_v18  ;;  %v2850_v44 = vmax.f32 %v1881_v31, 0.0 }
 0x1e9   : > { %v3134_v45 = vadd.f32 %v3133_v9, %v2835_v35  ;;  %v2849_v48 = vmax.f32 %v1690_v36, 0.0  ;;  %2413 = vmatprep.mubr.bf16.mxu0 %v5688_v2  ;;  %5123 = vmatpush3.bf16.msra.mxu1 %v5505_v23  ;;  %v3196_v17 = vadd.f32 %v3195_v11, %v2837_v38  ;;  %v2851_v42 = vmax.f32 %v1883_v39, 0.0 }
 0x1ea   : > { %v3104_v32 = vadd.f32 %v3103_v40, %v2848_v41  ;;  %v3166_v16 = vadd.f32 %v3165_v33, %v2850_v44  ;;  %5124 = vmatprep.subr.bf16.mxu1 %v5506_v34 }
 0x1eb   : > { %v3135_v60 = vadd.f32 %v3134_v45, %v2849_v48  ;;  %v1693_v50 = vpop.f32.mrb[116].mxu0  ;;  %v3197_v51 = vadd.f32 %v3196_v17, %v2851_v42  ;;  %v1886_v55 = vpop.f32.mrb[116].mxu1  ;;  %v5524_v48 = vld [vmem:[%s7341_s3 + $0x240] sm:$0xff]  }
 0x1ec   : > { %v1694_v62 = vadd.f32 %v1693_v50, %v6530_v46  ;;  %v1695_v8 = vpop.f32.mrb[117].mxu0  ;;  %v1887_v63 = vadd.f32 %v1886_v55, %v6550_v26  ;;  %v1888_v0 = vpop.f32.mrb[117].mxu1  ;;  %5154 = vmatprep.subr.bf16.mxu0 %v5524_v48  ;;  %v5601_v48 = vld [vmem:[%s5857_s17 + $0x50] sm:$0xff]  }
 0x1ed   : > { %v1696_v1 = vadd.f32 %v1695_v8, %v6534_v47  ;;  %v1697_v3 = vpop.f32.mrb[118].mxu0  ;;  %5125 = vmatpush3.bf16.msra.mxu1 %v5507_v49  ;;  %v1889_v4 = vadd.f32 %v1888_v0, %v6553_v30  ;;  %v1890_v19 = vpop.f32.mrb[118].mxu1  ;;  %v5600_v0 = vld [vmem:[%s5857_s17 + $0x48] sm:$0xff]  }
 0x1ee   : > { %v2862_v5 = vmax.f32 %v1694_v62, 0.0  ;;  %v1698_v6 = vadd.f32 %v1697_v3, %v6530_v46  ;;  %v1699_v7 = vpop.f32.mrb[119].mxu0  ;;  %v2864_v9 = vmax.f32 %v1887_v63, 0.0  ;;  %v1891_v10 = vadd.f32 %v1890_v19, %v6550_v26  ;;  %v1892_v11 = vpop.f32.mrb[119].mxu1  ;;  %5132 = vmatprep.subr.bf16.mxu1 %v5508_v37 }
 0x1ef   : > { %v2863_v15 = vmax.f32 %v1696_v1, 0.0  ;;  %v1700_v20 = vadd.f32 %v1699_v7, %v6534_v47  ;;  %v2865_v21 = vmax.f32 %v1889_v4, 0.0  ;;  %v1893_v58 = vadd.f32 %v1892_v11, %v6553_v30  ;;  %v5528_v7 = vld [vmem:[%s7341_s3 + $0x248] sm:$0xff]  }
 0x1f0   : > { %v3105_v14 = vadd.f32 %v3104_v32, %v2862_v5  ;;  %v2876_v59 = vmax.f32 %v1698_v6, 0.0  ;;  %2414 = vmatmul.mubr.bf16.gmra.mrb[224].mxu0 %v5599_v22  ;;  %v3167_v23 = vadd.f32 %v3166_v16, %v2864_v9  ;;  %v2878_v24 = vmax.f32 %v1891_v10, 0.0  ;;  %v414_v10 = vld [vmem:[%s7340_s2 + $0x8] sm:$0x3f] }
 0x1f1   : > { %v3136_v61 = vadd.f32 %v3135_v60, %v2863_v15  ;;  %v2877_v25 = vmax.f32 %v1700_v20, 0.0  ;;  %2423 = vmatprep.mubr.bf16.mxu0 %v5688_v2  ;;  %v3198_v27 = vadd.f32 %v3197_v51, %v2865_v21  ;;  %v2879_v29 = vmax.f32 %v1893_v58, 0.0  ;;  %v5525_v60 = vld [vmem:[%s7341_s3 + $0x200] sm:$0xff]   ;;  %v5529_v15 = vld [vmem:[%s7341_s3 + $0x208] sm:$0xff]  }
 0x1f2   : > { %v3106_v18 = vadd.f32 %v3105_v14, %v2876_v59  ;;  %v3168_v31 = vadd.f32 %v3167_v23, %v2878_v24  ;;  %5155 = vmatpush3.bf16.msra.mxu0 %v5525_v60 }
 0x1f3   : > { %v3137_v28 = vadd.f32 %v3136_v61, %v2877_v25  ;;  %v1703_v34 = vpop.f32.mrb[120].mxu0  ;;  %v3199_v35 = vadd.f32 %v3198_v27, %v2879_v29  ;;  %v1896_v36 = vpop.f32.mrb[120].mxu1  ;;  %5156 = vmatprep.subr.bf16.mxu0 %v5528_v7  ;;  %v6853_v27 = vrot.slane %v414_v10, %v419_v53  ;;  %v6857_v29 = vrot.slane %v414_v10, %v423_v56  ;;  %v5533_v56 = vld [vmem:[%s7341_s3 + $0x210] sm:$0xff]  }
 0x1f4   : > { %v1704_v38 = vadd.f32 %v1703_v34, %v6530_v46  ;;  %v1705_v39 = vpop.f32.mrb[121].mxu0  ;;  %v1897_v40 = vadd.f32 %v1896_v36, %v6550_v26  ;;  %v1898_v41 = vpop.f32.mrb[121].mxu1 }
 0x1f5   : > { %v1706_v43 = vadd.f32 %v1705_v39, %v6534_v47  ;;  %v1707_v33 = vpop.f32.mrb[122].mxu0  ;;  %v1899_v44 = vadd.f32 %v1898_v41, %v6553_v30  ;;  %v1900_v45 = vpop.f32.mrb[122].mxu1 }
 0x1f6   : > { %v2890_v17 = vmax.f32 %v1704_v38, 0.0  ;;  %v1708_v42 = vadd.f32 %v1707_v33, %v6530_v46  ;;  %v1709_v49 = vpop.f32.mrb[123].mxu0  ;;  %v2892_v32 = vmax.f32 %v1897_v40, 0.0  ;;  %v1901_v16 = vadd.f32 %v1900_v45, %v6550_v26  ;;  %v1902_v37 = vpop.f32.mrb[123].mxu1  ;;  %5157 = vmatpush3.bf16.msra.mxu0 %v5529_v15 }
 0x1f7   : > { %v2891_v50 = vmax.f32 %v1706_v43, 0.0  ;;  %v1710_v51 = vadd.f32 %v1709_v49, %v6534_v47  ;;  %v2893_v55 = vmax.f32 %v1899_v44, 0.0  ;;  %v1903_v62 = vadd.f32 %v1902_v37, %v6553_v30  ;;  %v5537_v37 = vld [vmem:[%s7341_s3 + $0x218] sm:$0xff]  }
 0x1f8   : > { %v3107_v8 = vadd.f32 %v3106_v18, %v2890_v17  ;;  %v2904_v63 = vmax.f32 %v1708_v42, 0.0  ;;  %2424 = vmatmul.mubr.bf16.gmra.mrb[228].mxu0 %v5600_v0  ;;  %v3169_v1 = vadd.f32 %v3168_v31, %v2892_v32  ;;  %v2906_v3 = vmax.f32 %v1901_v16, 0.0 }
 0x1f9   : > { %v3138_v4 = vadd.f32 %v3137_v28, %v2891_v50  ;;  %v2905_v19 = vmax.f32 %v1710_v51, 0.0  ;;  %2433 = vmatprep.mubr.bf16.mxu0 %v5688_v2  ;;  %v3200_v5 = vadd.f32 %v3199_v35, %v2893_v55  ;;  %v2907_v6 = vmax.f32 %v1903_v62, 0.0  ;;  %v5532_v28 = vld [vmem:[%s7341_s3 + $0x250] sm:$0xff]  }
 0x1fa   : > { %v3108_v9 = vadd.f32 %v3107_v8, %v2904_v63  ;;  %v3170_v11 = vadd.f32 %v3169_v1, %v2906_v3  ;;  %5158 = vmatprep.subr.bf16.mxu0 %v5532_v28  ;;  %v6880_v55 = vrot.slane %v414_v10, %v427_v54  ;;  %v6885_v3 = vrot.slane %v414_v10, %v431_v57  ;;  %v5540_v54 = vld [vmem:[%s7341_s3 + $0x260] sm:$0xff]  }
 0x1fb   : > { %v3139_v20 = vadd.f32 %v3138_v4, %v2905_v19  ;;  %v1713_v21 = vpop.f32.mrb[124].mxu0  ;;  %v3201_v58 = vadd.f32 %v3200_v5, %v2907_v6  ;;  %v1906_v14 = vpop.f32.mrb[124].mxu1  ;;  %5159 = vmatpush3.bf16.msra.mxu0 %v5533_v56  ;;  %v5541_v10 = vld [vmem:[%s7341_s3 + $0x220] sm:$0xff]  }
 0x1fc   : > { %v1714_v59 = vadd.f32 %v1713_v21, %v6530_v46  ;;  %v1715_v22 = vpop.f32.mrb[125].mxu0  ;;  %v1907_v23 = vadd.f32 %v1906_v14, %v6550_v26  ;;  %v1908_v24 = vpop.f32.mrb[125].mxu1 }
 0x1fd   : > { %v1716_v61 = vadd.f32 %v1715_v22, %v6534_v47  ;;  %v1717_v25 = vpop.f32.mrb[126].mxu0  ;;  %v1909_v18 = vadd.f32 %v1908_v24, %v6553_v30  ;;  %v1910_v31 = vpop.f32.mrb[126].mxu1 }
 0x1fe   : > { %v2918_v34 = vmax.f32 %v1714_v59, 0.0  ;;  %v1718_v35 = vadd.f32 %v1717_v25, %v6530_v46  ;;  %v1719_v36 = vpop.f32.mrb[127].mxu0  ;;  %v2920_v38 = vmax.f32 %v1907_v23, 0.0  ;;  %v1911_v53 = vadd.f32 %v1910_v31, %v6550_v26  ;;  %v1912_v39 = vpop.f32.mrb[127].mxu1  ;;  %v5602_v25 = vld [vmem:[%s5857_s17 + $0x58] sm:$0xff]  }
 0x1ff   : > { %v2919_v40 = vmax.f32 %v1716_v61, 0.0  ;;  %v1720_v41 = vadd.f32 %v1719_v36, %v6534_v47  ;;  %v2921_v43 = vmax.f32 %v1909_v18, 0.0  ;;  %v1913_v33 = vadd.f32 %v1912_v39, %v6553_v30  ;;  %v5536_v47 = vld [vmem:[%s7341_s3 + $0x258] sm:$0xff]   ;;  %v5544_v36 = vld [vmem:[%s7341_s3 + $0x268] sm:$0xff]  }
 0x200   : > { %v3109_v44 = vadd.f32 %v3108_v9, %v2918_v34  ;;  %v2932_v45 = vmax.f32 %v1718_v35, 0.0  ;;  %2434 = vmatmul.mubr.bf16.gmra.mrb[232].mxu0 %v5601_v48  ;;  %v3171_v46 = vadd.f32 %v3170_v11, %v2920_v38  ;;  %v2934_v17 = vmax.f32 %v1911_v53, 0.0  ;;  %5160 = vmatprep.subr.bf16.mxu0 %v5536_v47 }
 0x201   : > { %v3140_v42 = vadd.f32 %v3139_v20, %v2919_v40  ;;  %v2933_v26 = vmax.f32 %v1720_v41, 0.0  ;;  %2443 = vmatprep.mubr.bf16.mxu0 %v5688_v2  ;;  %v3202_v49 = vadd.f32 %v3201_v58, %v2921_v43  ;;  %v2935_v32 = vmax.f32 %v1913_v33, 0.0  ;;  %5161 = vmatpush3.bf16.msra.mxu0 %v5537_v37  ;;  %v5545_v40 = vld [vmem:[%s7341_s3 + $0x228] sm:$0xff]  }
 0x202   : > { %v3110_v16 = vadd.f32 %v3109_v44, %v2932_v45  ;;  %v3172_v30 = vadd.f32 %v3171_v46, %v2934_v17  ;;  %5162 = vmatprep.subr.bf16.mxu0 %v5540_v54 }
 0x203   : > { %v3141_v60 = vadd.f32 %v3140_v42, %v2933_v26  ;;  %v1949_v50 = vpop.f32.mrb[128].mxu0  ;;  %v3203_v51 = vadd.f32 %v3202_v49, %v2935_v32  ;;  %v2142_v62 = vpop.f32.mrb[128].mxu1 }
 0x204   : > { %v3459_v8 = vrot.slane %v3110_v16, 4  ;;  %v1950_v63 = vadd.f32 %v1949_v50, %v6853_v27  ;;  %v1951_v0 = vpop.f32.mrb[129].mxu0  ;;  %v3471_v1 = vrot.slane %v3172_v30, 4  ;;  %v2144_v4 = vpop.f32.mrb[129].mxu1  ;;  %v6899_v22 = vadd.f32 %v2142_v62, %v6880_v55 }
 0x205   : > { %v3465_v19 = vrot.slane %v3141_v60, 4  ;;  %v1952_v5 = vadd.f32 %v1951_v0, %v6857_v29  ;;  %v1953_v6 = vpop.f32.mrb[130].mxu0  ;;  %v3477_v7 = vrot.slane %v3203_v51, 4  ;;  %v2146_v9 = vpop.f32.mrb[130].mxu1  ;;  %v6903_v18 = vadd.f32 %v2144_v4, %v6885_v3  ;;  %5163 = vmatpush3.bf16.msra.mxu0 %v5541_v10 }
 0x206   : > { %v3460_v11 = vadd.f32 %v3459_v8, %v3110_v16  ;;  %v1954_v15 = vadd.f32 %v1953_v6, %v6853_v27  ;;  %v1955_v20 = vpop.f32.mrb[131].mxu0  ;;  %v6892_v21 = vadd.f32 %v3471_v1, %v3172_v30  ;;  %v2148_v57 = vpop.f32.mrb[131].mxu1  ;;  %v2502_v24 = vmax.f32 %v1950_v63, 0.0  ;;  %5164 = vmatprep.subr.bf16.mxu0 %v5544_v36 }
 0x207   : > { %v3466_v58 = vadd.f32 %v3465_v19, %v3141_v60  ;;  %v1956_v14 = vadd.f32 %v1955_v20, %v6857_v29  ;;  %v3478_v59 = vadd.f32 %v3477_v7, %v3203_v51  ;;  %v2503_v28 = vmax.f32 %v1952_v5, 0.0  ;;  %v5548_v51 = vld [vmem:[%s7341_s3 + $0x270] sm:$0xff]  }
 0x208   : > { %v3461_v23 = vrot.slane %v3460_v11, 2  ;;  %v2516_v61 = vmax.f32 %v1954_v15, 0.0  ;;  %2444 = vmatmul.mubr.bf16.gmra.mrb[236].mxu0 %v5602_v25  ;;  %v3473_v39 = vrot.slane %v6892_v21, 2  ;;  %v2147_v56 = vadd.f32 %v2146_v9, %v6880_v55  ;;  %v5549_v19 = vld [vmem:[%s7341_s3 + $0x230] sm:$0xff]   ;;  %v5603_v15 = vld [vmem:[%s5857_s17 + $0x60] sm:$0xff]   ;;  %v5553_v25 = vld [vmem:[%s7341_s3 + $0x238] sm:$0xff]  }
 0x209   : > { %v3467_v31 = vrot.slane %v3466_v58, 2  ;;  %v2517_v34 = vmax.f32 %v1956_v14, 0.0  ;;  %2453 = vmatprep.mubr.bf16.mxu0 %v5688_v2  ;;  %v3479_v35 = vrot.slane %v3478_v59, 2  ;;  %v2149_v45 = vadd.f32 %v2148_v57, %v6885_v3  ;;  %5165 = vmatpush3.bf16.msra.mxu0 %v5545_v40 }
 0x20a   : > { %v3462_v38 = vadd.f32 %v3461_v23, %v3460_v11  ;;  %v3204_v53 = vadd.f32 %v2516_v61, %v2502_v24  ;;  %v2504_v26 = vmax.f32 %v6899_v22, 0.0  ;;  %v2505_v49 = vmax.f32 %v6903_v18, 0.0  ;;  %5166 = vmatprep.subr.bf16.mxu0 %v5548_v51 }
 0x20b   : > { %v3235_v41 = vadd.f32 %v2517_v34, %v2503_v28  ;;  %v1959_v43 = vpop.f32.mrb[132].mxu0  ;;  %v3468_v33 = vadd.f32 %v3467_v31, %v3466_v58  ;;  %v3480_v44 = vadd.f32 %v3479_v35, %v3478_v59  ;;  %v2152_v48 = vpop.f32.mrb[132].mxu1  ;;  %v2518_v60 = vmax.f32 %v2147_v56, 0.0  ;;  %v5552_v59 = vld [vmem:[%s7341_s3 + $0x278] sm:$0xff]   ;;  %v5509_v34 = vld [vmem:[%s7341_s3 + $0x180] sm:$0xff]  }
 0x20c   : > { %v3463_v46 = vrot.slane %v3462_v38, 1  ;;  %v1960_v17 = vadd.f32 %v1959_v43, %v6853_v27  ;;  %v1961_v42 = vpop.f32.mrb[133].mxu0  ;;  %v2154_v32 = vpop.f32.mrb[133].mxu1  ;;  %v2519_v1 = vmax.f32 %v2149_v45, 0.0  ;;  %v6933_v24 = vadd.f32 %v3473_v39, %v6892_v21  ;;  %v5510_v39 = vld [vmem:[%s7341_s3 + $0x1c8] sm:$0xff]  }
 0x20d   : > { %v1962_v47 = vadd.f32 %v1961_v42, %v6857_v29  ;;  %v1963_v16 = vpop.f32.mrb[134].mxu0  ;;  %v3469_v30 = vrot.slane %v3468_v33, 1  ;;  %v3481_v37 = vrot.slane %v3480_v44, 1  ;;  %v2156_v50 = vpop.f32.mrb[134].mxu1  ;;  %5167 = vmatpush3.bf16.msra.mxu0 %v5549_v19  ;;  %v3266_v61 = vadd.f32 %v2518_v60, %v2504_v26  ;;  %v5511_v60 = vld [vmem:[%s7341_s3 + $0x188] sm:$0xff]  }
 0x20e   : > { %v2530_v62 = vmax.f32 %v1960_v17, 0.0  ;;  %v1964_v8 = vadd.f32 %v1963_v16, %v6853_v27  ;;  %v1965_v63 = vpop.f32.mrb[135].mxu0  ;;  %v3464_v0 = vadd.f32 %v3463_v46, %v3462_v38  ;;  %v2158_v4 = vpop.f32.mrb[135].mxu1  ;;  %v3297_v36 = vadd.f32 %v2519_v1, %v2505_v49  ;;  %5168 = vmatprep.subr.bf16.mxu0 %v5552_v59 }
 0x20f   : > { %v2531_v5 = vmax.f32 %v1962_v47, 0.0  ;;  %v1966_v6 = vadd.f32 %v1965_v63, %v6857_v29  ;;  %v3470_v7 = vadd.f32 %v3469_v30, %v3468_v33  ;;  %v3482_v9 = vadd.f32 %v3481_v37, %v3480_v44  ;;  %v5604_v63 = vld [vmem:[%s5857_s17 + $0x68] sm:$0xff]  }
 0x210   : > { %v3205_v54 = vadd.f32 %v3204_v53, %v2530_v62  ;;  %v2544_v11 = vmax.f32 %v1964_v8, 0.0  ;;  %2454 = vmatmul.mubr.bf16.gmra.mrb[240].mxu0 %v5603_v15  ;;  %v3523_v20 = vmul.f32 0.00390625, %v3464_v0  ;;  %v2153_v56 = vadd.f32 %v2152_v48, %v6880_v55  ;;  %v5512_v0 = vld [vmem:[%s7341_s3 + $0x1d0] sm:$0xff]  }
 0x211   : > { %v3236_v57 = vadd.f32 %v3235_v41, %v2531_v5  ;;  %v2545_v10 = vmax.f32 %v1966_v6, 0.0  ;;  %v3524_v58 = vmul.f32 0.00390625, %v3470_v7  ;;  %2463 = vmatprep.mubr.bf16.mxu0 %v5688_v2  ;;  %v3526_v14 = vmul.f32 0.00390625, %v3482_v9  ;;  %5169 = vmatpush3.bf16.msra.mxu0 %v5553_v25 }
 0x212   : > { %v3206_v22 = vadd.f32 %v3205_v54, %v2544_v11  ;;  %v3537_v23 = vpack.c.bf16 %v3523_v20, %v3523_v20  ;;  %v2155_v40 = vadd.f32 %v2154_v32, %v6885_v3  ;;  %v2157_v41 = vadd.f32 %v2156_v50, %v6880_v55 }
 0x213   : > { %v3237_v18 = vadd.f32 %v3236_v57, %v2545_v10  ;;  %v1969_v31 = vpop.f32.mrb[136].mxu0  ;;  %v3538_v28 = vpack.c.bf16 %v3524_v58, %v3524_v58  ;;  %v3540_v35 = vpack.c.bf16 %v3526_v14, %v3526_v14  ;;  %v2162_v38 = vpop.f32.mrb[136].mxu1  ;;  %v2159_v45 = vadd.f32 %v2158_v4, %v6885_v3  ;;  %v5513_v58 = vld [vmem:[%s7341_s3 + $0x190] sm:$0xff]  }
 0x214   : > { %v1970_v53 = vadd.f32 %v1969_v31, %v6853_v27  ;;  %v1971_v21 = vpop.f32.mrb[137].mxu0  ;;  %v2164_v43 = vpop.f32.mrb[137].mxu1  ;;  %v2163_v46 = vadd.f32 %v2162_v38, %v6880_v55  ;;  %v2532_v32 = vmax.f32 %v2153_v56, 0.0  ;;  %v2533_v47 = vmax.f32 %v2155_v40, 0.0 }
 0x215   : > { %v1972_v33 = vadd.f32 %v1971_v21, %v6857_v29  ;;  %v1973_v44 = vpop.f32.mrb[138].mxu0  ;;  %4556 = vmatprep.mubr.bf16.mxu1 %v3538_v28  ;;  %v2165_v17 = vadd.f32 %v2164_v43, %v6885_v3  ;;  %v2166_v42 = vpop.f32.mrb[138].mxu1  ;;  %v2546_v50 = vmax.f32 %v2157_v41, 0.0  ;;  %v2547_v51 = vmax.f32 %v2159_v45, 0.0 }
 0x216   : > { %v2558_v26 = vmax.f32 %v1970_v53, 0.0  ;;  %v1974_v49 = vadd.f32 %v1973_v44, %v6853_v27  ;;  %v1975_v48 = vpop.f32.mrb[139].mxu0  ;;  %4557 = vmatmul.mubr.bf16.vlgmr.msra.gmra.mrb[200].mxu1 %v3537_v23  ;;  %v2168_v16 = vpop.f32.mrb[139].mxu1  ;;  %v3267_v1 = vadd.f32 %v3266_v61, %v2532_v32  ;;  %v3298_v4 = vadd.f32 %v3297_v36, %v2533_v47  ;;  %v5514_v61 = vld [vmem:[%s7341_s3 + $0x1d8] sm:$0xff]   ;;  %v5516_v32 = vld [vmem:[%s7341_s3 + $0x1e0] sm:$0xff]  }
 0x217   : > { %v2559_v30 = vmax.f32 %v1972_v33, 0.0  ;;  %v1976_v37 = vadd.f32 %v1975_v48, %v6857_v29  ;;  %5133 = vmatpush3.bf16.msra.mxu1 %v5509_v34  ;;  %4596 = vmatprep.mubr.bf16.mxu1 %v3540_v35  ;;  %v2560_v6 = vmax.f32 %v2163_v46, 0.0  ;;  %v2561_v7 = vmax.f32 %v2165_v17, 0.0  ;;  %v5515_v46 = vld [vmem:[%s7341_s3 + $0x198] sm:$0xff]   ;;  %v5605_v48 = vld [vmem:[%s5857_s17 + $0x70] sm:$0xff]  }
 0x218   : > { %v3207_v62 = vadd.f32 %v3206_v22, %v2558_v26  ;;  %v2572_v8 = vmax.f32 %v1974_v49, 0.0  ;;  %2464 = vmatmul.mubr.bf16.gmra.mrb[244].mxu0 %v5604_v63  ;;  %5134 = vmatprep.subr.bf16.mxu1 %v5510_v39  ;;  %v3268_v54 = vadd.f32 %v3267_v1, %v2546_v50  ;;  %v3299_v11 = vadd.f32 %v3298_v4, %v2547_v51 }
 0x219   : > { %v3238_v19 = vadd.f32 %v3237_v18, %v2559_v30  ;;  %v2573_v5 = vmax.f32 %v1976_v37, 0.0  ;;  %2473 = vmatprep.mubr.bf16.mxu0 %v5688_v2  ;;  %v2167_v15 = vadd.f32 %v2166_v42, %v6880_v55  ;;  %v3475_v10 = vrot.slane %v6933_v24, 1 }
 0x21a   : > { %v3208_v9 = vadd.f32 %v3207_v62, %v2572_v8  ;;  %v2169_v14 = vadd.f32 %v2168_v16, %v6885_v3  ;;  %v3269_v25 = vadd.f32 %v3268_v54, %v2560_v6  ;;  %v3300_v18 = vadd.f32 %v3299_v11, %v2561_v7 }
 0x21b   : > { %v3239_v20 = vadd.f32 %v3238_v19, %v2573_v5  ;;  %5135 = vmatpush3.bf16.msra.mxu1 %v5511_v60  ;;  %v1979_v57 = vpop.f32.mrb[140].mxu0  ;;  %v2172_v59 = vpop.f32.mrb[140].mxu1  ;;  %v2574_v31 = vmax.f32 %v2167_v15, 0.0  ;;  %v3476_v15 = vadd.f32 %v3475_v10, %v6933_v24  ;;  %v5519_v24 = vld [vmem:[%s7341_s3 + $0x1a8] sm:$0xff]  }
 0x21c   : > { %v1980_v22 = vadd.f32 %v1979_v57, %v6853_v27  ;;  %v1981_v23 = vpop.f32.mrb[141].mxu0  ;;  %5136 = vmatprep.subr.bf16.mxu1 %v5512_v0  ;;  %v2174_v28 = vpop.f32.mrb[141].mxu1  ;;  %v2575_v36 = vmax.f32 %v2169_v14, 0.0  ;;  %v2173_v38 = vadd.f32 %v2172_v59, %v6880_v55  ;;  %v5517_v0 = vld [vmem:[%s7341_s3 + $0x1a0] sm:$0xff]  }
 0x21d   : > { %v1982_v34 = vadd.f32 %v1981_v23, %v6857_v29  ;;  %v1983_v35 = vpop.f32.mrb[142].mxu0  ;;  %v2175_v53 = vadd.f32 %v2174_v28, %v6885_v3  ;;  %v2176_v21 = vpop.f32.mrb[142].mxu1  ;;  %v3270_v41 = vadd.f32 %v3269_v25, %v2574_v31 }
 0x21e   : > { %v2586_v39 = vmax.f32 %v1980_v22, 0.0  ;;  %v1984_v56 = vadd.f32 %v1983_v35, %v6853_v27  ;;  %v1985_v40 = vpop.f32.mrb[143].mxu0  ;;  %v2177_v43 = vadd.f32 %v2176_v21, %v6880_v55  ;;  %v2178_v33 = vpop.f32.mrb[143].mxu1  ;;  %v3301_v17 = vadd.f32 %v3300_v18, %v2575_v36  ;;  %v5606_v36 = vld [vmem:[%s5857_s17 + $0x78] sm:$0xff]   ;;  %s4746_s17 = sshll.u32 %s239_s16, 4  ;;  %s7293_s17 = int_to_ptr.vmem [resolvable:$true] %s4746_s17 }
 0x21f   : > { %v2587_v44 = vmax.f32 %v1982_v34, 0.0  ;;  %v1986_v45 = vadd.f32 %v1985_v40, %v6857_v29  ;;  %5137 = vmatpush3.bf16.msra.mxu1 %v5513_v58  ;;  %v2588_v42 = vmax.f32 %v2173_v38, 0.0  ;;  %v2589_v47 = vmax.f32 %v2175_v53, 0.0  ;;  %v5520_v38 = vld [vmem:[%s7341_s3 + $0x1f0] sm:$0xff]   ;;  %s5608_s29 = scalar_lea.vmem %s7293_s17, 16  ;;  %p5615_p1 = scmp.lt.s32.totalorder %s7293_s17, %s5613_s8 }
 0x220   : > { %v3209_v26 = vadd.f32 %v3208_v9, %v2586_v39  ;;  %v2600_v49 = vmax.f32 %v1984_v56, 0.0  ;;  %2474 = vmatmul.mubr.bf16.gmra.mrb[248].mxu0 %v5605_v48  ;;  %5138 = vmatprep.subr.bf16.mxu1 %v5514_v61  ;;  %v2602_v16 = vmax.f32 %v2177_v43, 0.0  ;;  %v2179_v50 = vadd.f32 %v2178_v33, %v6885_v3  ;;  %v5522_v48 = vld [vmem:[%s7341_s3 + $0x1f8] sm:$0xff]   ;;  %p5609_p12 = scmp.ne.s32.totalorder %s7293_s17, %s5608_s29  ;;  %p5616_p2 = scmp.lt.s32.totalorder %s5614_s9, %s5608_s29 }
 0x221   : > { %v3240_v30 = vadd.f32 %v3239_v20, %v2587_v44  ;;  %v2601_v37 = vmax.f32 %v1986_v45, 0.0  ;;  %2483 = vmatprep.mubr.bf16.mxu0 %v5688_v2  ;;  %v3271_v60 = vadd.f32 %v3270_v41, %v2588_v42  ;;  %v3302_v62 = vadd.f32 %v3301_v17, %v2589_v47  ;;  %v5518_v2 = vld [vmem:[%s7341_s3 + $0x1e8] sm:$0xff]  }
 0x222   : > { %v3210_v51 = vadd.f32 %v3209_v26, %v2600_v49  ;;  %v2603_v4 = vmax.f32 %v2179_v50, 0.0  ;;  %p5610_p13 = pnand %p5609_p12, %p5760_p4  ;;  %p5617_p3 = por %p5616_p2, %p5615_p1 }
 0x223   : > { %v3241_v8 = vadd.f32 %v3240_v30, %v2601_v37  ;;  %5139 = vmatpush3.bf16.msra.mxu1 %v5515_v46  ;;  %v1989_v63 = vpop.f32.mrb[144].mxu0  ;;  %v3272_v1 = vadd.f32 %v3271_v60, %v2602_v16  ;;  %v2182_v19 = vpop.f32.mrb[144].mxu1  ;;  %v5521_v46 = vld [vmem:[%s7341_s3 + $0x1b0] sm:$0xff]   ;;  %v3525_v37 = vmul.f32 0.00390625, %v3476_v15  ;;  %v5526_v15 = vld [vmem:[%s7341_s3 + $0x2c0] sm:$0xff]  }
 0x224   : > { %v1990_v5 = vadd.f32 %v1989_v63, %v6853_v27  ;;  %v1991_v6 = vpop.f32.mrb[145].mxu0  ;;  %5140 = vmatprep.subr.bf16.mxu1 %v5516_v32  ;;  %v2183_v7 = vadd.f32 %v2182_v19, %v6880_v55  ;;  %v2184_v9 = vpop.f32.mrb[145].mxu1  ;;  %v3303_v20 = vadd.f32 %v3302_v62, %v2603_v4  ;;  %p5611_p0 = pneg %p5610_p13 }
 0x225   : > { %v1992_v54 = vadd.f32 %v1991_v6, %v6857_v29  ;;  %v1993_v11 = vpop.f32.mrb[146].mxu0  ;;  %v2185_v57 = vadd.f32 %v2184_v9, %v6885_v3  ;;  %v2186_v58 = vpop.f32.mrb[146].mxu1 }
 0x226   : > { %v2614_v14 = vmax.f32 %v1990_v5, 0.0  ;;  %v1994_v59 = vadd.f32 %v1993_v11, %v6853_v27  ;;  %v1995_v22 = vpop.f32.mrb[147].mxu0  ;;  %v2616_v23 = vmax.f32 %v2183_v7, 0.0  ;;  %v2187_v61 = vadd.f32 %v2186_v58, %v6880_v55  ;;  %v2188_v25 = vpop.f32.mrb[147].mxu1  ;;  %v5523_v5 = vld [vmem:[%s7341_s3 + $0x1b8] sm:$0xff]   ;;  %p5618_p5 = pnand %p5617_p3, %p5611_p0 }
 0x227   : > { %v2615_v18 = vmax.f32 %v1992_v54, 0.0  ;;  %v1996_v31 = vadd.f32 %v1995_v22, %v6857_v29  ;;  %5141 = vmatpush3.bf16.msra.mxu1 %v5517_v0  ;;  %v2617_v10 = vmax.f32 %v2185_v57, 0.0  ;;  %v2189_v28 = vadd.f32 %v2188_v25, %v6885_v3 }
 0x228   : > { %v3211_v34 = vadd.f32 %v3210_v51, %v2614_v14  ;;  %v2628_v35 = vmax.f32 %v1994_v59, 0.0  ;;  %2484 = vmatmul.mubr.bf16.gmra.mrb[252].mxu0 %v5606_v36  ;;  %5142 = vmatprep.subr.bf16.mxu1 %v5518_v2  ;;  %v3273_v53 = vadd.f32 %v3272_v1, %v2616_v23  ;;  %v2630_v21 = vmax.f32 %v2187_v61, 0.0  ;;  %v5530_v36 = vld [vmem:[%s7341_s3 + $0x2c8] sm:$0xff]  }
 0x229   : > { %v3242_v39 = vadd.f32 %v3241_v8, %v2615_v18  ;;  %v2629_v56 = vmax.f32 %v1996_v31, 0.0  ;;  %v3304_v40 = vadd.f32 %v3303_v20, %v2617_v10  ;;  %v2631_v41 = vmax.f32 %v2189_v28, 0.0 }
 0x22a   : > { %v3212_v43 = vadd.f32 %v3211_v34, %v2628_v35  ;;  %v3274_v33 = vadd.f32 %v3273_v53, %v2630_v21  ;;  %v3539_v22 = vpack.c.bf16 %v3525_v37, %v3525_v37 }
 0x22b   : > { %v3243_v44 = vadd.f32 %v3242_v39, %v2629_v56  ;;  %5143 = vmatpush3.bf16.msra.mxu1 %v5519_v24  ;;  %v1999_v45 = vpop.f32.mrb[148].mxu0  ;;  %v3305_v17 = vadd.f32 %v3304_v40, %v2631_v41  ;;  %v2192_v42 = vpop.f32.mrb[148].mxu1  ;;  %v5527_v24 = vld [vmem:[%s7341_s3 + $0x280] sm:$0xff]  }
 0x22c   : > { %v2000_v26 = vadd.f32 %v1999_v45, %v6853_v27  ;;  %v2001_v49 = vpop.f32.mrb[149].mxu0  ;;  %5144 = vmatprep.subr.bf16.mxu1 %v5520_v38  ;;  %v2193_v32 = vadd.f32 %v2192_v42, %v6880_v55  ;;  %v2194_v47 = vpop.f32.mrb[149].mxu1 }
 0x22d   : > { %v2002_v16 = vadd.f32 %v2001_v49, %v6857_v29  ;;  %v2003_v30 = vpop.f32.mrb[150].mxu0  ;;  %v2195_v60 = vadd.f32 %v2194_v47, %v6885_v3  ;;  %v2196_v50 = vpop.f32.mrb[150].mxu1 }
 0x22e   : > { %v2642_v51 = vmax.f32 %v2000_v26, 0.0  ;;  %v2004_v62 = vadd.f32 %v2003_v30, %v6853_v27  ;;  %v2005_v8 = vpop.f32.mrb[151].mxu0  ;;  %v2644_v63 = vmax.f32 %v2193_v32, 0.0  ;;  %v2197_v0 = vadd.f32 %v2196_v50, %v6880_v55  ;;  %v2198_v1 = vpop.f32.mrb[151].mxu1  ;;  %v5531_v26 = vld [vmem:[%s7341_s3 + $0x288] sm:$0xff]  }
 0x22f   : > { %v2643_v4 = vmax.f32 %v2002_v16, 0.0  ;;  %v2006_v19 = vadd.f32 %v2005_v8, %v6857_v29  ;;  %5145 = vmatpush3.bf16.msra.mxu1 %v5521_v46  ;;  %v2645_v6 = vmax.f32 %v2195_v60, 0.0  ;;  %v2199_v2 = vadd.f32 %v2198_v1, %v6885_v3  ;;  %v5534_v16 = vld [vmem:[%s7341_s3 + $0x2d0] sm:$0xff]  }
 0x230   : > { %v3213_v7 = vadd.f32 %v3212_v43, %v2642_v51  ;;  %v2656_v9 = vmax.f32 %v2004_v62, 0.0  ;;  %5146 = vmatprep.subr.bf16.mxu1 %v5522_v48  ;;  %v3275_v54 = vadd.f32 %v3274_v33, %v2644_v63  ;;  %v2658_v11 = vmax.f32 %v2197_v0, 0.0 }
 0x231   : > { %v3244_v20 = vadd.f32 %v3243_v44, %v2643_v4  ;;  %v2657_v57 = vmax.f32 %v2006_v19, 0.0  ;;  %v3306_v58 = vadd.f32 %v3305_v17, %v2645_v6  ;;  %v2659_v14 = vmax.f32 %v2199_v2, 0.0  ;;  %v5535_v4 = vld [vmem:[%s7341_s3 + $0x290] sm:$0xff]  }
 0x232   : > { %v3214_v59 = vadd.f32 %v3213_v7, %v2656_v9  ;;  %v3276_v23 = vadd.f32 %v3275_v54, %v2658_v11  ;;  %v5538_v7 = vld [vmem:[%s7341_s3 + $0x2d8] sm:$0xff]  }
 0x233   : > { %v3245_v61 = vadd.f32 %v3244_v20, %v2657_v57  ;;  %5147 = vmatpush3.bf16.msra.mxu1 %v5523_v5  ;;  %v2009_v25 = vpop.f32.mrb[152].mxu0  ;;  %v3307_v18 = vadd.f32 %v3306_v58, %v2659_v14  ;;  %v2202_v31 = vpop.f32.mrb[152].mxu1 }
 0x234   : > { %v2010_v10 = vadd.f32 %v2009_v25, %v6853_v27  ;;  %v2011_v28 = vpop.f32.mrb[153].mxu0  ;;  %v2203_v34 = vadd.f32 %v2202_v31, %v6880_v55  ;;  %v2204_v35 = vpop.f32.mrb[153].mxu1  ;;  %5176 = vmatprep.subr.bf16.mxu1 %v5526_v15  ;;  %v5539_v31 = vld [vmem:[%s7341_s3 + $0x298] sm:$0xff]  }
 0x235   : > { %v2012_v38 = vadd.f32 %v2011_v28, %v6857_v29  ;;  %v2013_v53 = vpop.f32.mrb[154].mxu0  ;;  %v2205_v21 = vadd.f32 %v2204_v35, %v6885_v3  ;;  %v2206_v39 = vpop.f32.mrb[154].mxu1  ;;  %v5542_v35 = vld [vmem:[%s7341_s3 + $0x2e0] sm:$0xff]  }
 0x236   : > { %v2670_v56 = vmax.f32 %v2010_v10, 0.0  ;;  %v2014_v40 = vadd.f32 %v2013_v53, %v6853_v27  ;;  %4597 = vmatmul.mubr.bf16.vlgmr.msra.gmra.mrb[204].mxu1 %v3539_v22  ;;  %v2015_v41 = vpop.f32.mrb[155].mxu0  ;;  %v2672_v43 = vmax.f32 %v2203_v34, 0.0  ;;  %v2207_v33 = vadd.f32 %v2206_v39, %v6880_v55  ;;  %v2208_v44 = vpop.f32.mrb[155].mxu1 }
 0x237   : > { %v2671_v45 = vmax.f32 %v2012_v38, 0.0  ;;  %v2016_v46 = vadd.f32 %v2015_v41, %v6857_v29  ;;  %v2673_v17 = vmax.f32 %v2205_v21, 0.0  ;;  %v2209_v42 = vadd.f32 %v2208_v44, %v6885_v3  ;;  %5177 = vmatpush3.bf16.msra.mxu1 %v5527_v24  ;;  %v5543_v44 = vld [vmem:[%s7341_s3 + $0x2a0] sm:$0xff]  }
 0x238   : > { %v3215_v49 = vadd.f32 %v3214_v59, %v2670_v56  ;;  %v2684_v48 = vmax.f32 %v2014_v40, 0.0  ;;  %v3277_v32 = vadd.f32 %v3276_v23, %v2672_v43  ;;  %v2686_v47 = vmax.f32 %v2207_v33, 0.0  ;;  %5178 = vmatprep.subr.bf16.mxu1 %v5530_v36 }
 0x239   : > { %v3246_v30 = vadd.f32 %v3245_v61, %v2671_v45  ;;  %v2685_v37 = vmax.f32 %v2016_v46, 0.0  ;;  %v3308_v60 = vadd.f32 %v3307_v18, %v2673_v17  ;;  %v2687_v50 = vmax.f32 %v2209_v42, 0.0 }
 0x23a   : > { %v3216_v51 = vadd.f32 %v3215_v49, %v2684_v48  ;;  %v3278_v62 = vadd.f32 %v3277_v32, %v2686_v47 }
 0x23b   : > { %v3247_v8 = vadd.f32 %v3246_v30, %v2685_v37  ;;  %v2019_v63 = vpop.f32.mrb[156].mxu0  ;;  %v3309_v0 = vadd.f32 %v3308_v60, %v2687_v50  ;;  %v2212_v1 = vpop.f32.mrb[156].mxu1  ;;  %5179 = vmatpush3.bf16.msra.mxu1 %v5531_v26  ;;  %v5546_v26 = vld [vmem:[%s7341_s3 + $0x2e8] sm:$0xff]  }
 0x23c   : > { %v2020_v19 = vadd.f32 %v2019_v63, %v6853_v27  ;;  %v2021_v5 = vpop.f32.mrb[157].mxu0  ;;  %v2213_v6 = vadd.f32 %v2212_v1, %v6880_v55  ;;  %v2214_v2 = vpop.f32.mrb[157].mxu1  ;;  %5180 = vmatprep.subr.bf16.mxu1 %v5534_v16  ;;  %v5547_v1 = vld [vmem:[%s7341_s3 + $0x2a8] sm:$0xff]  }
 0x23d   : > { %v2022_v9 = vadd.f32 %v2021_v5, %v6857_v29  ;;  %v2023_v54 = vpop.f32.mrb[158].mxu0  ;;  %v2215_v11 = vadd.f32 %v2214_v2, %v6885_v3  ;;  %v2216_v15 = vpop.f32.mrb[158].mxu1  ;;  %v5550_v2 = vld [vmem:[%s7341_s3 + $0x2f0] sm:$0xff]  }
 0x23e   : > { %v2698_v20 = vmax.f32 %v2020_v19, 0.0  ;;  %v2024_v57 = vadd.f32 %v2023_v54, %v6853_v27  ;;  %v2025_v58 = vpop.f32.mrb[159].mxu0  ;;  %v2700_v14 = vmax.f32 %v2213_v6, 0.0  ;;  %v2217_v59 = vadd.f32 %v2216_v15, %v6880_v55  ;;  %v2218_v22 = vpop.f32.mrb[159].mxu1 }
 0x23f   : > { %v2699_v23 = vmax.f32 %v2022_v9, 0.0  ;;  %v2026_v61 = vadd.f32 %v2025_v58, %v6857_v29  ;;  %v2701_v25 = vmax.f32 %v2215_v11, 0.0  ;;  %v2219_v18 = vadd.f32 %v2218_v22, %v6885_v3  ;;  %5181 = vmatpush3.bf16.msra.mxu1 %v5535_v4  ;;  %v5551_v22 = vld [vmem:[%s7341_s3 + $0x2b0] sm:$0xff]  }
 0x240   : > { %v3217_v24 = vadd.f32 %v3216_v51, %v2698_v20  ;;  %v2712_v10 = vmax.f32 %v2024_v57, 0.0  ;;  %v3279_v28 = vadd.f32 %v3278_v62, %v2700_v14  ;;  %v2714_v34 = vmax.f32 %v2217_v59, 0.0  ;;  %5182 = vmatprep.subr.bf16.mxu1 %v5538_v7 }
 0x241   : > { %v3248_v36 = vadd.f32 %v3247_v8, %v2699_v23  ;;  %v2713_v38 = vmax.f32 %v2026_v61, 0.0  ;;  %v3310_v53 = vadd.f32 %v3309_v0, %v2701_v25  ;;  %v2715_v21 = vmax.f32 %v2219_v18, 0.0 }
 0x242   : > { %v3218_v39 = vadd.f32 %v3217_v24, %v2712_v10  ;;  %v3280_v56 = vadd.f32 %v3279_v28, %v2714_v34 }
 0x243   : > { %v3249_v40 = vadd.f32 %v3248_v36, %v2713_v38  ;;  %v2029_v41 = vpop.f32.mrb[160].mxu0  ;;  %v3311_v43 = vadd.f32 %v3310_v53, %v2715_v21  ;;  %v2222_v33 = vpop.f32.mrb[160].mxu1  ;;  %5183 = vmatpush3.bf16.msra.mxu1 %v5539_v31  ;;  %v5554_v31 = vld [vmem:[%s7341_s3 + $0x2f8] sm:$0xff]  }
 0x244   : > { %v2030_v45 = vadd.f32 %v2029_v41, %v6853_v27  ;;  %v2031_v46 = vpop.f32.mrb[161].mxu0  ;;  %v2223_v17 = vadd.f32 %v2222_v33, %v6880_v55  ;;  %v2224_v42 = vpop.f32.mrb[161].mxu1  ;;  %5184 = vmatprep.subr.bf16.mxu1 %v5542_v35  ;;  %v5555_v33 = vld [vmem:[%s7341_s3 + $0x2b8] sm:$0xff]  }
 0x245   : > { %v2032_v49 = vadd.f32 %v2031_v46, %v6857_v29  ;;  %v2033_v48 = vpop.f32.mrb[162].mxu0  ;;  %v2225_v32 = vadd.f32 %v2224_v42, %v6885_v3  ;;  %v2226_v47 = vpop.f32.mrb[162].mxu1 }
 0x246   : > { %v2726_v16 = vmax.f32 %v2030_v45, 0.0  ;;  %v2034_v30 = vadd.f32 %v2033_v48, %v6853_v27  ;;  %v2035_v37 = vpop.f32.mrb[163].mxu0  ;;  %v2728_v60 = vmax.f32 %v2223_v17, 0.0  ;;  %v2227_v50 = vadd.f32 %v2226_v47, %v6880_v55  ;;  %v2228_v51 = vpop.f32.mrb[163].mxu1 }
 0x247   : > { %v2727_v62 = vmax.f32 %v2032_v49, 0.0  ;;  %v2036_v8 = vadd.f32 %v2035_v37, %v6857_v29  ;;  %v2729_v63 = vmax.f32 %v2225_v32, 0.0  ;;  %v2229_v0 = vadd.f32 %v2228_v51, %v6885_v3  ;;  %5185 = vmatpush3.bf16.msra.mxu1 %v5543_v44 }
 0x248   : > { %v3219_v4 = vadd.f32 %v3218_v39, %v2726_v16  ;;  %v2740_v19 = vmax.f32 %v2034_v30, 0.0  ;;  %v3281_v5 = vadd.f32 %v3280_v56, %v2728_v60  ;;  %v2742_v6 = vmax.f32 %v2227_v50, 0.0  ;;  %5186 = vmatprep.subr.bf16.mxu1 %v5546_v26 }
 0x249   : > { %v3250_v7 = vadd.f32 %v3249_v40, %v2727_v62  ;;  %v2741_v9 = vmax.f32 %v2036_v8, 0.0  ;;  %v3312_v54 = vadd.f32 %v3311_v43, %v2729_v63  ;;  %v2743_v11 = vmax.f32 %v2229_v0, 0.0 }
 0x24a   : > { %v3220_v15 = vadd.f32 %v3219_v4, %v2740_v19  ;;  %v3282_v20 = vadd.f32 %v3281_v5, %v2742_v6 }
 0x24b   : > { %v3251_v57 = vadd.f32 %v3250_v7, %v2741_v9  ;;  %v2039_v58 = vpop.f32.mrb[164].mxu0  ;;  %v3313_v14 = vadd.f32 %v3312_v54, %v2743_v11  ;;  %v2232_v59 = vpop.f32.mrb[164].mxu1  ;;  %5187 = vmatpush3.bf16.msra.mxu1 %v5547_v1 }
 0x24c   : > { %v2040_v23 = vadd.f32 %v2039_v58, %v6853_v27  ;;  %v2041_v61 = vpop.f32.mrb[165].mxu0  ;;  %v2233_v25 = vadd.f32 %v2232_v59, %v6880_v55  ;;  %v2234_v18 = vpop.f32.mrb[165].mxu1  ;;  %5188 = vmatprep.subr.bf16.mxu1 %v5550_v2 }
 0x24d   : > { %v2042_v24 = vadd.f32 %v2041_v61, %v6857_v29  ;;  %v2043_v10 = vpop.f32.mrb[166].mxu0  ;;  %v2235_v28 = vadd.f32 %v2234_v18, %v6885_v3  ;;  %v2236_v34 = vpop.f32.mrb[166].mxu1 }
 0x24e   : > { %v2754_v35 = vmax.f32 %v2040_v23, 0.0  ;;  %v2044_v36 = vadd.f32 %v2043_v10, %v6853_v27  ;;  %v2045_v38 = vpop.f32.mrb[167].mxu0  ;;  %v2756_v53 = vmax.f32 %v2233_v25, 0.0  ;;  %v2237_v21 = vadd.f32 %v2236_v34, %v6880_v55  ;;  %v2238_v39 = vpop.f32.mrb[167].mxu1 }
 0x24f   : > { %v2755_v56 = vmax.f32 %v2042_v24, 0.0  ;;  %v2046_v40 = vadd.f32 %v2045_v38, %v6857_v29  ;;  %v2757_v41 = vmax.f32 %v2235_v28, 0.0  ;;  %v2239_v43 = vadd.f32 %v2238_v39, %v6885_v3  ;;  %5189 = vmatpush3.bf16.msra.mxu1 %v5551_v22 }
 0x250   : > { %v3221_v44 = vadd.f32 %v3220_v15, %v2754_v35  ;;  %v2768_v45 = vmax.f32 %v2044_v36, 0.0  ;;  %v3283_v46 = vadd.f32 %v3282_v20, %v2756_v53  ;;  %v2770_v17 = vmax.f32 %v2237_v21, 0.0  ;;  %5190 = vmatprep.subr.bf16.mxu1 %v5554_v31 }
 0x251   : > { %v3252_v42 = vadd.f32 %v3251_v57, %v2755_v56  ;;  %v2769_v26 = vmax.f32 %v2046_v40, 0.0  ;;  %v3314_v49 = vadd.f32 %v3313_v14, %v2757_v41  ;;  %v2771_v48 = vmax.f32 %v2239_v43, 0.0 }
 0x252   : > { %v3222_v32 = vadd.f32 %v3221_v44, %v2768_v45  ;;  %v3284_v47 = vadd.f32 %v3283_v46, %v2770_v17 }
 0x253   : > { %v3253_v16 = vadd.f32 %v3252_v42, %v2769_v26  ;;  %v2049_v30 = vpop.f32.mrb[168].mxu0  ;;  %v3315_v37 = vadd.f32 %v3314_v49, %v2771_v48  ;;  %v2242_v60 = vpop.f32.mrb[168].mxu1  ;;  %5191 = vmatpush3.bf16.msra.mxu1 %v5555_v33 }
 0x254   : > { %v2050_v50 = vadd.f32 %v2049_v30, %v6853_v27  ;;  %v2051_v51 = vpop.f32.mrb[169].mxu0  ;;  %v2243_v62 = vadd.f32 %v2242_v60, %v6880_v55  ;;  %v2244_v8 = vpop.f32.mrb[169].mxu1 }
 0x255   : > { %v2052_v63 = vadd.f32 %v2051_v51, %v6857_v29  ;;  %v2053_v0 = vpop.f32.mrb[170].mxu0  ;;  %v2245_v1 = vadd.f32 %v2244_v8, %v6885_v3  ;;  %v2246_v4 = vpop.f32.mrb[170].mxu1 }
 0x256   : > { %v2782_v19 = vmax.f32 %v2050_v50, 0.0  ;;  %v2054_v5 = vadd.f32 %v2053_v0, %v6853_v27  ;;  %v2055_v6 = vpop.f32.mrb[171].mxu0  ;;  %v2784_v2 = vmax.f32 %v2243_v62, 0.0  ;;  %v2247_v7 = vadd.f32 %v2246_v4, %v6880_v55  ;;  %v2248_v9 = vpop.f32.mrb[171].mxu1 }
 0x257   : > { %v2783_v54 = vmax.f32 %v2052_v63, 0.0  ;;  %v2056_v11 = vadd.f32 %v2055_v6, %v6857_v29  ;;  %v2785_v15 = vmax.f32 %v2245_v1, 0.0  ;;  %v2249_v20 = vadd.f32 %v2248_v9, %v6885_v3 }
 0x258   : > { %v3223_v57 = vadd.f32 %v3222_v32, %v2782_v19  ;;  %v2796_v58 = vmax.f32 %v2054_v5, 0.0  ;;  %v3285_v14 = vadd.f32 %v3284_v47, %v2784_v2  ;;  %v2798_v59 = vmax.f32 %v2247_v7, 0.0 }
 0x259   : > { %v3254_v22 = vadd.f32 %v3253_v16, %v2783_v54  ;;  %v2797_v23 = vmax.f32 %v2056_v11, 0.0  ;;  %v3316_v61 = vadd.f32 %v3315_v37, %v2785_v15  ;;  %v2799_v25 = vmax.f32 %v2249_v20, 0.0 }
 0x25a   : > { %v3224_v18 = vadd.f32 %v3223_v57, %v2796_v58  ;;  %v3286_v31 = vadd.f32 %v3285_v14, %v2798_v59 }
 0x25b   : > { %v3255_v24 = vadd.f32 %v3254_v22, %v2797_v23  ;;  %v2059_v10 = vpop.f32.mrb[172].mxu0  ;;  %v3317_v28 = vadd.f32 %v3316_v61, %v2799_v25  ;;  %v2252_v34 = vpop.f32.mrb[172].mxu1 }
 0x25c   : > { %v2060_v35 = vadd.f32 %v2059_v10, %v6853_v27  ;;  %v2061_v36 = vpop.f32.mrb[173].mxu0  ;;  %v2253_v38 = vadd.f32 %v2252_v34, %v6880_v55  ;;  %v2254_v53 = vpop.f32.mrb[173].mxu1 }
 0x25d   : > { %v2062_v21 = vadd.f32 %v2061_v36, %v6857_v29  ;;  %v2063_v39 = vpop.f32.mrb[174].mxu0  ;;  %v2255_v56 = vadd.f32 %v2254_v53, %v6885_v3  ;;  %v2256_v40 = vpop.f32.mrb[174].mxu1 }
 0x25e   : > { %v2810_v41 = vmax.f32 %v2060_v35, 0.0  ;;  %v2064_v43 = vadd.f32 %v2063_v39, %v6853_v27  ;;  %v2065_v33 = vpop.f32.mrb[175].mxu0  ;;  %v2812_v44 = vmax.f32 %v2253_v38, 0.0  ;;  %v2257_v45 = vadd.f32 %v2256_v40, %v6880_v55  ;;  %v2258_v46 = vpop.f32.mrb[175].mxu1 }
 0x25f   : > { %v2811_v17 = vmax.f32 %v2062_v21, 0.0  ;;  %v2066_v42 = vadd.f32 %v2065_v33, %v6857_v29  ;;  %v2813_v26 = vmax.f32 %v2255_v56, 0.0  ;;  %v2259_v49 = vadd.f32 %v2258_v46, %v6885_v3 }
 0x260   : > { %v3225_v48 = vadd.f32 %v3224_v18, %v2810_v41  ;;  %v2824_v32 = vmax.f32 %v2064_v43, 0.0  ;;  %v3287_v47 = vadd.f32 %v3286_v31, %v2812_v44  ;;  %v2826_v16 = vmax.f32 %v2257_v45, 0.0 }
 0x261   : > { %v3256_v30 = vadd.f32 %v3255_v24, %v2811_v17  ;;  %v2825_v37 = vmax.f32 %v2066_v42, 0.0  ;;  %v3318_v60 = vadd.f32 %v3317_v28, %v2813_v26  ;;  %v2827_v50 = vmax.f32 %v2259_v49, 0.0 }
 0x262   : > { %v3226_v51 = vadd.f32 %v3225_v48, %v2824_v32  ;;  %v3288_v62 = vadd.f32 %v3287_v47, %v2826_v16 }
 0x263   : > { %v3257_v8 = vadd.f32 %v3256_v30, %v2825_v37  ;;  %v2069_v63 = vpop.f32.mrb[176].mxu0  ;;  %v3319_v0 = vadd.f32 %v3318_v60, %v2827_v50  ;;  %v2262_v1 = vpop.f32.mrb[176].mxu1 }
 0x264   : > { %v2070_v4 = vadd.f32 %v2069_v63, %v6853_v27  ;;  %v2071_v19 = vpop.f32.mrb[177].mxu0  ;;  %v2263_v5 = vadd.f32 %v2262_v1, %v6880_v55  ;;  %v2264_v6 = vpop.f32.mrb[177].mxu1 }
 0x265   : > { %v2072_v2 = vadd.f32 %v2071_v19, %v6857_v29  ;;  %v2073_v7 = vpop.f32.mrb[178].mxu0  ;;  %v2265_v9 = vadd.f32 %v2264_v6, %v6885_v3  ;;  %v2266_v54 = vpop.f32.mrb[178].mxu1 }
 0x266   : > { %v2838_v11 = vmax.f32 %v2070_v4, 0.0  ;;  %v2074_v15 = vadd.f32 %v2073_v7, %v6853_v27  ;;  %v2075_v20 = vpop.f32.mrb[179].mxu0  ;;  %v2840_v57 = vmax.f32 %v2263_v5, 0.0  ;;  %v2267_v58 = vadd.f32 %v2266_v54, %v6880_v55  ;;  %v2268_v14 = vpop.f32.mrb[179].mxu1 }
 0x267   : > { %v2839_v59 = vmax.f32 %v2072_v2, 0.0  ;;  %v2076_v22 = vadd.f32 %v2075_v20, %v6857_v29  ;;  %v2841_v23 = vmax.f32 %v2265_v9, 0.0  ;;  %v2269_v61 = vadd.f32 %v2268_v14, %v6885_v3 }
 0x268   : > { %v3227_v25 = vadd.f32 %v3226_v51, %v2838_v11  ;;  %v2852_v18 = vmax.f32 %v2074_v15, 0.0  ;;  %v3289_v31 = vadd.f32 %v3288_v62, %v2840_v57  ;;  %v2854_v24 = vmax.f32 %v2267_v58, 0.0 }
 0x269   : > { %v3258_v10 = vadd.f32 %v3257_v8, %v2839_v59  ;;  %v2853_v28 = vmax.f32 %v2076_v22, 0.0  ;;  %v3320_v34 = vadd.f32 %v3319_v0, %v2841_v23  ;;  %v2855_v35 = vmax.f32 %v2269_v61, 0.0  ;;  %v5556_v22 = vld [vmem:[%s7341_s3 + $0x340] sm:$0xff]  }
 0x26a   : > { %v3228_v36 = vadd.f32 %v3227_v25, %v2852_v18  ;;  %v3290_v38 = vadd.f32 %v3289_v31, %v2854_v24  ;;  %5198 = vmatprep.subr.bf16.mxu0 %v5556_v22 }
 0x26b   : > { %v3259_v53 = vadd.f32 %v3258_v10, %v2853_v28  ;;  %v2079_v21 = vpop.f32.mrb[180].mxu0  ;;  %v3321_v39 = vadd.f32 %v3320_v34, %v2855_v35  ;;  %v2272_v56 = vpop.f32.mrb[180].mxu1 }
 0x26c   : > { %v2080_v40 = vadd.f32 %v2079_v21, %v6853_v27  ;;  %v2081_v41 = vpop.f32.mrb[181].mxu0  ;;  %v2273_v43 = vadd.f32 %v2272_v56, %v6880_v55  ;;  %v2274_v33 = vpop.f32.mrb[181].mxu1 }
 0x26d   : > { %v2082_v44 = vadd.f32 %v2081_v41, %v6857_v29  ;;  %v2083_v45 = vpop.f32.mrb[182].mxu0  ;;  %v2275_v46 = vadd.f32 %v2274_v33, %v6885_v3  ;;  %v2276_v17 = vpop.f32.mrb[182].mxu1 }
 0x26e   : > { %v2866_v42 = vmax.f32 %v2080_v40, 0.0  ;;  %v2084_v26 = vadd.f32 %v2083_v45, %v6853_v27  ;;  %v2085_v49 = vpop.f32.mrb[183].mxu0  ;;  %v2868_v48 = vmax.f32 %v2273_v43, 0.0  ;;  %v2277_v32 = vadd.f32 %v2276_v17, %v6880_v55  ;;  %v2278_v47 = vpop.f32.mrb[183].mxu1 }
 0x26f   : > { %v2867_v16 = vmax.f32 %v2082_v44, 0.0  ;;  %v2086_v30 = vadd.f32 %v2085_v49, %v6857_v29  ;;  %v2869_v37 = vmax.f32 %v2275_v46, 0.0  ;;  %v2279_v60 = vadd.f32 %v2278_v47, %v6885_v3 }
 0x270   : > { %v3229_v50 = vadd.f32 %v3228_v36, %v2866_v42  ;;  %v2880_v51 = vmax.f32 %v2084_v26, 0.0  ;;  %v3291_v62 = vadd.f32 %v3290_v38, %v2868_v48  ;;  %v2882_v8 = vmax.f32 %v2277_v32, 0.0 }
 0x271   : > { %v3260_v63 = vadd.f32 %v3259_v53, %v2867_v16  ;;  %v2881_v0 = vmax.f32 %v2086_v30, 0.0  ;;  %v3322_v1 = vadd.f32 %v3321_v39, %v2869_v37  ;;  %v2883_v4 = vmax.f32 %v2279_v60, 0.0  ;;  %v5607_v37 = vld [vmem:[%s7340_s2 + $0x8] sm:$0x3f] }
 0x272   : > { %v3230_v19 = vadd.f32 %v3229_v50, %v2880_v51  ;;  %v3292_v5 = vadd.f32 %v3291_v62, %v2882_v8  ;;  %v7158_v60 = vrot.slane %v5607_v37, %v435_v12  ;;  %v7162_v50 = vrot.slane %v5607_v37, %v439_v13 }
 0x273   : > { %v3261_v6 = vadd.f32 %v3260_v63, %v2881_v0  ;;  %v2089_v2 = vpop.f32.mrb[184].mxu0  ;;  %v3323_v7 = vadd.f32 %v3322_v1, %v2883_v4  ;;  %v2282_v9 = vpop.f32.mrb[184].mxu1 }
 0x274   : > { %v2090_v54 = vadd.f32 %v2089_v2, %v6853_v27  ;;  %v2091_v11 = vpop.f32.mrb[185].mxu0  ;;  %v2283_v15 = vadd.f32 %v2282_v9, %v6880_v55  ;;  %v2284_v20 = vpop.f32.mrb[185].mxu1 }
 0x275   : > { %v2092_v57 = vadd.f32 %v2091_v11, %v6857_v29  ;;  %v2093_v58 = vpop.f32.mrb[186].mxu0  ;;  %v2285_v14 = vadd.f32 %v2284_v20, %v6885_v3  ;;  %v2286_v59 = vpop.f32.mrb[186].mxu1 }
 0x276   : > { %v2894_v23 = vmax.f32 %v2090_v54, 0.0  ;;  %v2094_v61 = vadd.f32 %v2093_v58, %v6853_v27  ;;  %v2095_v25 = vpop.f32.mrb[187].mxu0  ;;  %v2896_v18 = vmax.f32 %v2283_v15, 0.0  ;;  %v2287_v31 = vadd.f32 %v2286_v59, %v6880_v55  ;;  %v2288_v24 = vpop.f32.mrb[187].mxu1 }
 0x277   : > { %v2895_v10 = vmax.f32 %v2092_v57, 0.0  ;;  %v2096_v28 = vadd.f32 %v2095_v25, %v6857_v29  ;;  %v2897_v34 = vmax.f32 %v2285_v14, 0.0  ;;  %v2289_v35 = vadd.f32 %v2288_v24, %v6885_v3 }
 0x278   : > { %v3231_v36 = vadd.f32 %v3230_v19, %v2894_v23  ;;  %v2908_v38 = vmax.f32 %v2094_v61, 0.0  ;;  %v3293_v53 = vadd.f32 %v3292_v5, %v2896_v18  ;;  %v2910_v21 = vmax.f32 %v2287_v31, 0.0 }
 0x279   : > { %v3262_v39 = vadd.f32 %v3261_v6, %v2895_v10  ;;  %v2909_v56 = vmax.f32 %v2096_v28, 0.0  ;;  %v3324_v40 = vadd.f32 %v3323_v7, %v2897_v34  ;;  %v2911_v41 = vmax.f32 %v2289_v35, 0.0 }
 0x27a   : > { %v3232_v43 = vadd.f32 %v3231_v36, %v2908_v38  ;;  %v3294_v33 = vadd.f32 %v3293_v53, %v2910_v21 }
 0x27b   : > { %v3263_v44 = vadd.f32 %v3262_v39, %v2909_v56  ;;  %v2099_v45 = vpop.f32.mrb[188].mxu0  ;;  %v3325_v46 = vadd.f32 %v3324_v40, %v2911_v41  ;;  %v2292_v17 = vpop.f32.mrb[188].mxu1 }
 0x27c   : > { %v2100_v42 = vadd.f32 %v2099_v45, %v6853_v27  ;;  %v2101_v26 = vpop.f32.mrb[189].mxu0  ;;  %v2293_v49 = vadd.f32 %v2292_v17, %v6880_v55  ;;  %v2294_v48 = vpop.f32.mrb[189].mxu1 }
 0x27d   : > { %v2102_v32 = vadd.f32 %v2101_v26, %v6857_v29  ;;  %v2103_v47 = vpop.f32.mrb[190].mxu0  ;;  %v2295_v16 = vadd.f32 %v2294_v48, %v6885_v3  ;;  %v2296_v30 = vpop.f32.mrb[190].mxu1 }
 0x27e   : > { %v2922_v51 = vmax.f32 %v2100_v42, 0.0  ;;  %v2104_v62 = vadd.f32 %v2103_v47, %v6853_v27  ;;  %v2924_v8 = vmax.f32 %v2293_v49, 0.0  ;;  %v2105_v63 = vpop.f32.mrb[191].mxu0  ;;  %v2297_v0 = vadd.f32 %v2296_v30, %v6880_v55  ;;  %v2298_v1 = vpop.f32.mrb[191].mxu1 }
 0x27f   : > { %v2923_v4 = vmax.f32 %v2102_v32, 0.0  ;;  %v2106_v19 = vadd.f32 %v2105_v63, %v6857_v29  ;;  %v2925_v5 = vmax.f32 %v2295_v16, 0.0  ;;  %v2299_v6 = vadd.f32 %v2298_v1, %v6885_v3 }
 0x280   : > { %v3233_v12 = vadd.f32 %v3232_v43, %v2922_v51  ;;  %v2936_v2 = vmax.f32 %v2104_v62, 0.0  ;;  %v3295_v7 = vadd.f32 %v3294_v33, %v2924_v8  ;;  %v2938_v52 = vmax.f32 %v2297_v0, 0.0 }
 0x281   : > { %v3264_v13 = vadd.f32 %v3263_v44, %v2923_v4  ;;  %v2937_v9 = vmax.f32 %v2106_v19, 0.0  ;;  %v3326_v54 = vadd.f32 %v3325_v46, %v2925_v5  ;;  %v2939_v11 = vmax.f32 %v2299_v6, 0.0 }
 0x282   : > { %v3234_v27 = vadd.f32 %v3233_v12, %v2936_v2  ;;  %v3296_v15 = vadd.f32 %v3295_v7, %v2938_v52 }
 0x283   : > { %v3265_v20 = vadd.f32 %v3264_v13, %v2937_v9  ;;  %v3327_v57 = vadd.f32 %v3326_v54, %v2939_v11  ;;  %v2335_v55 = vpop.f32.mrb[192].mxu0  ;;  %v5082_v58 = vpop.f32.mrb[192].mxu1 }
 0x284   : > { %v3483_v14 = vrot.slane %v3234_v27, 4  ;;  %v3495_v59 = vrot.slane %v3296_v15, 4  ;;  %v2336_v29 = vadd.f32 %v2335_v55, %v7158_v60  ;;  %v2337_v22 = vpop.f32.mrb[193].mxu0  ;;  %v5083_v3 = vpop.f32.mrb[193].mxu1 }
 0x285   : > { %v3489_v23 = vrot.slane %v3265_v20, 4  ;;  %v3501_v61 = vrot.slane %v3327_v57, 4  ;;  %v2338_v25 = vadd.f32 %v2337_v22, %v7162_v50  ;;  %v7170_v18 = vadd.f32 %v5083_v3, %v5082_v58  ;;  %v2339_v31 = vpop.f32.mrb[194].mxu0  ;;  %v5085_v24 = vpop.f32.mrb[194].mxu1  ;;  %v5557_v22 = vld [vmem:[%s7341_s3 + $0x300] sm:$0xff]  }
 0x286   : > { %v3484_v10 = vadd.f32 %v3483_v14, %v3234_v27  ;;  %v3496_v28 = vadd.f32 %v3495_v59, %v3296_v15  ;;  %v2340_v34 = vadd.f32 %v2339_v31, %v7158_v60  ;;  %v2341_v35 = vpop.f32.mrb[195].mxu0  ;;  %v5086_v36 = vpop.f32.mrb[195].mxu1  ;;  %v2506_v21 = vmax.f32 %v2336_v29, 0.0 }
 0x287   : > { %v3490_v38 = vadd.f32 %v3489_v23, %v3265_v20  ;;  %v3502_v53 = vadd.f32 %v3501_v61, %v3327_v57  ;;  %v2342_v41 = vadd.f32 %v2341_v35, %v7162_v50  ;;  %v2507_v44 = vmax.f32 %v2338_v25, 0.0  ;;  %v5558_v25 = vld [vmem:[%s7341_s3 + $0x348] sm:$0xff]  }
 0x288   : > { %v3485_v39 = vrot.slane %v3484_v10, 2  ;;  %v3497_v56 = vrot.slane %v3496_v28, 2  ;;  %v2520_v40 = vmax.f32 %v2340_v34, 0.0 }
 0x289   : > { %v3491_v43 = vrot.slane %v3490_v38, 2  ;;  %v3503_v33 = vrot.slane %v3502_v53, 2  ;;  %v2521_v42 = vmax.f32 %v2342_v41, 0.0 }
 0x28a   : > { %v3486_v45 = vadd.f32 %v3485_v39, %v3484_v10  ;;  %v3498_v46 = vadd.f32 %v3497_v56, %v3496_v28  ;;  %v3328_v17 = vadd.f32 %v2520_v40, %v2506_v21  ;;  %v5560_v39 = vld [vmem:[%s7341_s3 + $0x350] sm:$0xff]  }
 0x28b   : > { %v2345_v26 = vpop.f32.mrb[196].mxu0  ;;  %v3492_v49 = vadd.f32 %v3491_v43, %v3490_v38  ;;  %v3504_v48 = vadd.f32 %v3503_v33, %v3502_v53  ;;  %v3359_v16 = vadd.f32 %v2521_v42, %v2507_v44  ;;  %v5559_v38 = vld [vmem:[%s7341_s3 + $0x308] sm:$0xff]   ;;  %v5561_v44 = vld [vmem:[%s7341_s3 + $0x310] sm:$0xff]  }
 0x28c   : > { %v3487_v32 = vrot.slane %v3486_v45, 1  ;;  %v3499_v47 = vrot.slane %v3498_v46, 1  ;;  %v2346_v30 = vadd.f32 %v2345_v26, %v7158_v60  ;;  %v2347_v37 = vpop.f32.mrb[197].mxu0 }
 0x28d   : > { %v2348_v51 = vadd.f32 %v2347_v37, %v7162_v50  ;;  %v2349_v62 = vpop.f32.mrb[198].mxu0  ;;  %v3493_v8 = vrot.slane %v3492_v49, 1  ;;  %v3505_v63 = vrot.slane %v3504_v48, 1 }
 0x28e   : > { %v3488_v0 = vadd.f32 %v3487_v32, %v3486_v45  ;;  %v2534_v1 = vmax.f32 %v2346_v30, 0.0  ;;  %v2350_v4 = vadd.f32 %v2349_v62, %v7158_v60  ;;  %v2351_v19 = vpop.f32.mrb[199].mxu0  ;;  %v3500_v5 = vadd.f32 %v3499_v47, %v3498_v46  ;;  %v5563_v30 = vld [vmem:[%s7341_s3 + $0x318] sm:$0xff]   ;;  %v5564_v62 = vld [vmem:[%s7341_s3 + $0x360] sm:$0xff]  }
 0x28f   : > { %v2535_v6 = vmax.f32 %v2348_v51, 0.0  ;;  %v2352_v12 = vadd.f32 %v2351_v19, %v7162_v50  ;;  %v3494_v2 = vadd.f32 %v3493_v8, %v3492_v49  ;;  %v3506_v7 = vadd.f32 %v3505_v63, %v3504_v48 }
 0x290   : > { %v3527_v52 = vmul.f32 0.00390625, %v3488_v0  ;;  %v3329_v13 = vadd.f32 %v3328_v17, %v2534_v1  ;;  %v2548_v9 = vmax.f32 %v2350_v4, 0.0  ;;  %v3529_v54 = vmul.f32 0.00390625, %v3500_v5  ;;  %v5562_v17 = vld [vmem:[%s7341_s3 + $0x358] sm:$0xff]   ;;  %v3771_v0 = vld [vmem:[%s7342_s4] sm:$0x1] }
 0x291   : > { %v3360_v11 = vadd.f32 %v3359_v16, %v2535_v6  ;;  %v2549_v27 = vmax.f32 %v2352_v12, 0.0  ;;  %v3528_v15 = vmul.f32 0.00390625, %v3494_v2  ;;  %v3530_v20 = vmul.f32 0.00390625, %v3506_v7  ;;  %v5565_v6 = vld [vmem:[%s7341_s3 + $0x320] sm:$0xff]  }
 0x292   : > { %v3330_v57 = vadd.f32 %v3329_v13, %v2548_v9  ;;  %v3543_v55 = vpack.c.bf16 %v3529_v54, %v3529_v54  ;;  %v3541_v3 = vpack.c.bf16 %v3527_v52, %v3527_v52  ;;  %v5566_v52 = vld [vmem:[%s7341_s3 + $0x368] sm:$0xff]   ;;  %v4479_v13 = vadd.f32 %v7170_v18, %v3771_v0 }
 0x293   : > { %v3361_v58 = vadd.f32 %v3360_v11, %v2549_v27  ;;  %v2355_v14 = vpop.f32.mrb[200].mxu0  ;;  %v3542_v59 = vpack.c.bf16 %v3528_v15, %v3528_v15  ;;  %v3544_v29 = vpack.c.bf16 %v3530_v20, %v3530_v20  ;;  %v5567_v18 = vld [vmem:[%s7341_s3 + $0x328] sm:$0xff]  }
 0x294   : > { %v2356_v23 = vadd.f32 %v2355_v14, %v7158_v60  ;;  %v2357_v61 = vpop.f32.mrb[201].mxu0 }
 0x295   : > { %v2358_v31 = vadd.f32 %v2357_v61, %v7162_v50  ;;  %v2359_v24 = vpop.f32.mrb[202].mxu0  ;;  %4636 = vmatprep.mubr.bf16.mxu0 %v3542_v59  ;;  %4676 = vmatprep.mubr.bf16.mxu1 %v3544_v29 }
 0x296   : > { %v2562_v10 = vmax.f32 %v2356_v23, 0.0  ;;  %v2360_v28 = vadd.f32 %v2359_v24, %v7158_v60  ;;  %v2361_v34 = vpop.f32.mrb[203].mxu0  ;;  %4637 = vmatmul.mubr.bf16.vlgmr.msra.gmra.mrb[0].mxu0 %v3541_v3  ;;  %4677 = vmatmul.mubr.bf16.vlgmr.msra.gmra.mrb[208].mxu1 %v3543_v55  ;;  %v5568_v3 = vld [vmem:[%s7341_s3 + $0x370] sm:$0xff]  }
 0x297   : > { %v2563_v35 = vmax.f32 %v2358_v31, 0.0  ;;  %v2362_v36 = vadd.f32 %v2361_v34, %v7162_v50  ;;  %5199 = vmatpush3.bf16.msra.mxu0 %v5557_v22 }
 0x298   : > { %v3331_v53 = vadd.f32 %v3330_v57, %v2562_v10  ;;  %v2576_v21 = vmax.f32 %v2360_v28, 0.0  ;;  %5200 = vmatprep.subr.bf16.mxu0 %v5558_v25  ;;  %v5569_v10 = vld [vmem:[%s7341_s3 + $0x330] sm:$0xff]  }
 0x299   : > { %v3362_v56 = vadd.f32 %v3361_v58, %v2563_v35  ;;  %v2577_v40 = vmax.f32 %v2362_v36, 0.0  ;;  %v5570_v35 = vld [vmem:[%s7341_s3 + $0x378] sm:$0xff]  }
 0x29a   : > { %v3332_v41 = vadd.f32 %v3331_v53, %v2576_v21 }
 0x29b   : > { %v3363_v43 = vadd.f32 %v3362_v56, %v2577_v40  ;;  %v2365_v33 = vpop.f32.mrb[204].mxu0  ;;  %5201 = vmatpush3.bf16.msra.mxu0 %v5559_v38 }
 0x29c   : > { %v2366_v45 = vadd.f32 %v2365_v33, %v7158_v60  ;;  %v2367_v46 = vpop.f32.mrb[205].mxu0  ;;  %5202 = vmatprep.subr.bf16.mxu0 %v5560_v39 }
 0x29d   : > { %v2368_v42 = vadd.f32 %v2367_v46, %v7162_v50  ;;  %v2369_v26 = vpop.f32.mrb[206].mxu0 }
 0x29e   : > { %v2590_v49 = vmax.f32 %v2366_v45, 0.0  ;;  %v2370_v48 = vadd.f32 %v2369_v26, %v7158_v60  ;;  %v2371_v32 = vpop.f32.mrb[207].mxu0 }
 0x29f   : > { %v2591_v47 = vmax.f32 %v2368_v42, 0.0  ;;  %v2372_v16 = vadd.f32 %v2371_v32, %v7162_v50  ;;  %5203 = vmatpush3.bf16.msra.mxu0 %v5561_v44 }
 0x2a0   : > { %v3333_v37 = vadd.f32 %v3332_v41, %v2590_v49  ;;  %v2604_v51 = vmax.f32 %v2370_v48, 0.0  ;;  %5204 = vmatprep.subr.bf16.mxu0 %v5562_v17  ;;  %v5571_v41 = vld [vmem:[%s7341_s3 + $0x338] sm:$0xff]  }
 0x2a1   : > { %v3364_v8 = vadd.f32 %v3363_v43, %v2591_v47  ;;  %v2605_v63 = vmax.f32 %v2372_v16, 0.0 }
 0x2a2   : > { %v3334_v1 = vadd.f32 %v3333_v37, %v2604_v51 }
 0x2a3   : > { %v3365_v4 = vadd.f32 %v3364_v8, %v2605_v63  ;;  %v5104_v19 = vpop.f32.mrb[196].mxu1  ;;  %v2375_v5 = vpop.f32.mrb[208].mxu0  ;;  %5205 = vmatpush3.bf16.msra.mxu0 %v5563_v30 }
 0x2a4   : > { %v2376_v12 = vadd.f32 %v2375_v5, %v7158_v60  ;;  %v5105_v2 = vpop.f32.mrb[197].mxu1  ;;  %v2377_v7 = vpop.f32.mrb[209].mxu0  ;;  %5206 = vmatprep.subr.bf16.mxu0 %v5564_v62 }
 0x2a5   : > { %v5106_v9 = vadd.f32 %v5105_v2, %v5104_v19  ;;  %v2378_v54 = vadd.f32 %v2377_v7, %v7162_v50  ;;  %v5107_v11 = vpop.f32.mrb[198].mxu1  ;;  %v2379_v27 = vpop.f32.mrb[210].mxu0 }
 0x2a6   : > { %v2618_v15 = vmax.f32 %v2376_v12, 0.0  ;;  %v2380_v20 = vadd.f32 %v2379_v27, %v7158_v60  ;;  %v5108_v57 = vpop.f32.mrb[199].mxu1  ;;  %v2381_v55 = vpop.f32.mrb[211].mxu0 }
 0x2a7   : > { %v7223_v58 = vadd.f32 %v5106_v9, %v4479_v13  ;;  %v2619_v14 = vmax.f32 %v2378_v54, 0.0  ;;  %v2382_v59 = vadd.f32 %v2381_v55, %v7162_v50  ;;  %5207 = vmatpush3.bf16.msra.mxu0 %v5565_v6 }
 0x2a8   : > { %v3335_v29 = vadd.f32 %v3334_v1, %v2618_v15  ;;  %v2632_v22 = vmax.f32 %v2380_v20, 0.0  ;;  %5208 = vmatprep.subr.bf16.mxu0 %v5566_v52 }
 0x2a9   : > { %v3366_v23 = vadd.f32 %v3365_v4, %v2619_v14  ;;  %v2633_v61 = vmax.f32 %v2382_v59, 0.0 }
 0x2aa   : > { %v3336_v25 = vadd.f32 %v3335_v29, %v2632_v22 }
 0x2ab   : > { %v3367_v31 = vadd.f32 %v3366_v23, %v2633_v61  ;;  %v2385_v24 = vpop.f32.mrb[212].mxu0  ;;  %5209 = vmatpush3.bf16.msra.mxu0 %v5567_v18 }
 0x2ac   : > { %v2386_v28 = vadd.f32 %v2385_v24, %v7158_v60  ;;  %v2387_v34 = vpop.f32.mrb[213].mxu0  ;;  %5210 = vmatprep.subr.bf16.mxu0 %v5568_v3 }
 0x2ad   : > { %v2388_v36 = vadd.f32 %v2387_v34, %v7162_v50  ;;  %v2389_v38 = vpop.f32.mrb[214].mxu0 }
 0x2ae   : > { %v2646_v53 = vmax.f32 %v2386_v28, 0.0  ;;  %v2390_v21 = vadd.f32 %v2389_v38, %v7158_v60  ;;  %v2391_v39 = vpop.f32.mrb[215].mxu0 }
 0x2af   : > { %v2647_v56 = vmax.f32 %v2388_v36, 0.0  ;;  %v2392_v40 = vadd.f32 %v2391_v39, %v7162_v50  ;;  %5211 = vmatpush3.bf16.msra.mxu0 %v5569_v10 }
 0x2b0   : > { %v3337_v43 = vadd.f32 %v3336_v25, %v2646_v53  ;;  %v2660_v33 = vmax.f32 %v2390_v21, 0.0  ;;  %5212 = vmatprep.subr.bf16.mxu0 %v5570_v35 }
 0x2b1   : > { %v3368_v44 = vadd.f32 %v3367_v31, %v2647_v56  ;;  %v2661_v45 = vmax.f32 %v2392_v40, 0.0 }
 0x2b2   : > { %v3338_v46 = vadd.f32 %v3337_v43, %v2660_v33 }
 0x2b3   : > { %v3369_v17 = vadd.f32 %v3368_v44, %v2661_v45  ;;  %v2395_v42 = vpop.f32.mrb[216].mxu0  ;;  %5213 = vmatpush3.bf16.msra.mxu0 %v5571_v41 }
 0x2b4   : > { %v2396_v26 = vadd.f32 %v2395_v42, %v7158_v60  ;;  %v2397_v49 = vpop.f32.mrb[217].mxu0 }
 0x2b5   : > { %v2398_v48 = vadd.f32 %v2397_v49, %v7162_v50  ;;  %v2399_v32 = vpop.f32.mrb[218].mxu0 }
 0x2b6   : > { %v2674_v47 = vmax.f32 %v2396_v26, 0.0  ;;  %v2400_v16 = vadd.f32 %v2399_v32, %v7158_v60  ;;  %v2401_v30 = vpop.f32.mrb[219].mxu0 }
 0x2b7   : > { %v2675_v37 = vmax.f32 %v2398_v48, 0.0  ;;  %v2402_v51 = vadd.f32 %v2401_v30, %v7162_v50 }
 0x2b8   : > { %v3339_v62 = vadd.f32 %v3338_v46, %v2674_v47  ;;  %v2688_v8 = vmax.f32 %v2400_v16, 0.0 }
 0x2b9   : > { %v3370_v63 = vadd.f32 %v3369_v17, %v2675_v37  ;;  %v2689_v0 = vmax.f32 %v2402_v51, 0.0 }
 0x2ba   : > { %v3340_v1 = vadd.f32 %v3339_v62, %v2688_v8 }
 0x2bb   : > { %v3371_v4 = vadd.f32 %v3370_v63, %v2689_v0  ;;  %v2405_v19 = vpop.f32.mrb[220].mxu0 }
 0x2bc   : > { %v2406_v5 = vadd.f32 %v2405_v19, %v7158_v60  ;;  %v2407_v6 = vpop.f32.mrb[221].mxu0 }
 0x2bd   : > { %v2408_v12 = vadd.f32 %v2407_v6, %v7162_v50  ;;  %v2409_v2 = vpop.f32.mrb[222].mxu0 }
 0x2be   : > { %v2702_v7 = vmax.f32 %v2406_v5, 0.0  ;;  %v2410_v52 = vadd.f32 %v2409_v2, %v7158_v60  ;;  %v2411_v13 = vpop.f32.mrb[223].mxu0 }
 0x2bf   : > { %v2703_v9 = vmax.f32 %v2408_v12, 0.0  ;;  %v2412_v54 = vadd.f32 %v2411_v13, %v7162_v50 }
 0x2c0   : > { %v3341_v11 = vadd.f32 %v3340_v1, %v2702_v7  ;;  %v2716_v27 = vmax.f32 %v2410_v52, 0.0 }
 0x2c1   : > { %v3372_v15 = vadd.f32 %v3371_v4, %v2703_v9  ;;  %v2717_v20 = vmax.f32 %v2412_v54, 0.0 }
 0x2c2   : > { %v3342_v57 = vadd.f32 %v3341_v11, %v2716_v27 }
 0x2c3   : > { %v3373_v55 = vadd.f32 %v3372_v15, %v2717_v20  ;;  %v2415_v14 = vpop.f32.mrb[224].mxu0 }
 0x2c4   : > { %v2416_v59 = vadd.f32 %v2415_v14, %v7158_v60  ;;  %v2417_v18 = vpop.f32.mrb[225].mxu0 }
 0x2c5   : > { %v2418_v29 = vadd.f32 %v2417_v18, %v7162_v50  ;;  %v2419_v22 = vpop.f32.mrb[226].mxu0 }
 0x2c6   : > { %v2730_v3 = vmax.f32 %v2416_v59, 0.0  ;;  %v2420_v23 = vadd.f32 %v2419_v22, %v7158_v60  ;;  %v2421_v61 = vpop.f32.mrb[227].mxu0 }
 0x2c7   : > { %v2731_v25 = vmax.f32 %v2418_v29, 0.0  ;;  %v2422_v31 = vadd.f32 %v2421_v61, %v7162_v50 }
 0x2c8   : > { %v3343_v24 = vadd.f32 %v3342_v57, %v2730_v3  ;;  %v2744_v10 = vmax.f32 %v2420_v23, 0.0 }
 0x2c9   : > { %v3374_v28 = vadd.f32 %v3373_v55, %v2731_v25  ;;  %v2745_v34 = vmax.f32 %v2422_v31, 0.0 }
 0x2ca   : > { %v3344_v35 = vadd.f32 %v3343_v24, %v2744_v10 }
 0x2cb   : > { %v3375_v36 = vadd.f32 %v3374_v28, %v2745_v34  ;;  %v2425_v38 = vpop.f32.mrb[228].mxu0 }
 0x2cc   : > { %v2426_v53 = vadd.f32 %v2425_v38, %v7158_v60  ;;  %v2427_v21 = vpop.f32.mrb[229].mxu0 }
 0x2cd   : > { %v2428_v39 = vadd.f32 %v2427_v21, %v7162_v50  ;;  %v2429_v56 = vpop.f32.mrb[230].mxu0 }
 0x2ce   : > { %v2758_v40 = vmax.f32 %v2426_v53, 0.0  ;;  %v2430_v41 = vadd.f32 %v2429_v56, %v7158_v60  ;;  %v2431_v43 = vpop.f32.mrb[231].mxu0 }
 0x2cf   : > { %v2759_v33 = vmax.f32 %v2428_v39, 0.0  ;;  %v2432_v44 = vadd.f32 %v2431_v43, %v7162_v50 }
 0x2d0   : > { %v3345_v45 = vadd.f32 %v3344_v35, %v2758_v40  ;;  %v2772_v46 = vmax.f32 %v2430_v41, 0.0 }
 0x2d1   : > { %v3376_v17 = vadd.f32 %v3375_v36, %v2759_v33  ;;  %v2773_v42 = vmax.f32 %v2432_v44, 0.0 }
 0x2d2   : > { %v3346_v26 = vadd.f32 %v3345_v45, %v2772_v46 }
 0x2d3   : > { %v3377_v49 = vadd.f32 %v3376_v17, %v2773_v42  ;;  %v2435_v48 = vpop.f32.mrb[232].mxu0 }
 0x2d4   : > { %v2436_v32 = vadd.f32 %v2435_v48, %v7158_v60  ;;  %v2437_v47 = vpop.f32.mrb[233].mxu0 }
 0x2d5   : > { %v2438_v16 = vadd.f32 %v2437_v47, %v7162_v50  ;;  %v2439_v30 = vpop.f32.mrb[234].mxu0 }
 0x2d6   : > { %v2786_v37 = vmax.f32 %v2436_v32, 0.0  ;;  %v2440_v51 = vadd.f32 %v2439_v30, %v7158_v60  ;;  %v2441_v62 = vpop.f32.mrb[235].mxu0 }
 0x2d7   : > { %v2787_v8 = vmax.f32 %v2438_v16, 0.0  ;;  %v2442_v63 = vadd.f32 %v2441_v62, %v7162_v50 }
 0x2d8   : > { %v3347_v0 = vadd.f32 %v3346_v26, %v2786_v37  ;;  %v2800_v1 = vmax.f32 %v2440_v51, 0.0 }
 0x2d9   : > { %v3378_v4 = vadd.f32 %v3377_v49, %v2787_v8  ;;  %v2801_v19 = vmax.f32 %v2442_v63, 0.0 }
 0x2da   : > { %v3348_v5 = vadd.f32 %v3347_v0, %v2800_v1 }
 0x2db   : > { %v3379_v6 = vadd.f32 %v3378_v4, %v2801_v19  ;;  %v2445_v12 = vpop.f32.mrb[236].mxu0 }
 0x2dc   : > { %v2446_v2 = vadd.f32 %v2445_v12, %v7158_v60  ;;  %v2447_v7 = vpop.f32.mrb[237].mxu0 }
 0x2dd   : > { %v2448_v52 = vadd.f32 %v2447_v7, %v7162_v50  ;;  %v2449_v13 = vpop.f32.mrb[238].mxu0 }
 0x2de   : > { %v2814_v9 = vmax.f32 %v2446_v2, 0.0  ;;  %v2450_v54 = vadd.f32 %v2449_v13, %v7158_v60  ;;  %v2451_v11 = vpop.f32.mrb[239].mxu0 }
 0x2df   : > { %v2815_v27 = vmax.f32 %v2448_v52, 0.0  ;;  %v2452_v15 = vadd.f32 %v2451_v11, %v7162_v50 }
 0x2e0   : > { %v3349_v20 = vadd.f32 %v3348_v5, %v2814_v9  ;;  %v2828_v57 = vmax.f32 %v2450_v54, 0.0 }
 0x2e1   : > { %v3380_v55 = vadd.f32 %v3379_v6, %v2815_v27  ;;  %v2829_v14 = vmax.f32 %v2452_v15, 0.0 }
 0x2e2   : > { %v3350_v59 = vadd.f32 %v3349_v20, %v2828_v57 }
 0x2e3   : > { %v3381_v18 = vadd.f32 %v3380_v55, %v2829_v14  ;;  %v2455_v29 = vpop.f32.mrb[240].mxu0 }
 0x2e4   : > { %v2456_v22 = vadd.f32 %v2455_v29, %v7158_v60  ;;  %v2457_v3 = vpop.f32.mrb[241].mxu0 }
 0x2e5   : > { %v2458_v23 = vadd.f32 %v2457_v3, %v7162_v50  ;;  %v2459_v61 = vpop.f32.mrb[242].mxu0 }
 0x2e6   : > { %v2842_v25 = vmax.f32 %v2456_v22, 0.0  ;;  %v2460_v31 = vadd.f32 %v2459_v61, %v7158_v60  ;;  %v2461_v24 = vpop.f32.mrb[243].mxu0 }
 0x2e7   : > { %v2843_v10 = vmax.f32 %v2458_v23, 0.0  ;;  %v2462_v28 = vadd.f32 %v2461_v24, %v7162_v50 }
 0x2e8   : > { %v3351_v34 = vadd.f32 %v3350_v59, %v2842_v25  ;;  %v2856_v35 = vmax.f32 %v2460_v31, 0.0 }
 0x2e9   : > { %v3382_v36 = vadd.f32 %v3381_v18, %v2843_v10  ;;  %v2857_v38 = vmax.f32 %v2462_v28, 0.0  ;;  %v5126_v53 = vpop.f32.mrb[200].mxu1 }
 0x2ea   : > { %v3352_v21 = vadd.f32 %v3351_v34, %v2856_v35  ;;  %v5127_v39 = vpop.f32.mrb[201].mxu1 }
 0x2eb   : > { %v3383_v56 = vadd.f32 %v3382_v36, %v2857_v38  ;;  %v5128_v40 = vadd.f32 %v5127_v39, %v5126_v53  ;;  %v2465_v41 = vpop.f32.mrb[244].mxu0  ;;  %v5129_v43 = vpop.f32.mrb[202].mxu1 }
 0x2ec   : > { %v2466_v33 = vadd.f32 %v2465_v41, %v7158_v60  ;;  %v2467_v44 = vpop.f32.mrb[245].mxu0  ;;  %v5130_v45 = vpop.f32.mrb[203].mxu1 }
 0x2ed   : > { %v4559_v46 = vadd.f32 %v5128_v40, %v7223_v58  ;;  %v2468_v17 = vadd.f32 %v2467_v44, %v7162_v50  ;;  %v2469_v42 = vpop.f32.mrb[246].mxu0 }
 0x2ee   : > { %v2870_v26 = vmax.f32 %v2466_v33, 0.0  ;;  %v2470_v49 = vadd.f32 %v2469_v42, %v7158_v60  ;;  %v2471_v48 = vpop.f32.mrb[247].mxu0 }
 0x2ef   : > { %v2871_v32 = vmax.f32 %v2468_v17, 0.0  ;;  %v2472_v47 = vadd.f32 %v2471_v48, %v7162_v50 }
 0x2f0   : > { %v3353_v16 = vadd.f32 %v3352_v21, %v2870_v26  ;;  %v2884_v30 = vmax.f32 %v2470_v49, 0.0 }
 0x2f1   : > { %v3384_v37 = vadd.f32 %v3383_v56, %v2871_v32  ;;  %v2885_v51 = vmax.f32 %v2472_v47, 0.0 }
 0x2f2   : > { %v3354_v62 = vadd.f32 %v3353_v16, %v2884_v30 }
 0x2f3   : > { %v3385_v8 = vadd.f32 %v3384_v37, %v2885_v51  ;;  %v2475_v63 = vpop.f32.mrb[248].mxu0 }
 0x2f4   : > { %v2476_v0 = vadd.f32 %v2475_v63, %v7158_v60  ;;  %v2477_v58 = vpop.f32.mrb[249].mxu0 }
 0x2f5   : > { %v2478_v1 = vadd.f32 %v2477_v58, %v7162_v50  ;;  %v2479_v4 = vpop.f32.mrb[250].mxu0 }
 0x2f6   : > { %v2898_v19 = vmax.f32 %v2476_v0, 0.0  ;;  %v2480_v5 = vadd.f32 %v2479_v4, %v7158_v60  ;;  %v2481_v6 = vpop.f32.mrb[251].mxu0 }
 0x2f7   : > { %v2899_v12 = vmax.f32 %v2478_v1, 0.0  ;;  %v2482_v2 = vadd.f32 %v2481_v6, %v7162_v50 }
 0x2f8   : > { %v3355_v7 = vadd.f32 %v3354_v62, %v2898_v19  ;;  %v2912_v52 = vmax.f32 %v2480_v5, 0.0 }
 0x2f9   : > { %v3386_v13 = vadd.f32 %v3385_v8, %v2899_v12  ;;  %v2913_v9 = vmax.f32 %v2482_v2, 0.0 }
 0x2fa   : > { %v3356_v54 = vadd.f32 %v3355_v7, %v2912_v52 }
 0x2fb   : > { %v3387_v11 = vadd.f32 %v3386_v13, %v2913_v9  ;;  %v2485_v27 = vpop.f32.mrb[252].mxu0 }
 0x2fc   : > { %v2486_v15 = vadd.f32 %v2485_v27, %v7158_v60  ;;  %v2487_v20 = vpop.f32.mrb[253].mxu0 }
 0x2fd   : > { %v2488_v57 = vadd.f32 %v2487_v20, %v7162_v50  ;;  %v2489_v55 = vpop.f32.mrb[254].mxu0 }
 0x2fe   : > { %v2926_v14 = vmax.f32 %v2486_v15, 0.0  ;;  %v2490_v59 = vadd.f32 %v2489_v55, %v7158_v60  ;;  %v2491_v18 = vpop.f32.mrb[255].mxu0 }
 0x2ff   : > { %v2927_v29 = vmax.f32 %v2488_v57, 0.0  ;;  %v2492_v22 = vadd.f32 %v2491_v18, %v7162_v50 }
 0x300   : > { %v3357_v3 = vadd.f32 %v3356_v54, %v2926_v14  ;;  %v2940_v23 = vmax.f32 %v2490_v59, 0.0 }
 0x301   : > { %v3388_v61 = vadd.f32 %v3387_v11, %v2927_v29  ;;  %v2941_v25 = vmax.f32 %v2492_v22, 0.0 }
 0x302   : > { %v3358_v31 = vadd.f32 %v3357_v3, %v2940_v23 }
 0x303   : > { %v3389_v24 = vadd.f32 %v3388_v61, %v2941_v25 }
 0x304   : > { %v3507_v10 = vrot.slane %v3358_v31, 4 }
 0x305   : > { %v3513_v28 = vrot.slane %v3389_v24, 4 }
 0x306   : > { %v3508_v34 = vadd.f32 %v3507_v10, %v3358_v31 }
 0x307   : > { %v3514_v35 = vadd.f32 %v3513_v28, %v3389_v24 }
 0x308   : > { %v3509_v36 = vrot.slane %v3508_v34, 2 }
 0x309   : > { %v3515_v38 = vrot.slane %v3514_v35, 2  ;;  %v5148_v53 = vpop.f32.mrb[204].mxu1 }
 0x30a   : > { %v3510_v21 = vadd.f32 %v3509_v36, %v3508_v34  ;;  %v5149_v39 = vpop.f32.mrb[205].mxu1 }
 0x30b   : > { %v5150_v60 = vadd.f32 %v5149_v39, %v5148_v53  ;;  %v3516_v56 = vadd.f32 %v3515_v38, %v3514_v35  ;;  %v5151_v40 = vpop.f32.mrb[206].mxu1 }
 0x30c   : > { %v3511_v41 = vrot.slane %v3510_v21, 1  ;;  %v5152_v50 = vpop.f32.mrb[207].mxu1 }
 0x30d   : > { %v4599_v43 = vadd.f32 %v5150_v60, %v4559_v46  ;;  %v3517_v33 = vrot.slane %v3516_v56, 1 }
 0x30e   : > { %v3512_v44 = vadd.f32 %v3511_v41, %v3510_v21 }
 0x30f   : > { %v3518_v45 = vadd.f32 %v3517_v33, %v3516_v56 }
 0x310   : > { %v3531_v17 = vmul.f32 0.00390625, %v3512_v44 }
 0x311   : > { %v3532_v42 = vmul.f32 0.00390625, %v3518_v45 }
 0x312   : > { %v3545_v49 = vpack.c.bf16 %v3531_v17, %v3531_v17 }
 0x313   : > { %v3546_v26 = vpack.c.bf16 %v3532_v42, %v3532_v42 }
 0x315   : > { %4716 = vmatprep.mubr.bf16.mxu0 %v3546_v26 }
 0x316   : > { %4717 = vmatmul.mubr.bf16.vlgmr.msra.gmra.mrb[4].mxu0 %v3545_v49 }
 0x369   : > { %v5170_v48 = vpop.f32.mrb[0].mxu0  ;;  %v5192_v32 = vpop.f32.mrb[208].mxu1 }
 0x36a   : > { %v5171_v47 = vpop.f32.mrb[1].mxu0  ;;  %v5193_v16 = vpop.f32.mrb[209].mxu1 }
 0x36b   : > { %v5172_v30 = vadd.f32 %v5171_v47, %v5170_v48  ;;  %v5173_v37 = vpop.f32.mrb[2].mxu0  ;;  %v5194_v51 = vadd.f32 %v5193_v16, %v5192_v32  ;;  %v5195_v62 = vpop.f32.mrb[210].mxu1 }
 0x36c   : > { %v5174_v8 = vpop.f32.mrb[3].mxu0  ;;  %v5196_v63 = vpop.f32.mrb[211].mxu1 }
 0x36d   : > { %v4639_v46 = vadd.f32 %v5172_v30, %v4599_v43 }
 0x36f   : > { %v4679_v0 = vadd.f32 %v5194_v51, %v4639_v46 }
 0x3e9   : > { %v5214_v58 = vpop.f32.mrb[4].mxu0 }
 0x3ea   : > { %v5215_v1 = vpop.f32.mrb[5].mxu0 }
 0x3eb   : > { %v5216_v4 = vadd.f32 %v5215_v1, %v5214_v58  ;;  %v5217_v19 = vpop.f32.mrb[6].mxu0 }
 0x3ec   : > { %v5218_v5 = vpop.f32.mrb[7].mxu0 }
 0x3ed   : > { %v4719_v6 = vadd.f32 %v5216_v4, %v4679_v0 }
 0x3ef   : > { %v4724_v12 = vmul.f32 %v4719_v6, %v4719_v6 }
 0x3f1   : > { %v4726_v2 = vsel %vm4725_vm0, %v4724_v12, 0.0 }
 0x3f2   : > { %4727 = vadd.xlane.f32.xlu0 %v4726_v2 }
 0x47f   : > { %v4728_v7 = vpop.xlane.xlu0 %4727 }
 0x480   : > { %v4729_v52 = vmax.f32 %v4728_v7, 1e-24 }
 0x482   : > { %5572 = vrsqrt.f32 %v4729_v52 }
 0x48c   : > { %v5573_v13 = vpop.eup %5572 }
 0x48d   : > { %v4731_v9 = vmul.f32 %v5573_v13, %v4719_v6 }
 0x48f   : > { %4732 = vst [vmem:[%s239_s16] sm:$0x1] %v4731_v9 }
 0x490   : > { %5621 = shalt.err (!%p5618_p5)
}
 0x491   : > { %s5622_s7 = scalar_lea.hbm %s7291_s25, 16  ;;  %s5626_s12 = scalar_lea.hbm %s7343_s5, 32 }
 0x492   : > { %p5623_p6 = scmp.ne.s32.totalorder %s7291_s25, %s5622_s7  ;;  %p5627_p10 = scmp.lt.u32.totalorder %s7291_s25, %s7343_s5 }
 0x493   : > { %p5628_p11 = scmp.lt.u32.totalorder %s5626_s12, %s5622_s7  ;;  %p5630_p13 = scmp.lt.u32.totalorder %s5622_s7, %s7291_s25 }
 0x494   : > { %p5624_p7 = pnand %p5623_p6, %p5760_p4 }
 0x495   : > { %p5629_p12 = por %p5628_p11, %p5627_p10 }
 0x496   : > { %p5625_p9 = pneg %p5624_p7 }
 0x497   : > { %p5631_p0 = por %p5630_p13, %p5629_p12 }
 0x499   : > { %p5632_p1 = pnand %p5631_p0, %p5625_p9 }
 0x49b   : > { %5635 = shalt.err (!%p5632_p1)
}
 0x49c   : > { %5220 = dma.vmem_to_hbm [thread:$0]  (%p5760_p4), %s7293_s17, 16, %s7291_s25, %s4734_s27  }
 0x49d PF: > { %p5226_p2 = scmp.ge.s32.totalorder %s5686_s23, 2  ;;  %s4758_s16 = sand.u32 1, %s5666_s18  }
 0x49e   : > { %s4759_s13 = scalar_lea.sflag [#allocation4], %s4758_s16 }
 0x49f   : > { %p5223_p3 = pnand %p5226_p2, %p5767_p8 }
 0x4a1   : > { %5661 = dma.done.wait (!%p5223_p3), %s4759_s13, 16  }
 0x4a2   : > { %5663 = vsyncadd (!%p5223_p3), %s4759_s13, 4294967280  ;;  %s18_s23 = sadd.s32 1, %s5686_s23   ;;  %s7346_s18 = smov %s5670_s19 }
 0x4a3   : > { %p15_p5 = scmp.ge.s32.totalorder %s18_s23, 4   ;;  %s7347_s19 = smov %s5674_s20 }
 0x4a4   : > { %s7348_s20 = smov %s5773_s6  ;;  %s7349_s21 = smov %s5682_s22 }
 0x4a5   : > { %s7350_s22 = smov %s7352_s26  ;;  %17 = sbr.rel (!%p15_p5) target bundleno = 4 (0x4), region = 83 }
 0x4ac   :  { %4763 = vsyncpa [#allocation4], 1 }
 0x4ad   :  { %4765 = vsyncpa [#allocation4 + $0x1], 1 }

</bundles_post_ra>
